<compile_context>
chip_gen: v7x
topology: tpu7x:2x2x1
jax: 0.10.0
libtpu: 0.0.40
codegen_flags: <defaults>
</compile_context>

<pallas_src>
import jax
import jax.numpy as jnp
from jax.experimental import pallas as pl
from jax.experimental.pallas import tpu as pltpu


_TB_MAX = 128   # batch samples per grid step; v7x-safe default (see header).


# ----------------------------------------------------------------------------
# Fused kernel
# ----------------------------------------------------------------------------
def _lenet_kernel(x_ref, band1_ref, b1_ref, band2_ref, b2_ref, pw1_ref, pw2_ref,
                  wf1_ref, bf1_ref, wf2_ref, bf2_ref, wf3_ref, bf3_ref,
                  o_ref, s1_ref, s2_ref):
    f32, bf16 = jnp.float32, jnp.bfloat16
    n1 = s1_ref.shape[0]          # TB*32 rows, row = (batch, image row)
    n2 = s2_ref.shape[0]          # TB*16 rows, row = (batch, pooled-1 row)
    tb = n2 // 16                 # batch samples in this grid step

    # ---- conv1 + bias + tanh: one K=160 matmul (bands pre-concatenated) -----
    acc1 = jnp.dot(x_ref[...], band1_ref[...], preferred_element_type=f32)   # (n1, 168)
    y1 = jnp.tanh(acc1 + b1_ref[...]).astype(bf16)

    # ---- avg-pool #1: width/channel via bf16 matmul (128-lane padded), ------
    # ---- height row-pair sum via a single XLU roll (roll by -1).        ------
    pool1 = jnp.dot(y1, pw1_ref[...], preferred_element_type=f32)            # (n1, 128)
    s1_ref[...] = pool1 + pltpu.roll(pool1, n1 - 1, 0)                       # row r + row r+1

    # ---- conv2 + bias + tanh: build the banded LHS (K = 5*128) from one -----
    # ---- stride-2 gather + 4 XLU rolls, then a single MXU matmul.        -----
    p1 = s1_ref[pl.ds(0, n2, 2), :]                                          # (n2, 128)
    lhs2 = jnp.concatenate(
        [p1] + [pltpu.roll(p1, n2 - i, 0) for i in range(1, 5)],             # roll by -i
        axis=-1).astype(bf16)                                                # (n2, 640)
    acc2 = jnp.dot(lhs2, band2_ref[...], preferred_element_type=f32)         # (n2, 160)
    y2 = jnp.tanh(acc2 + b2_ref[...]).astype(bf16)

    # ---- avg-pool #2: width via bf16 matmul, height row-pair sum via roll ---
    pool2 = jnp.dot(y2, pw2_ref[...], preferred_element_type=f32)            # (n2, 128)
    s2_ref[...] = pool2 + pltpu.roll(pool2, n2 - 1, 0)

    # ---- fc1: gather the 5 pooled rows per sample (stride-16), one K=640 dot
    feats = jnp.concatenate(
        [s2_ref[pl.ds(2 * h, tb, 16), :] for h in range(5)], axis=-1).astype(bf16)
    h1 = jnp.tanh(jnp.dot(feats, wf1_ref[...], preferred_element_type=f32)
                  + bf1_ref[...])                                            # (tb, 128)

    # ---- fc2 / fc3 (zero-padded to 128 lanes -> lane-dense stores) ----------
    h2 = jnp.tanh(jnp.dot(h1.astype(bf16), wf2_ref[...],
                          preferred_element_type=f32) + bf2_ref[...])
    out = jnp.dot(h2.astype(bf16), wf3_ref[...],
                  preferred_element_type=f32) + bf3_ref[...]
    o_ref[...] = out.astype(o_ref.dtype)


# ----------------------------------------------------------------------------
# Parameter preparation (runs once in XLA: band matrices, permutes, padding)
# ----------------------------------------------------------------------------
def _round_up(n, m):
    return (n + m - 1) // m * m


def _pool_w_matrix(w_in, w_out, c, out_pad=128):
    """Lane-axis 2x average-pool matrix, zero-padded to `out_pad` lanes."""
    k = jnp.arange(w_in * c)
    q = jnp.arange(w_out * c)
    hit = (k[:, None] // (2 * c) == q[None, :] // c) & (k[:, None] % c == q[None, :] % c)
    m = jnp.where(hit, 0.25, 0.0).astype(jnp.float32)
    return jnp.pad(m, ((0, 0), (0, out_pad - w_out * c)))


def _prepare_params(p):
    f32, bf16 = jnp.float32, jnp.bfloat16
    w1 = p["w1"].astype(f32)                        # (6, 1, 5, 5)
    w2 = p["w2"].astype(f32)                        # (16, 6, 5, 5)

    # conv1 bands stacked along K: band1[i*32 + u, w*6 + o] = w1[o, 0, i, u - w]
    u = jnp.arange(32)[:, None]
    w = jnp.arange(28)[None, :]
    j = u - w
    valid = (j >= 0) & (j < 5)
    w1t = jnp.transpose(w1[:, 0], (1, 2, 0))        # (i, j, o)
    band1 = jnp.where(valid[None, :, :, None], w1t[:, jnp.clip(j, 0, 4), :], 0.0)
    band1 = band1.reshape(5 * 32, 28 * 6)           # (160, 168)
    b1t = jnp.tile(p["b1"].astype(f32), 28).reshape(1, 168)

    # conv2 bands stacked along K (each band's input padded 84 -> 128 lanes):
    # band2[i*128 + wv*6 + c, wq*16 + o] = w2[o, c, i, wv - wq]
    uv = jnp.arange(14)[:, None]
    wq = jnp.arange(10)[None, :]
    j2 = uv - wq
    valid2 = (j2 >= 0) & (j2 < 5)
    w2t = jnp.transpose(w2, (2, 1, 3, 0))           # (i, c, j, o)
    band2 = jnp.where(valid2[None, None, :, :, None],
                      w2t[:, :, jnp.clip(j2, 0, 4), :], 0.0)   # (i, c, wv, wq, o)
    band2 = jnp.transpose(band2, (0, 2, 1, 3, 4)).reshape(5, 14 * 6, 10 * 16)
    band2 = jnp.pad(band2, ((0, 0), (0, 128 - 84), (0, 0))).reshape(5 * 128, 160)
    b2t = jnp.tile(p["b2"].astype(f32), 10).reshape(1, 160)

    # pooling matrices (bf16, output padded to 128 lanes for lane-dense stores)
    pw1 = _pool_w_matrix(28, 14, 6)                 # (168, 128), 84 valid cols
    pw2 = _pool_w_matrix(10, 5, 16)                 # (160, 128), 80 valid cols

    # fc1: permute input features from torch's NCHW flatten (c*25 + h*5 + w)
    # to the kernel's per-h (w*16 + c) layout, each h block padded to 128 rows.
    wf1_r = p["wf1"].astype(f32).reshape(120, 16, 5, 5).transpose(2, 3, 1, 0)  # (h,w,c,j)
    wf1_r = wf1_r.reshape(5, 80, 120)
    wf1p = jnp.zeros((5, 128, 128), f32).at[:, :80, :120].set(wf1_r).reshape(640, 128)
    bf1p = jnp.zeros((1, 128), f32).at[0, :120].set(p["bf1"].astype(f32))
    wf2p = jnp.zeros((128, 128), f32).at[:120, :84].set(p["wf2"].astype(f32).T)
    bf2p = jnp.zeros((1, 128), f32).at[0, :84].set(p["bf2"].astype(f32))
    wf3p = jnp.zeros((128, 128), f32).at[:84, :10].set(p["wf3"].astype(f32).T)
    bf3p = jnp.zeros((1, 128), f32).at[0, :10].set(p["bf3"].astype(f32))

    return (band1.astype(bf16), b1t, band2.astype(bf16), b2t,
            pw1.astype(bf16), pw2.astype(bf16),
            wf1p.astype(bf16), bf1p, wf2p.astype(bf16), bf2p, wf3p.astype(bf16), bf3p)


# ----------------------------------------------------------------------------
# Public forward
# ----------------------------------------------------------------------------
def lenet_forward(x_nchw, params):
    """DynamicQuantizedLeNet forward (float path). Input: NCHW [B, 1, 32, 32]."""
    B = x_nchw.shape[0]
    assert x_nchw.shape[1:] == (1, 32, 32)
    weights = _prepare_params(params)

    # Batch tiling: choose the number of grid steps so padding waste stays small,
    # and force >= 2 steps when B >= 16 so both v7x TensorCores get work.
    B8 = _round_up(B, 8)
    steps = max(1, -(-B8 // _TB_MAX))
    if B8 >= 16:
        steps = max(steps, 2)
    TB = _round_up(-(-B8 // steps), 8)
    Bp = TB * steps

    # conv1 banded LHS built once on the host: 5 row-shifted copies of the
    # (Bp*32, 32) image rows concatenated along K -> (Bp*32, 160) bf16.
    # (Row shifts wrap across image/batch boundaries only into slab rows that
    #  are discarded downstream -- see the invariant in the file header.)
    img = x_nchw.astype(jnp.float32).reshape(B, 32, 32)
    img = jnp.pad(img, ((0, Bp - B), (0, 0), (0, 0)))
    flat = img.reshape(Bp * 32, 32)
    x_lhs = jnp.concatenate([jnp.roll(flat, -i, axis=0) for i in range(5)],
                            axis=-1).astype(jnp.bfloat16)

    def _resident(a):                               # weight stays in VMEM across grid
        return pl.BlockSpec(a.shape, lambda m: (0, 0))

    in_specs = [pl.BlockSpec((TB * 32, 160), lambda m: (m, 0))]
    in_specs += [_resident(a) for a in weights]

    out = pl.pallas_call(
        _lenet_kernel,
        out_shape=jax.ShapeDtypeStruct((Bp, 128), jnp.float32),
        grid=(Bp // TB,),
        in_specs=in_specs,
        out_specs=pl.BlockSpec((TB, 128), lambda m: (m, 0)),
        scratch_shapes=[
            pltpu.VMEM((TB * 32, 128), jnp.float32),   # pooled-1 row-pair sums
            pltpu.VMEM((TB * 16, 128), jnp.float32),   # pooled-2 row-pair sums
        ],
        compiler_params=pltpu.CompilerParams(
            dimension_semantics=("parallel",),
            vmem_limit_bytes=32 * 1024 * 1024,
        ),
    )(x_lhs, *weights)
    return out[:B, :10]


# ----------------------------------------------------------------------------
# Plain-JAX reference (for numerical validation) and synthetic parameters
# ----------------------------------------------------------------------------
def _reference_forward(x_nchw, params):
    dn = ("NCHW", "OIHW", "NCHW")
    x = x_nchw.astype(jnp.float32)
    y = jax.lax.conv_general_dilated(x, params["w1"], (1, 1), "VALID",
                                     dimension_numbers=dn)
    y = jnp.tanh(y + params["b1"][None, :, None, None])
    B, C, H, W = y.shape
    y = y.reshape(B, C, H // 2, 2, W // 2, 2).mean(axis=(3, 5))
    y = jax.lax.conv_general_dilated(y, params["w2"], (1, 1), "VALID",
                                     dimension_numbers=dn)
    y = jnp.tanh(y + params["b2"][None, :, None, None])
    B, C, H, W = y.shape
    y = y.reshape(B, C, H // 2, 2, W // 2, 2).mean(axis=(3, 5))
    f = y.reshape(B, -1)
    h1 = jnp.tanh(f @ params["wf1"].T + params["bf1"])
    h2 = jnp.tanh(h1 @ params["wf2"].T + params["bf2"])
    return h2 @ params["wf3"].T + params["bf3"]


def init_params(key):
    """Deterministic synthetic parameters with the module's shapes
    (FC weights stored PyTorch-style as (out_features, in_features))."""
    ks = jax.random.split(key, 10)
    s = 0.1
    return {
        "w1": s * jax.random.normal(ks[0], (6, 1, 5, 5), jnp.float32),
        "b1": s * jax.random.normal(ks[1], (6,), jnp.float32),
        "w2": s * jax.random.normal(ks[2], (16, 6, 5, 5), jnp.float32),
        "b2": s * jax.random.normal(ks[3], (16,), jnp.float32),
        "wf1": s * jax.random.normal(ks[4], (120, 400), jnp.float32),
        "bf1": s * jax.random.normal(ks[5], (120,), jnp.float32),
        "wf2": s * jax.random.normal(ks[6], (84, 120), jnp.float32),
        "bf2": s * jax.random.normal(ks[7], (84,), jnp.float32),
        "wf3": s * jax.random.normal(ks[8], (10, 84), jnp.float32),
        "bf3": s * jax.random.normal(ks[9], (10,), jnp.float32),
    }


if __name__ == "__main__":
    key = jax.random.PRNGKey(0)
    k_x, k_p = jax.random.split(key)
    # LeNet's Linear(400, 120) implies 32x32 single-channel input.
    x = jax.random.normal(k_x, (2, 1, 32, 32), jnp.float32)
    params = init_params(k_p)

    out = jax.jit(lenet_forward)(x, params)
    out = jax.block_until_ready(out)
    assert out.shape == (2, 10) and out.dtype == jnp.float32

    ref = _reference_forward(x, params)
    err = float(jnp.max(jnp.abs(out - ref)))
    assert err < 5e-2, f"max abs error vs reference: {err}"
    print("KERNEL_OK")
</pallas_src>

<mosaic_0001>
module attributes {stable_mosaic.version = 11 : i64} {
  func.func @_lenet_kernel(%arg0: i32, %arg1: memref<256x160xbf16, #tpu.memory_space<vmem>>, %arg2: memref<160x168xbf16, #tpu.memory_space<vmem>>, %arg3: memref<1x168xf32, #tpu.memory_space<vmem>>, %arg4: memref<640x160xbf16, #tpu.memory_space<vmem>>, %arg5: memref<1x160xf32, #tpu.memory_space<vmem>>, %arg6: memref<168x128xbf16, #tpu.memory_space<vmem>>, %arg7: memref<160x128xbf16, #tpu.memory_space<vmem>>, %arg8: memref<640x128xbf16, #tpu.memory_space<vmem>>, %arg9: memref<1x128xf32, #tpu.memory_space<vmem>>, %arg10: memref<128x128xbf16, #tpu.memory_space<vmem>>, %arg11: memref<1x128xf32, #tpu.memory_space<vmem>>, %arg12: memref<128x128xbf16, #tpu.memory_space<vmem>>, %arg13: memref<1x128xf32, #tpu.memory_space<vmem>>, %arg14: memref<8x128xf32, #tpu.memory_space<vmem>>, %arg15: memref<256x128xf32, #tpu.memory_space<vmem>>, %arg16: memref<128x128xf32, #tpu.memory_space<vmem>>) attributes {dimension_semantics = [#tpu.dimension_semantics<parallel>], iteration_bounds = array<i64: 1>, scalar_prefetch = 0 : i64, scratch_operands = 2 : i64, tpu.core_type = #tpu.core_type<tc>, window_params = [{transform_indices = @transform_0, window_bounds = array<i64: 256, 160>}, {pipeline_mode = #tpu.pipeline_mode<synchronous>, transform_indices = @transform_1, window_bounds = array<i64: 160, 168>}, {pipeline_mode = #tpu.pipeline_mode<synchronous>, transform_indices = @transform_2, window_bounds = array<i64: 1, 168>}, {pipeline_mode = #tpu.pipeline_mode<synchronous>, transform_indices = @transform_3, window_bounds = array<i64: 640, 160>}, {pipeline_mode = #tpu.pipeline_mode<synchronous>, transform_indices = @transform_4, window_bounds = array<i64: 1, 160>}, {pipeline_mode = #tpu.pipeline_mode<synchronous>, transform_indices = @transform_5, window_bounds = array<i64: 168, 128>}, {pipeline_mode = #tpu.pipeline_mode<synchronous>, transform_indices = @transform_6, window_bounds = array<i64: 160, 128>}, {pipeline_mode = #tpu.pipeline_mode<synchronous>, transform_indices = @transform_7, window_bounds = array<i64: 640, 128>}, {pipeline_mode = #tpu.pipeline_mode<synchronous>, transform_indices = @transform_8, window_bounds = array<i64: 1, 128>}, {pipeline_mode = #tpu.pipeline_mode<synchronous>, transform_indices = @transform_9, window_bounds = array<i64: 128, 128>}, {pipeline_mode = #tpu.pipeline_mode<synchronous>, transform_indices = @transform_10, window_bounds = array<i64: 1, 128>}, {pipeline_mode = #tpu.pipeline_mode<synchronous>, transform_indices = @transform_11, window_bounds = array<i64: 128, 128>}, {pipeline_mode = #tpu.pipeline_mode<synchronous>, transform_indices = @transform_12, window_bounds = array<i64: 1, 128>}, {transform_indices = @transform_13, window_bounds = array<i64: 8, 128>}]} {
    %c0 = arith.constant 0 : index
    %c0_0 = arith.constant 0 : index
    %0 = vector.load %arg1[%c0, %c0_0] : memref<256x160xbf16, #tpu.memory_space<vmem>>, vector<256x160xbf16>
    %c0_1 = arith.constant 0 : index
    %c0_2 = arith.constant 0 : index
    %1 = vector.load %arg2[%c0_1, %c0_2] : memref<160x168xbf16, #tpu.memory_space<vmem>>, vector<160x168xbf16>
    %cst = arith.constant dense<0.000000e+00> : vector<256x168xf32>
    %2 = tpu.matmul %0, %1, %cst {dimension_numbers = #tpu.dot_dimension_numbers<[1], [0], [0], [1], [0, 0, 1, 1], [], []>} : vector<256x160xbf16>, vector<160x168xbf16>, vector<256x168xf32> -> vector<256x168xf32>
    %c0_3 = arith.constant 0 : index
    %c0_4 = arith.constant 0 : index
    %3 = vector.load %arg3[%c0_3, %c0_4] : memref<1x168xf32, #tpu.memory_space<vmem>>, vector<1x168xf32>
    %4 = vector.broadcast %3 : vector<1x168xf32> to vector<256x168xf32>
    %5 = arith.addf %2, %4 : vector<256x168xf32>
    %6 = math.tanh %5 : vector<256x168xf32>
    %7 = arith.truncf %6 : vector<256x168xf32> to vector<256x168xbf16>
    %c0_5 = arith.constant 0 : index
    %c0_6 = arith.constant 0 : index
    %8 = vector.load %arg6[%c0_5, %c0_6] : memref<168x128xbf16, #tpu.memory_space<vmem>>, vector<168x128xbf16>
    %cst_7 = arith.constant dense<0.000000e+00> : vector<256x128xf32>
    %9 = tpu.matmul %7, %8, %cst_7 {dimension_numbers = #tpu.dot_dimension_numbers<[1], [0], [0], [1], [0, 0, 1, 1], [], []>} : vector<256x168xbf16>, vector<168x128xbf16>, vector<256x128xf32> -> vector<256x128xf32>
    %c255_i32 = arith.constant 255 : i32
    %10 = tpu.dynamic_rotate %9 by %c255_i32 dim 0 : vector<256x128xf32>, i32 -> vector<256x128xf32>
    %11 = arith.addf %9, %10 : vector<256x128xf32>
    %c0_8 = arith.constant 0 : index
    %c0_9 = arith.constant 0 : index
    %12 = vector.load %arg15[%c0_8, %c0_9] : memref<256x128xf32, #tpu.memory_space<vmem>>, vector<256x128xf32>
    tpu.vector_store %arg15[%c0_8, %c0_9], %11 {strides = array<i32>} : memref<256x128xf32, #tpu.memory_space<vmem>>, vector<256x128xf32>,
    %c0_10 = arith.constant 0 : index
    %c0_11 = arith.constant 0 : index
    %13 = tpu.strided_load %arg15[%c0_10, %c0_11] {strides = array<i32: 2, 1>} : memref<256x128xf32, #tpu.memory_space<vmem>>, vector<128x128xf32>
    %c127_i32 = arith.constant 127 : i32
    %14 = tpu.dynamic_rotate %13 by %c127_i32 dim 0 : vector<128x128xf32>, i32 -> vector<128x128xf32>
    %c126_i32 = arith.constant 126 : i32
    %15 = tpu.dynamic_rotate %13 by %c126_i32 dim 0 : vector<128x128xf32>, i32 -> vector<128x128xf32>
    %c125_i32 = arith.constant 125 : i32
    %16 = tpu.dynamic_rotate %13 by %c125_i32 dim 0 : vector<128x128xf32>, i32 -> vector<128x128xf32>
    %c124_i32 = arith.constant 124 : i32
    %17 = tpu.dynamic_rotate %13 by %c124_i32 dim 0 : vector<128x128xf32>, i32 -> vector<128x128xf32>
    %18 = tpu.concatenate %13, %14, %15, %16, %17 in 1 : vector<128x128xf32>, vector<128x128xf32>, vector<128x128xf32>, vector<128x128xf32>, vector<128x128xf32> -> vector<128x640xf32>
    %19 = arith.truncf %18 : vector<128x640xf32> to vector<128x640xbf16>
    %c0_12 = arith.constant 0 : index
    %c0_13 = arith.constant 0 : index
    %20 = vector.load %arg4[%c0_12, %c0_13] : memref<640x160xbf16, #tpu.memory_space<vmem>>, vector<640x160xbf16>
    %cst_14 = arith.constant dense<0.000000e+00> : vector<128x160xf32>
    %21 = tpu.matmul %19, %20, %cst_14 {dimension_numbers = #tpu.dot_dimension_numbers<[1], [0], [0], [1], [0, 0, 1, 1], [], []>} : vector<128x640xbf16>, vector<640x160xbf16>, vector<128x160xf32> -> vector<128x160xf32>
    %c0_15 = arith.constant 0 : index
    %c0_16 = arith.constant 0 : index
    %22 = vector.load %arg5[%c0_15, %c0_16] : memref<1x160xf32, #tpu.memory_space<vmem>>, vector<1x160xf32>
    %23 = vector.broadcast %22 : vector<1x160xf32> to vector<128x160xf32>
    %24 = arith.addf %21, %23 : vector<128x160xf32>
    %25 = math.tanh %24 : vector<128x160xf32>
    %26 = arith.truncf %25 : vector<128x160xf32> to vector<128x160xbf16>
    %c0_17 = arith.constant 0 : index
    %c0_18 = arith.constant 0 : index
    %27 = vector.load %arg7[%c0_17, %c0_18] : memref<160x128xbf16, #tpu.memory_space<vmem>>, vector<160x128xbf16>
    %cst_19 = arith.constant dense<0.000000e+00> : vector<128x128xf32>
    %28 = tpu.matmul %26, %27, %cst_19 {dimension_numbers = #tpu.dot_dimension_numbers<[1], [0], [0], [1], [0, 0, 1, 1], [], []>} : vector<128x160xbf16>, vector<160x128xbf16>, vector<128x128xf32> -> vector<128x128xf32>
    %c127_i32_20 = arith.constant 127 : i32
    %29 = tpu.dynamic_rotate %28 by %c127_i32_20 dim 0 : vector<128x128xf32>, i32 -> vector<128x128xf32>
    %30 = arith.addf %28, %29 : vector<128x128xf32>
    %c0_21 = arith.constant 0 : index
    %c0_22 = arith.constant 0 : index
    %31 = vector.load %arg16[%c0_21, %c0_22] : memref<128x128xf32, #tpu.memory_space<vmem>>, vector<128x128xf32>
    tpu.vector_store %arg16[%c0_21, %c0_22], %30 {strides = array<i32>} : memref<128x128xf32, #tpu.memory_space<vmem>>, vector<128x128xf32>,
    %c0_23 = arith.constant 0 : index
    %c0_24 = arith.constant 0 : index
    %32 = tpu.strided_load %arg16[%c0_23, %c0_24] {strides = array<i32: 16, 1>} : memref<128x128xf32, #tpu.memory_space<vmem>>, vector<8x128xf32>
    %c2 = arith.constant 2 : index
    %c0_25 = arith.constant 0 : index
    %33 = tpu.strided_load %arg16[%c2, %c0_25] {strides = array<i32: 16, 1>} : memref<128x128xf32, #tpu.memory_space<vmem>>, vector<8x128xf32>
    %c4 = arith.constant 4 : index
    %c0_26 = arith.constant 0 : index
    %34 = tpu.strided_load %arg16[%c4, %c0_26] {strides = array<i32: 16, 1>} : memref<128x128xf32, #tpu.memory_space<vmem>>, vector<8x128xf32>
    %c6 = arith.constant 6 : index
    %c0_27 = arith.constant 0 : index
    %35 = tpu.strided_load %arg16[%c6, %c0_27] {strides = array<i32: 16, 1>} : memref<128x128xf32, #tpu.memory_space<vmem>>, vector<8x128xf32>
    %c8 = arith.constant 8 : index
    %c0_28 = arith.constant 0 : index
    %36 = tpu.strided_load %arg16[%c8, %c0_28] {strides = array<i32: 16, 1>} : memref<128x128xf32, #tpu.memory_space<vmem>>, vector<8x128xf32>
    %37 = tpu.concatenate %32, %33, %34, %35, %36 in 1 : vector<8x128xf32>, vector<8x128xf32>, vector<8x128xf32>, vector<8x128xf32>, vector<8x128xf32> -> vector<8x640xf32>
    %38 = arith.truncf %37 : vector<8x640xf32> to vector<8x640xbf16>
    %c0_29 = arith.constant 0 : index
    %c0_30 = arith.constant 0 : index
    %39 = vector.load %arg8[%c0_29, %c0_30] : memref<640x128xbf16, #tpu.memory_space<vmem>>, vector<640x128xbf16>
    %cst_31 = arith.constant dense<0.000000e+00> : vector<8x128xf32>
    %40 = tpu.matmul %38, %39, %cst_31 {dimension_numbers = #tpu.dot_dimension_numbers<[1], [0], [0], [1], [0, 0, 1, 1], [], []>} : vector<8x640xbf16>, vector<640x128xbf16>, vector<8x128xf32> -> vector<8x128xf32>
    %c0_32 = arith.constant 0 : index
    %c0_33 = arith.constant 0 : index
    %41 = vector.load %arg9[%c0_32, %c0_33] : memref<1x128xf32, #tpu.memory_space<vmem>>, vector<1x128xf32>
    %42 = vector.broadcast %41 : vector<1x128xf32> to vector<8x128xf32>
    %43 = arith.addf %40, %42 : vector<8x128xf32>
    %44 = math.tanh %43 : vector<8x128xf32>
    %45 = arith.truncf %44 : vector<8x128xf32> to vector<8x128xbf16>
    %c0_34 = arith.constant 0 : index
    %c0_35 = arith.constant 0 : index
    %46 = vector.load %arg10[%c0_34, %c0_35] : memref<128x128xbf16, #tpu.memory_space<vmem>>, vector<128x128xbf16>
    %cst_36 = arith.constant dense<0.000000e+00> : vector<8x128xf32>
    %47 = tpu.matmul %45, %46, %cst_36 {dimension_numbers = #tpu.dot_dimension_numbers<[1], [0], [0], [1], [0, 0, 1, 1], [], []>} : vector<8x128xbf16>, vector<128x128xbf16>, vector<8x128xf32> -> vector<8x128xf32>
    %c0_37 = arith.constant 0 : index
    %c0_38 = arith.constant 0 : index
    %48 = vector.load %arg11[%c0_37, %c0_38] : memref<1x128xf32, #tpu.memory_space<vmem>>, vector<1x128xf32>
    %49 = vector.broadcast %48 : vector<1x128xf32> to vector<8x128xf32>
    %50 = arith.addf %47, %49 : vector<8x128xf32>
    %51 = math.tanh %50 : vector<8x128xf32>
    %52 = arith.truncf %51 : vector<8x128xf32> to vector<8x128xbf16>
    %c0_39 = arith.constant 0 : index
    %c0_40 = arith.constant 0 : index
    %53 = vector.load %arg12[%c0_39, %c0_40] : memref<128x128xbf16, #tpu.memory_space<vmem>>, vector<128x128xbf16>
    %cst_41 = arith.constant dense<0.000000e+00> : vector<8x128xf32>
    %54 = tpu.matmul %52, %53, %cst_41 {dimension_numbers = #tpu.dot_dimension_numbers<[1], [0], [0], [1], [0, 0, 1, 1], [], []>} : vector<8x128xbf16>, vector<128x128xbf16>, vector<8x128xf32> -> vector<8x128xf32>
    %c0_42 = arith.constant 0 : index
    %c0_43 = arith.constant 0 : index
    %55 = vector.load %arg13[%c0_42, %c0_43] : memref<1x128xf32, #tpu.memory_space<vmem>>, vector<1x128xf32>
    %56 = vector.broadcast %55 : vector<1x128xf32> to vector<8x128xf32>
    %57 = arith.addf %54, %56 : vector<8x128xf32>
    %c0_44 = arith.constant 0 : index
    %c0_45 = arith.constant 0 : index
    %58 = vector.load %arg14[%c0_44, %c0_45] : memref<8x128xf32, #tpu.memory_space<vmem>>, vector<8x128xf32>
    tpu.vector_store %arg14[%c0_44, %c0_45], %57 {strides = array<i32>} : memref<8x128xf32, #tpu.memory_space<vmem>>, vector<8x128xf32>,
    return
  }
  func.func @transform_0(%arg0: i32) -> (i32, i32) {
    %c0_i32 = arith.constant 0 : i32
    %c0_i32_0 = arith.constant 0 : i32
    return %arg0, %c0_i32 : i32, i32
  }
  func.func @transform_1(%arg0: i32) -> (i32, i32) {
    %c0_i32 = arith.constant 0 : i32
    %c0_i32_0 = arith.constant 0 : i32
    %c0_i32_1 = arith.constant 0 : i32
    return %c0_i32, %c0_i32_0 : i32, i32
  }
  func.func @transform_2(%arg0: i32) -> (i32, i32) {
    %c0_i32 = arith.constant 0 : i32
    %c0_i32_0 = arith.constant 0 : i32
    %c0_i32_1 = arith.constant 0 : i32
    return %c0_i32, %c0_i32_0 : i32, i32
  }
  func.func @transform_3(%arg0: i32) -> (i32, i32) {
    %c0_i32 = arith.constant 0 : i32
    %c0_i32_0 = arith.constant 0 : i32
    %c0_i32_1 = arith.constant 0 : i32
    return %c0_i32, %c0_i32_0 : i32, i32
  }
  func.func @transform_4(%arg0: i32) -> (i32, i32) {
    %c0_i32 = arith.constant 0 : i32
    %c0_i32_0 = arith.constant 0 : i32
    %c0_i32_1 = arith.constant 0 : i32
    return %c0_i32, %c0_i32_0 : i32, i32
  }
  func.func @transform_5(%arg0: i32) -> (i32, i32) {
    %c0_i32 = arith.constant 0 : i32
    %c0_i32_0 = arith.constant 0 : i32
    %c0_i32_1 = arith.constant 0 : i32
    return %c0_i32, %c0_i32_0 : i32, i32
  }
  func.func @transform_6(%arg0: i32) -> (i32, i32) {
    %c0_i32 = arith.constant 0 : i32
    %c0_i32_0 = arith.constant 0 : i32
    %c0_i32_1 = arith.constant 0 : i32
    return %c0_i32, %c0_i32_0 : i32, i32
  }
  func.func @transform_7(%arg0: i32) -> (i32, i32) {
    %c0_i32 = arith.constant 0 : i32
    %c0_i32_0 = arith.constant 0 : i32
    %c0_i32_1 = arith.constant 0 : i32
    return %c0_i32, %c0_i32_0 : i32, i32
  }
  func.func @transform_8(%arg0: i32) -> (i32, i32) {
    %c0_i32 = arith.constant 0 : i32
    %c0_i32_0 = arith.constant 0 : i32
    %c0_i32_1 = arith.constant 0 : i32
    return %c0_i32, %c0_i32_0 : i32, i32
  }
  func.func @transform_9(%arg0: i32) -> (i32, i32) {
    %c0_i32 = arith.constant 0 : i32
    %c0_i32_0 = arith.constant 0 : i32
    %c0_i32_1 = arith.constant 0 : i32
    return %c0_i32, %c0_i32_0 : i32, i32
  }
  func.func @transform_10(%arg0: i32) -> (i32, i32) {
    %c0_i32 = arith.constant 0 : i32
    %c0_i32_0 = arith.constant 0 : i32
    %c0_i32_1 = arith.constant 0 : i32
    return %c0_i32, %c0_i32_0 : i32, i32
  }
  func.func @transform_11(%arg0: i32) -> (i32, i32) {
    %c0_i32 = arith.constant 0 : i32
    %c0_i32_0 = arith.constant 0 : i32
    %c0_i32_1 = arith.constant 0 : i32
    return %c0_i32, %c0_i32_0 : i32, i32
  }
  func.func @transform_12(%arg0: i32) -> (i32, i32) {
    %c0_i32 = arith.constant 0 : i32
    %c0_i32_0 = arith.constant 0 : i32
    %c0_i32_1 = arith.constant 0 : i32
    return %c0_i32, %c0_i32_0 : i32, i32
  }
  func.func @transform_13(%arg0: i32) -> (i32, i32) {
    %c0_i32 = arith.constant 0 : i32
    %c0_i32_0 = arith.constant 0 : i32
    return %arg0, %c0_i32 : i32, i32
  }
}

</mosaic_0001>

<bundles_post_ra>
// kernel: tile.13
= control target key start
LH: loop header
LB: loop body
LE: loop exit
PB: predicated region body
PF: predicated region fallthrough
CT: control target
= control target key end

     0   :  { %s40_s0 = inlined_call_operand.vmem [shape: f32[6], index: 0, kind: input, shape index: {}]   ;;  %s41_s1 = inlined_call_operand.vmem [shape: f32[28,6], index: 1, kind: output, shape index: {}]  }
   0x1   :  { %v4_v0 = vld [vmem:[%s40_s0] ss:$0 sm:$0xff] }
   0x2   :  { %5 = vst [vmem:[%s41_s1] sm:$0xff] %v4_v0  ;;  %12 = vst [vmem:[%s41_s1 + $0x8] sm:$0xff] %v4_v0 }
   0x3   :  { %13 = vst [vmem:[%s41_s1 + $0x10] sm:$0xff] %v4_v0  ;;  %14 = vst [vmem:[%s41_s1 + $0x18] sm:$0xff] %v4_v0 }

// kernel: tile.14
= control target key start
LH: loop header
LB: loop body
LE: loop exit
PB: predicated region body
PF: predicated region fallthrough
CT: control target
= control target key end

     0   :  { %vm9_vm0 = vcmask 15360   ;;  %s247_s12 = smov 126   ;;  %s248_s13 = smov 114   ;;  %vm3_vm1 = vcmask 48128   ;;  %vm13_vm2 = vcmask 31744   ;;  %vm16_vm3 = vcmask 1048560   ;;  %s377_s0 = inlined_call_operand.vmem [shape: f32[28,6], index: 0, kind: input, shape index: {}]   ;;  %s378_s1 = inlined_call_operand.vmem [shape: f32[1,168], index: 1, kind: output, shape index: {}]  }
   0x1   :  { %v191_v0 = vld [vmem:[%s377_s0 + $0x15] sm:$0x1]   ;;  %v194_v3 = vld [vmem:[%s377_s0 + $0x13] sm:$0x1]   ;;  %v193_v4 = vld [vmem:[%s377_s0 + $0x14] sm:$0x1]  }
   0x2   :  { %v192_v1 = vld [vmem:[%s377_s0 + $0x15] sm:$0x1]   ;;  %26 = vrot.lane.b32.xlu1 %v194_v3, %s248_s13  ;;  %v195_v5 = vld [vmem:[%s377_s0 + $0x12] sm:$0x1]   ;;  %s249_s18 = smov 120   ;;  %s250_s19 = smov 108  }
   0x3   :  { %v10_v2 = vsel %vm9_vm0, %v192_v1, %v191_v0  ;;  %v196_v6 = vld [vmem:[%s377_s0 + $0x11] sm:$0x1]   ;;  %v197_v7 = vld [vmem:[%s377_s0 + $0x10] sm:$0x1]   ;;  %s251_s24 = smov 102   ;;  %s252_s25 = smov 96  }
   0x4   :  { %11 = vrot.lane.b32.xlu0 %v10_v2, %s247_s12  ;;  %v198_v8 = vld [vmem:[%s377_s0 + $0xf] sm:$0x1]   ;;  %v199_v9 = vld [vmem:[%s377_s0 + $0xe] sm:$0x1]   ;;  %s253_s30 = smov 90   ;;  %s254_s2 = smov 84  }
   0x5   :  { %v2_v10 = vld [vmem:[%s377_s0] sm:$0x1]   ;;  %v200_v11 = vld [vmem:[%s377_s0 + $0xd] sm:$0x1]   ;;  %v201_v12 = vld [vmem:[%s377_s0 + $0xc] sm:$0x1]  }
   0x6   :  { %32 = vrot.lane.b32.xlu1 %v195_v5, %s250_s19  ;;  %4 = vst.msk [vmem:[#allocation0] sm:$0x1] %vm3_vm1, %v2_v10   ;;  %s255_s9 = smov 78   ;;  %s256_s10 = smov 72   ;;  %v202_v13 = vld [vmem:[%s377_s0 + $0xb] sm:$0x1]  }
   0x7   :  { %v203_v14 = vld [vmem:[%s377_s0 + $0xa] sm:$0x1]   ;;  %s257_s15 = smov 66   ;;  %s258_s16 = smov 60   ;;  %v204_v15 = vld [vmem:[%s377_s0 + $0x9] sm:$0x1]  }
   0x8   :  { %20 = vrot.lane.b32.xlu0 %v193_v4, %s249_s18  ;;  %v205_v16 = vld [vmem:[%s377_s0 + $0x8] sm:$0x1]   ;;  %s259_s21 = smov 54   ;;  %s260_s22 = smov 48   ;;  %v206_v17 = vld [vmem:[%s377_s0 + $0x7] sm:$0x1]  }
   0x9   :  { %v207_v18 = vld [vmem:[%s377_s0 + $0x6] sm:$0x1]   ;;  %s261_s27 = smov 42   ;;  %s262_s28 = smov 36   ;;  %v208_v19 = vld [vmem:[%s377_s0 + $0x1b] sm:$0x1]  }
   0xa   :  { %44 = vrot.lane.b32.xlu1 %v197_v7, %s252_s25  ;;  %v209_v20 = vld [vmem:[%s377_s0 + $0x5] sm:$0x1]   ;;  %s263_s4 = smov 34   ;;  %s264_s5 = smov 30   ;;  %v210_v21 = vld [vmem:[%s377_s0 + $0x1a] sm:$0x1]  }
   0xb   :  { %v211_v22 = vld [vmem:[%s377_s0 + $0x4] sm:$0x1]   ;;  %s266_s11 = smov 24   ;;  %v212_v23 = vld [vmem:[%s377_s0 + $0x19] sm:$0x1]   ;;  %s268_s17 = smov 18  }
   0xc   :  { %38 = vrot.lane.b32.xlu0 %v196_v6, %s251_s24  ;;  %v213_v24 = vld [vmem:[%s377_s0 + $0x3] sm:$0x1]   ;;  %v214_v25 = vld [vmem:[%s377_s0 + $0x18] sm:$0x1]   ;;  %v215_v26 = vld [vmem:[%s377_s0 + $0x2] sm:$0x1]  }
   0xd   :  { %s270_s23 = smov 12   ;;  %v216_v27 = vld [vmem:[%s377_s0 + $0x17] sm:$0x1]   ;;  %v217_v28 = vld [vmem:[%s377_s0 + $0x1] sm:$0x1]   ;;  %s272_s29 = smov 6  }
   0xe   :  { %56 = vrot.lane.b32.xlu1 %v199_v9, %s254_s2  ;;  %v218_v29 = vld [vmem:[%s377_s0 + $0x16] sm:$0x1]   ;;  %s273_s0 = smov 4   ;;  %vm22_vm4 = vcmask 1032128   ;;  %vm28_vm5 = vcmask 982928   ;;  %vm34_vm6 = vcmask 933728  }
   0xf   :  { %vm40_vm7 = vcmask 884528   ;;  %vm46_vm8 = vcmask 835328   ;;  %vm52_vm9 = vcmask 786128   ;;  %vm58_vm10 = vcmask 736928  }
  0x10   :  { %50 = vrot.lane.b32.xlu0 %v198_v8, %s253_s30  ;;  %vm64_vm11 = vcmask 687728   ;;  %vm70_vm12 = vcmask 638528   ;;  %vm76_vm13 = vcmask 589328   ;;  %vm82_vm14 = vcmask 540128  }
  0x11   :  { %vm88_vm15 = vcmask 490928   ;;  %vm94_vm0 = vcmask 441728   ;;  %vm100_vm1 = vcmask 392528  }
  0x12   :  { %68 = vrot.lane.b32.xlu1 %v201_v12, %s256_s10  ;;  %s265_s10 = smov 28  }
  0x14   :  { %62 = vrot.lane.b32.xlu0 %v200_v11, %s255_s9 }
  0x16   :  { %80 = vrot.lane.b32.xlu1 %v203_v14, %s258_s16  ;;  %s267_s16 = smov 22  }
  0x18   :  { %74 = vrot.lane.b32.xlu0 %v202_v13, %s257_s15 }
  0x1a   :  { %92 = vrot.lane.b32.xlu1 %v205_v16, %s260_s22  ;;  %s269_s22 = smov 16  }
  0x1c   :  { %86 = vrot.lane.b32.xlu0 %v204_v15, %s259_s21 }
  0x1e   :  { %104 = vrot.lane.b32.xlu1 %v207_v18, %s262_s28  ;;  %s271_s28 = smov 10  }
  0x20   :  { %98 = vrot.lane.b32.xlu0 %v206_v17, %s261_s27 }
  0x22   :  { %117 = vrot.lane.b32.xlu1 %v209_v20, %s264_s5 }
  0x24   :  { %110 = vrot.lane.b32.xlu0 %v208_v19, %s263_s4 }
  0x26   :  { %130 = vrot.lane.b32.xlu1 %v211_v22, %s266_s11 }
  0x28   :  { %123 = vrot.lane.b32.xlu0 %v210_v21, %s265_s10 }
  0x2a   :  { %143 = vrot.lane.b32.xlu1 %v213_v24, %s268_s17 }
  0x2c   :  { %136 = vrot.lane.b32.xlu0 %v212_v23, %s267_s16 }
  0x2e   :  { %156 = vrot.lane.b32.xlu1 %v215_v26, %s270_s23 }
  0x30   :  { %149 = vrot.lane.b32.xlu0 %v214_v25, %s269_s22 }
  0x32   :  { %169 = vrot.lane.b32.xlu1 %v217_v28, %s272_s29 }
  0x34   :  { %162 = vrot.lane.b32.xlu0 %v216_v27, %s271_s28 }
  0x38   :  { %175 = vrot.lane.b32.xlu0 %v218_v29, %s273_s0 }
  0x74   :  { %v27_v31 = vpop.permute.xlu1 %26  }
  0x76   :  { %v12_v30 = vpop.permute.xlu0 %11  }
  0x77   :  { %15 = vst.msk [vmem:[#allocation0 + $0x8] sm:$0x1] %vm13_vm2, %v12_v30   ;;  %vm106_vm2 = vcmask 343328  }
  0x78   :  { %17 = vst.msk [vmem:[#allocation0] sm:$0x1] %vm16_vm3, %v12_v30   ;;  %v33_v33 = vpop.permute.xlu1 %32   ;;  %vm112_vm3 = vcmask 326928  }
  0x7a   :  { %v21_v32 = vpop.permute.xlu0 %20  }
  0x7b   :  { %23 = vst.msk [vmem:[#allocation0] sm:$0x1] %vm22_vm4, %v21_v32   ;;  %vm119_vm4 = vcmask 294128  }
  0x7c   :  { %29 = vst.msk [vmem:[#allocation0] sm:$0x1] %vm28_vm5, %v27_v31   ;;  %v45_v35 = vpop.permute.xlu1 %44   ;;  %vm125_vm5 = vcmask 277728  }
  0x7d   :  { %35 = vst.msk [vmem:[#allocation0] sm:$0x1] %vm34_vm6, %v33_v33   ;;  %vm132_vm6 = vcmask 244928  }
  0x7e   :  { %v39_v34 = vpop.permute.xlu0 %38  }
  0x7f   :  { %41 = vst.msk [vmem:[#allocation0] sm:$0x1] %vm40_vm7, %v39_v34   ;;  %vm138_vm7 = vcmask 228528  }
  0x80   :  { %47 = vst.msk [vmem:[#allocation0] sm:$0x1] %vm46_vm8, %v45_v35   ;;  %v57_v37 = vpop.permute.xlu1 %56   ;;  %vm145_vm8 = vcmask 195728  }
  0x82   :  { %v51_v36 = vpop.permute.xlu0 %50  }
  0x83   :  { %53 = vst.msk [vmem:[#allocation0] sm:$0x1] %vm52_vm9, %v51_v36   ;;  %vm151_vm9 = vcmask 179328  }
  0x84   :  { %59 = vst.msk [vmem:[#allocation0] sm:$0x1] %vm58_vm10, %v57_v37   ;;  %v69_v39 = vpop.permute.xlu1 %68   ;;  %vm158_vm10 = vcmask 146528  }
  0x86   :  { %v63_v38 = vpop.permute.xlu0 %62  }
  0x87   :  { %65 = vst.msk [vmem:[#allocation0] sm:$0x1] %vm64_vm11, %v63_v38   ;;  %vm164_vm11 = vcmask 130128  }
  0x88   :  { %71 = vst.msk [vmem:[#allocation0] sm:$0x1] %vm70_vm12, %v69_v39   ;;  %v81_v41 = vpop.permute.xlu1 %80   ;;  %vm171_vm12 = vcmask 97328  }
  0x8a   :  { %v75_v40 = vpop.permute.xlu0 %74  }
  0x8b   :  { %77 = vst.msk [vmem:[#allocation0] sm:$0x1] %vm76_vm13, %v75_v40   ;;  %vm177_vm13 = vcmask 80928  }
  0x8c   :  { %83 = vst.msk [vmem:[#allocation0] sm:$0x1] %vm82_vm14, %v81_v41   ;;  %v93_v43 = vpop.permute.xlu1 %92  }
  0x8e   :  { %v87_v42 = vpop.permute.xlu0 %86  }
  0x8f   :  { %89 = vst.msk [vmem:[#allocation0] sm:$0x1] %vm88_vm15, %v87_v42  }
  0x90   :  { %95 = vst.msk [vmem:[#allocation0] sm:$0x1] %vm94_vm0, %v93_v43   ;;  %v105_v45 = vpop.permute.xlu1 %104  }
  0x92   :  { %v99_v44 = vpop.permute.xlu0 %98  }
  0x93   :  { %101 = vst.msk [vmem:[#allocation0] sm:$0x1] %vm100_vm1, %v99_v44  }
  0x94   :  { %107 = vst.msk [vmem:[#allocation0] sm:$0x1] %vm106_vm2, %v105_v45   ;;  %v118_v47 = vpop.permute.xlu1 %117  }
  0x95   :  { %120 = vst.msk [vmem:[#allocation0] sm:$0x1] %vm119_vm4, %v118_v47  }
  0x96   :  { %v111_v46 = vpop.permute.xlu0 %110  }
  0x97   :  { %114 = vst.msk [vmem:[#allocation0 + $0x8] sm:$0x1] %vm112_vm3, %v111_v46  }
  0x98   :  { %v131_v49 = vpop.permute.xlu1 %130  }
  0x99   :  { %133 = vst.msk [vmem:[#allocation0] sm:$0x1] %vm132_vm6, %v131_v49  }
  0x9a   :  { %v124_v48 = vpop.permute.xlu0 %123  }
  0x9b   :  { %127 = vst.msk [vmem:[#allocation0 + $0x8] sm:$0x1] %vm125_vm5, %v124_v48  }
  0x9c   :  { %v144_v51 = vpop.permute.xlu1 %143  }
  0x9d   :  { %146 = vst.msk [vmem:[#allocation0] sm:$0x1] %vm145_vm8, %v144_v51  }
  0x9e   :  { %v137_v50 = vpop.permute.xlu0 %136  }
  0x9f   :  { %140 = vst.msk [vmem:[#allocation0 + $0x8] sm:$0x1] %vm138_vm7, %v137_v50  }
  0xa0   :  { %v157_v53 = vpop.permute.xlu1 %156  }
  0xa1   :  { %159 = vst.msk [vmem:[#allocation0] sm:$0x1] %vm158_vm10, %v157_v53  }
  0xa2   :  { %v150_v52 = vpop.permute.xlu0 %149  }
  0xa3   :  { %153 = vst.msk [vmem:[#allocation0 + $0x8] sm:$0x1] %vm151_vm9, %v150_v52  }
  0xa4   :  { %v170_v55 = vpop.permute.xlu1 %169  }
  0xa5   :  { %172 = vst.msk [vmem:[#allocation0] sm:$0x1] %vm171_vm12, %v170_v55  }
  0xa6   :  { %v163_v54 = vpop.permute.xlu0 %162  }
  0xa7   :  { %166 = vst.msk [vmem:[#allocation0 + $0x8] sm:$0x1] %vm164_vm11, %v163_v54  }
  0xaa   :  { %v176_v56 = vpop.permute.xlu0 %175  }
  0xab   :  { %179 = vst.msk [vmem:[#allocation0 + $0x8] sm:$0x1] %vm177_vm13, %v176_v56  }
  0xac   :  { %v183_v57 = vld [vmem:[#allocation0] sm:$0x1] }
  0xad   :  { %185 = vst [vmem:[%s378_s1] sm:$0x1] %v183_v57 }
  0xb2   :  { %v187_v58 = vld [vmem:[#allocation0 + $0x8] sm:$0x1] }
  0xb3   :  { %219 = vst [vmem:[%s378_s1 + $0x1] sm:$0x1] %v187_v58 }

// kernel: tile.18
= control target key start
LH: loop header
LB: loop body
LE: loop exit
PB: predicated region body
PF: predicated region fallthrough
CT: control target
= control target key end

     0   :  { %s28_s0 = inlined_call_operand.vmem [shape: f32[16], index: 0, kind: input, shape index: {}]   ;;  %s29_s1 = inlined_call_operand.vmem [shape: f32[10,16], index: 1, kind: output, shape index: {}]  }
   0x1   :  { %v4_v0 = vld [vmem:[%s28_s0] ss:$0 sm:$0xff] }
   0x2   :  { %5 = vst [vmem:[%s29_s1] sm:$0xff] %v4_v0  ;;  %8 = vst [vmem:[%s29_s1 + $0x8] sm:$0xff] %v4_v0 }

// kernel: tile.19
= control target key start
LH: loop header
LB: loop body
LE: loop exit
PB: predicated region body
PF: predicated region fallthrough
CT: control target
= control target key end

     0   :  { %s75_s10 = smov 112   ;;  %s76_s11 = smov 80   ;;  %vm4_vm0 = vcmask 130048   ;;  %vm10_vm1 = vcmask 1048448   ;;  %vm16_vm2 = vcmask 917248   ;;  %vm22_vm3 = vcmask 786048   ;;  %s122_s0 = inlined_call_operand.vmem [shape: f32[10,16], index: 0, kind: input, shape index: {}]   ;;  %s123_s1 = inlined_call_operand.vmem [shape: f32[1,160], index: 1, kind: output, shape index: {}]  }
   0x1   :  { %v60_v0 = vld [vmem:[%s122_s0 + $0x7] sm:$0x1]   ;;  %v62_v1 = vld [vmem:[%s122_s0 + $0x5] sm:$0x1]   ;;  %v61_v2 = vld [vmem:[%s122_s0 + $0x6] sm:$0x1]  }
   0x2   :  { %8 = vrot.lane.b32.xlu0 %v60_v0, %s75_s10  ;;  %20 = vrot.lane.b32.xlu1 %v62_v1, %s76_s11  ;;  %v63_v3 = vld [vmem:[%s122_s0 + $0x4] sm:$0x1]   ;;  %s2_s16 = smov 3  ;;  %s77_s17 = smov 96   ;;  %v64_v5 = vld [vmem:[%s122_s0 + $0x3] sm:$0x1]  }
   0x3   :  { %s78_s18 = smov 64   ;;  %v3_v4 = vld [vmem:[%s122_s0] ss:$8 sm:%s2_s16]   ;;  %v65_v6 = vld [vmem:[%s122_s0 + $0x2] sm:$0x1]   ;;  %s43_s25 = smov 3 }
   0x4   :  { %5 = vst.msk [vmem:[#allocation0] ss:$8 sm:$0x3] %vm4_vm0, %v3_v4   ;;  %s79_s26 = smov 48   ;;  %s80_s27 = smov 32   ;;  %vm28_vm4 = vcmask 654848  }
   0x5   :  { %v66_v7 = vld [vmem:[%s122_s0 + $0x1] ss:$8 sm:%s43_s25]   ;;  %s81_s0 = smov 16   ;;  %vm34_vm5 = vcmask 523648   ;;  %vm40_vm6 = vcmask 392448   ;;  %vm47_vm7 = vcmask 261248  }
   0x6   :  { %14 = vrot.lane.b32.xlu0 %v61_v2, %s77_s17  ;;  %26 = vrot.lane.b32.xlu1 %v63_v3, %s78_s18 }
   0xa   :  { %32 = vrot.lane.b32.xlu0 %v64_v5, %s79_s26  ;;  %38 = vrot.lane.b32.xlu1 %v65_v6, %s80_s27 }
   0xe   :  { %45 = vrot.lane.b32.xlu0 %v66_v7, %s81_s0 }
  0x74   :  { %v9_v8 = vpop.permute.xlu0 %8   ;;  %v21_v9 = vpop.permute.xlu1 %20  }
  0x75   :  { %11 = vst.msk [vmem:[#allocation0] sm:$0x1] %vm10_vm1, %v9_v8  }
  0x78   :  { %v15_v10 = vpop.permute.xlu0 %14   ;;  %v27_v11 = vpop.permute.xlu1 %26  }
  0x79   :  { %17 = vst.msk [vmem:[#allocation0] sm:$0x1] %vm16_vm2, %v15_v10  }
  0x7a   :  { %23 = vst.msk [vmem:[#allocation0] sm:$0x1] %vm22_vm3, %v21_v9  }
  0x7b   :  { %29 = vst.msk [vmem:[#allocation0] sm:$0x1] %vm28_vm4, %v27_v11  }
  0x7c   :  { %v33_v12 = vpop.permute.xlu0 %32   ;;  %v39_v13 = vpop.permute.xlu1 %38  }
  0x7d   :  { %35 = vst.msk [vmem:[#allocation0] sm:$0x1] %vm34_vm5, %v33_v12  }
  0x7e   :  { %41 = vst.msk [vmem:[#allocation0] sm:$0x1] %vm40_vm6, %v39_v13  }
  0x80   :  { %v46_v14 = vpop.permute.xlu0 %45  }
  0x81   :  { %48 = vst.msk [vmem:[#allocation0] ss:$8 sm:$0x3] %vm47_vm7, %v46_v14  }
  0x88   :  { %v52_v15 = vld [vmem:[#allocation0] sm:$0x1]  ;;  %v56_v16 = vld [vmem:[#allocation0 + $0x8] sm:$0x1] }
  0x89   :  { %54 = vst [vmem:[%s123_s1] sm:$0x1] %v52_v15  ;;  %67 = vst [vmem:[%s123_s1 + $0x1] sm:$0x1] %v56_v16 }

// kernel: lenet_forward.1
= control target key start
LH: loop header
LB: loop body
LE: loop exit
PB: predicated region body
PF: predicated region fallthrough
CT: control target
= control target key end

     0   :  { %vm353_vm0 = vcmask 261120   ;;  %v5665_v21 = vmov 0   ;;  %vm824_vm1 = vcmask 1043456   ;;  %vm775_vm2 = vcmask 326656   ;;  %s5649_s1 = inlined_call_operand.vmem [shape: bf16[160,168], index: 1, kind: input, shape index: {}]   ;;  %s5650_s0 = inlined_call_operand.vmem [shape: bf16[256,160], index: 0, kind: input, shape index: {}]   ;;  %s5651_s5 = inlined_call_operand.vmem [shape: bf16[168,128], index: 5, kind: input, shape index: {}]   ;;  %s5652_s2 = inlined_call_operand.vmem [shape: f32[1,168], index: 2, kind: input, shape index: {}]   ;;  %s5653_s3 = inlined_call_operand.vmem [shape: bf16[640,160], index: 3, kind: input, shape index: {}]   ;;  %s5654_s6 = inlined_call_operand.vmem [shape: bf16[160,128], index: 6, kind: input, shape index: {}]   ;;  %s5655_s4 = inlined_call_operand.vmem [shape: f32[1,160], index: 4, kind: input, shape index: {}]   ;;  %s5656_s7 = inlined_call_operand.vmem [shape: bf16[640,128], index: 7, kind: input, shape index: {}]   ;;  %s5657_s9 = inlined_call_operand.vmem [shape: bf16[128,128], index: 9, kind: input, shape index: {}]   ;;  %s5658_s11 = inlined_call_operand.vmem [shape: bf16[128,128], index: 11, kind: input, shape index: {}]   ;;  %s5659_s8 = inlined_call_operand.vmem [shape: f32[1,128], index: 8, kind: input, shape index: {}]   ;;  %s5660_s10 = inlined_call_operand.vmem [shape: f32[1,128], index: 10, kind: input, shape index: {}]   ;;  %s5661_s12 = inlined_call_operand.vmem [shape: f32[1,128], index: 12, kind: input, shape index: {}]   ;;  %s5662_s13 = inlined_call_operand.vmem [shape: f32[8,128], index: 13, kind: output, shape index: {}]  }
   0x1   :  { %v3670_v0 = vld [vmem:[%s5649_s1 + $0x4] ss:$8 sps:$4 sm:$0xff]   ;;  %v3672_v1 = vld [vmem:[%s5649_s1] ss:$8 sps:$4 sm:$0xff]   ;;  %v3673_v2 = vld [vmem:[%s5649_s1 + $0x14] ss:$8 sps:$4 sm:$0xff]   ;;  %828 = vmatprep.subr.bf16.mxu1 %v5665_v21 }
   0x2   :  { %402 = vmatprep.subr.bf16.mxu0 %v3670_v0  ;;  %v3675_v3 = vld [vmem:[%s5649_s1 + $0x10] ss:$8 sps:$4 sm:$0xff]   ;;  %v3676_v4 = vld [vmem:[%s5649_s1 + $0x24] ss:$8 sps:$4 sm:$0xff]   ;;  %v3678_v5 = vld [vmem:[%s5649_s1 + $0x20] ss:$8 sps:$4 sm:$0xff]  }
   0x3   :  { %403 = vmatpush1.bf16.msra.mxu0 %v3672_v1  ;;  %v3679_v6 = vld [vmem:[%s5649_s1 + $0x34] ss:$8 sps:$4 sm:$0xff]   ;;  %v3681_v7 = vld [vmem:[%s5649_s1 + $0x30] ss:$8 sps:$4 sm:$0xff]   ;;  %v3682_v8 = vld [vmem:[%s5649_s1 + $0x44] ss:$8 sps:$4 sm:$0xff]   ;;  %v99_v1 = vlaneseq }
   0x4   :  { %404 = vmatprep.subr.bf16.mxu0 %v3673_v2  ;;  %v3702_v9 = vld [vmem:[%s5650_s0 + $0x4] ss:$8 sps:$4 sm:$0xff]   ;;  %v3684_v10 = vld [vmem:[%s5649_s1 + $0x40] ss:$8 sps:$4 sm:$0xff]   ;;  %v3685_v11 = vld [vmem:[%s5649_s1 + $0x54] ss:$8 sps:$4 sm:$0xff]  }
   0x5   :  { %3240 = vmatprep.mubr.msk.bf16.mxu0 %vm353_vm0, %v3702_v9  ;;  %v3687_v12 = vld [vmem:[%s5649_s1 + $0x50] ss:$8 sps:$4 sm:$0xff]   ;;  %v3688_v13 = vld [vmem:[%s5649_s1 + $0x64] ss:$8 sps:$4 sm:$0xff]   ;;  %v3690_v14 = vld [vmem:[%s5649_s1 + $0x60] ss:$8 sps:$4 sm:$0xff]  }
   0x6   :  { %v3691_v15 = vld [vmem:[%s5649_s1 + $0x74] ss:$8 sps:$4 sm:$0xff]   ;;  %v3693_v16 = vld [vmem:[%s5649_s1 + $0x70] ss:$8 sps:$4 sm:$0xff]   ;;  %v3694_v17 = vld [vmem:[%s5649_s1 + $0x84] ss:$8 sps:$4 sm:$0xff]  }
   0x7   :  { %405 = vmatpush1.bf16.msra.mxu0 %v3675_v3  ;;  %v3696_v18 = vld [vmem:[%s5649_s1 + $0x80] ss:$8 sps:$4 sm:$0xff]   ;;  %v3697_v19 = vld [vmem:[%s5649_s1 + $0x94] ss:$8 sps:$4 sm:$0xff]   ;;  %v3699_v20 = vld [vmem:[%s5649_s1 + $0x90] ss:$8 sps:$4 sm:$0xff]  }
   0x8   :  { %406 = vmatprep.subr.bf16.mxu0 %v3676_v4  ;;  %v3748_v22 = vld [vmem:[%s5651_s5] sm:$0xff]   ;;  %v3749_v23 = vld [vmem:[%s5651_s5 + $0x8] sm:$0xff]   ;;  %v3703_v25 = vld [vmem:[%s5650_s0 + $0x14] ss:$8 sps:$4 sm:$0xff]   ;;  %v4431_v2 = vshrl.u32 %v99_v1, 7  ;;  %vm4143_vm7 = vmmov 0  }
   0x9   :  { %829 = vmatpush1.bf16.msra.mxu1 %v3748_v22  ;;  %v3700_v24 = vld [vmem:[%s5650_s0] ss:$8 sps:$4 sm:$0xff]   ;;  %v3750_v26 = vld [vmem:[%s5651_s5 + $0x10] sm:$0xff]   ;;  %v3751_v27 = vld [vmem:[%s5651_s5 + $0x18] sm:$0xff]  }
   0xa   :  { %830 = vmatprep.subr.bf16.mxu1 %v5665_v21  ;;  %v3705_v28 = vld [vmem:[%s5650_s0 + $0x10] ss:$8 sps:$4 sm:$0xff]   ;;  %v3706_v29 = vld [vmem:[%s5650_s0 + $0x24] ss:$8 sps:$4 sm:$0xff]   ;;  %v3708_v32 = vld [vmem:[%s5650_s0 + $0x20] ss:$8 sps:$4 sm:$0xff]  }
   0xb   :  { %407 = vmatpush1.bf16.msra.mxu0 %v3678_v5  ;;  %v3752_v30 = vld [vmem:[%s5651_s5 + $0x20] sm:$0xff]   ;;  %v3753_v31 = vld [vmem:[%s5651_s5 + $0x28] sm:$0xff]   ;;  %v3709_v33 = vld [vmem:[%s5650_s0 + $0x34] ss:$8 sps:$4 sm:$0xff]   ;;  %v5664_v3 = vsub.s32 0, %v4431_v2  ;;  %v5663_v5 = vsub.s32 1, %v4431_v2 }
   0xc   :  { %408 = vmatprep.subr.bf16.mxu0 %v3679_v6  ;;  %v3711_v34 = vld [vmem:[%s5650_s0 + $0x30] ss:$8 sps:$4 sm:$0xff]   ;;  %v3712_v35 = vld [vmem:[%s5650_s0 + $0x44] ss:$8 sps:$4 sm:$0xff]   ;;  %v3714_v36 = vld [vmem:[%s5650_s0 + $0x40] ss:$8 sps:$4 sm:$0xff]  }
   0xd   :  { %831 = vmatpush1.bf16.msra.mxu1 %v3749_v23  ;;  %v3715_v37 = vld [vmem:[%s5650_s0 + $0x54] ss:$8 sps:$4 sm:$0xff]   ;;  %v3717_v38 = vld [vmem:[%s5650_s0 + $0x50] ss:$8 sps:$4 sm:$0xff]   ;;  %v3718_v39 = vld [vmem:[%s5650_s0 + $0x64] ss:$8 sps:$4 sm:$0xff]  }
   0xe   :  { %832 = vmatprep.subr.bf16.mxu1 %v5665_v21  ;;  %v3720_v40 = vld [vmem:[%s5650_s0 + $0x60] ss:$8 sps:$4 sm:$0xff]   ;;  %v3721_v41 = vld [vmem:[%s5650_s0 + $0x74] ss:$8 sps:$4 sm:$0xff]   ;;  %v3723_v42 = vld [vmem:[%s5650_s0 + $0x70] ss:$8 sps:$4 sm:$0xff]  }
   0xf   :  { %409 = vmatpush1.bf16.msra.mxu0 %v3681_v7  ;;  %v3724_v43 = vld [vmem:[%s5650_s0 + $0x84] ss:$8 sps:$4 sm:$0xff]   ;;  %v3726_v44 = vld [vmem:[%s5650_s0 + $0x80] ss:$8 sps:$4 sm:$0xff]   ;;  %v3727_v45 = vld [vmem:[%s5650_s0 + $0x94] ss:$8 sps:$4 sm:$0xff]  }
  0x10   :  { %410 = vmatprep.subr.bf16.mxu0 %v3682_v8  ;;  %v3729_v46 = vld [vmem:[%s5650_s0 + $0x90] ss:$8 sps:$4 sm:$0xff]   ;;  %v3730_v47 = vld [vmem:[%s5650_s0 + $0xa4] ss:$8 sps:$4 sm:$0xff]   ;;  %v3732_v48 = vld [vmem:[%s5650_s0 + $0xa0] ss:$8 sps:$4 sm:$0xff]  }
  0x11   :  { %833 = vmatpush1.bf16.msra.mxu1 %v3750_v26  ;;  %v3733_v49 = vld [vmem:[%s5650_s0 + $0xb4] ss:$8 sps:$4 sm:$0xff]   ;;  %v3735_v51 = vld [vmem:[%s5650_s0 + $0xb0] ss:$8 sps:$4 sm:$0xff]   ;;  %v3736_v52 = vld [vmem:[%s5650_s0 + $0xc4] ss:$8 sps:$4 sm:$0xff]  }
  0x12   :  { %834 = vmatprep.subr.bf16.mxu1 %v5665_v21  ;;  %v3754_v50 = vld [vmem:[%s5651_s5 + $0x30] sm:$0xff]   ;;  %v3755_v53 = vld [vmem:[%s5651_s5 + $0x38] sm:$0xff]   ;;  %v3756_v54 = vld [vmem:[%s5651_s5 + $0x40] sm:$0xff]   ;;  %vm1023_vm3 = vcmp.lt.s32.totalorder %v4431_v2, 7  ;;  %vm1232_vm4 = vcmp.lt.s32.totalorder %v4431_v2, 5  ;;  %vm1199_vm5 = vcmp.lt.s32.totalorder %v4431_v2, 6 }
  0x13   :  { %411 = vmatpush1.bf16.msra.mxu0 %v3684_v10  ;;  %v3738_v55 = vld [vmem:[%s5650_s0 + $0xc0] ss:$8 sps:$4 sm:$0xff]   ;;  %v3739_v56 = vld [vmem:[%s5650_s0 + $0xd4] ss:$8 sps:$4 sm:$0xff]   ;;  %v3758_v58 = vld [vmem:[%s5651_s5 + $0x50] ss:$0 sps:$4 sm:$0xff]  }
  0x14   :  { %412 = vmatprep.subr.bf16.mxu0 %v3685_v11  ;;  %v3757_v57 = vld [vmem:[%s5651_s5 + $0x48] sm:$0xff]   ;;  %v826_v59 = vsel %vm824_vm1, %v3758_v58, 0  ;;  %v3741_v60 = vld [vmem:[%s5650_s0 + $0xd0] ss:$8 sps:$4 sm:$0xff]   ;;  %v3745_v63 = vld [vmem:[%s5650_s0 + $0xf4] ss:$8 sps:$4 sm:$0xff]  }
  0x15   :  { %835 = vmatpush1.bf16.msra.mxu1 %v3751_v27  ;;  %v3742_v61 = vld [vmem:[%s5650_s0 + $0xe4] ss:$8 sps:$4 sm:$0xff]   ;;  %v3744_v62 = vld [vmem:[%s5650_s0 + $0xe0] ss:$8 sps:$4 sm:$0xff]   ;;  %v3747_v0 = vld [vmem:[%s5650_s0 + $0xf0] ss:$8 sps:$4 sm:$0xff]  }
  0x16   :  { %836 = vmatprep.subr.bf16.mxu1 %v5665_v21  ;;  %v97_v4 = vld [vmem:[%s5652_s2] sm:$0x3]  ;;  %vm1265_vm6 = vcmp.lt.s32.totalorder %v4431_v2, 4 }
  0x17   :  { %413 = vmatpush1.bf16.msra.mxu0 %v3687_v12  ;;  %v4440_v6 = vrot.slane %v97_v4, %v5664_v3  ;;  %v4444_v7 = vrot.slane %v97_v4, %v5663_v5  ;;  %v3759_v26 = vld [vmem:[%s5653_s3] ss:$8 sps:$4 sm:$0xff]  }
  0x18   :  { %414 = vmatprep.subr.bf16.mxu0 %v3688_v13  ;;  %v3843_v3 = vld [vmem:[%s5653_s3 + $0x1c0] ss:$8 sps:$4 sm:$0xff]  }
  0x19   :  { %837 = vmatpush1.bf16.msra.mxu1 %v3752_v30  ;;  %v3764_v30 = vld [vmem:[%s5653_s3 + $0x14] ss:$8 sps:$4 sm:$0xff]  }
  0x1a   :  { %838 = vmatprep.subr.bf16.mxu1 %v5665_v21 }
  0x1b   :  { %415 = vmatpush1.bf16.msra.mxu0 %v3690_v14 }
  0x1c   :  { %416 = vmatprep.subr.bf16.mxu0 %v3691_v15 }
  0x1d   :  { %839 = vmatpush1.bf16.msra.mxu1 %v3753_v31 }
  0x1e   :  { %840 = vmatprep.subr.bf16.mxu1 %v5665_v21 }
  0x1f   :  { %417 = vmatpush1.bf16.msra.mxu0 %v3693_v16 }
  0x20   :  { %418 = vmatprep.subr.bf16.mxu0 %v3694_v17 }
  0x21   :  { %841 = vmatpush1.bf16.msra.mxu1 %v3754_v50 }
  0x22   :  { %842 = vmatprep.subr.bf16.mxu1 %v5665_v21 }
  0x23   :  { %419 = vmatpush1.bf16.msra.mxu0 %v3696_v18 }
  0x24   :  { %420 = vmatprep.subr.bf16.mxu0 %v3697_v19 }
  0x25   :  { %843 = vmatpush1.bf16.msra.mxu1 %v3755_v53  ;;  %v3773_v53 = vld [vmem:[%s5653_s3 + $0x44] ss:$8 sps:$4 sm:$0xff]  }
  0x26   :  { %844 = vmatprep.subr.bf16.mxu1 %v5665_v21 }
  0x27   :  { %421 = vmatpush1.bf16.msra.mxu0 %v3699_v20 }
  0x29   :  { %845 = vmatpush1.bf16.msra.mxu1 %v3756_v54 }
  0x2a   :  { %435 = vmatmul.mubr.bf16.vlgmr.msra.gmra.mrb[0].mxu0 %v3700_v24  ;;  %846 = vmatprep.subr.bf16.mxu1 %v5665_v21 }
  0x2b   :  { %3241 = vmatprep.mubr.msk.bf16.mxu0 %vm353_vm0, %v3703_v25 }
  0x2d   :  { %847 = vmatpush1.bf16.msra.mxu1 %v3757_v57 }
  0x2e   :  { %848 = vmatprep.subr.bf16.mxu1 %v5665_v21 }
  0x31   :  { %849 = vmatpush1.bf16.msra.mxu1 %v826_v59 }
  0x32   :  { %445 = vmatmul.mubr.bf16.gmra.mrb[4].mxu0 %v3705_v28  ;;  %2305 = vmatprep.subr.bf16.mxu1 %v5665_v21  ;;  %v3761_v28 = vld [vmem:[%s5653_s3 + $0x4] ss:$8 sps:$4 sm:$0xff]  }
  0x33   :  { %3242 = vmatprep.mubr.msk.bf16.mxu0 %vm353_vm0, %v3706_v29  ;;  %1814 = vmatprep.subr.bf16.mxu0 %v3761_v28 }
  0x34   :  { %1815 = vmatpush1.bf16.msra.mxu0 %v3759_v26 }
  0x35   :  { %1816 = vmatprep.subr.bf16.mxu0 %v3764_v30 }
  0x3a   :  { %455 = vmatmul.mubr.bf16.gmra.mrb[8].mxu0 %v3708_v32 }
  0x3b   :  { %3243 = vmatprep.mubr.msk.bf16.mxu0 %vm353_vm0, %v3709_v33 }
  0x42   :  { %465 = vmatmul.mubr.bf16.gmra.mrb[12].mxu0 %v3711_v34 }
  0x43   :  { %3244 = vmatprep.mubr.msk.bf16.mxu0 %vm353_vm0, %v3712_v35 }
  0x4a   :  { %475 = vmatmul.mubr.bf16.gmra.mrb[16].mxu0 %v3714_v36 }
  0x4b   :  { %3245 = vmatprep.mubr.msk.bf16.mxu0 %vm353_vm0, %v3715_v37  ;;  %v3762_v37 = vld [vmem:[%s5653_s3 + $0x10] ss:$8 sps:$4 sm:$0xff]  }
  0x4c   :  { %1817 = vmatpush1.bf16.msra.mxu0 %v3762_v37 }
  0x52   :  { %485 = vmatmul.mubr.bf16.gmra.mrb[20].mxu0 %v3717_v38 }
  0x53   :  { %3246 = vmatprep.mubr.msk.bf16.mxu0 %vm353_vm0, %v3718_v39 }
  0x5a   :  { %495 = vmatmul.mubr.bf16.gmra.mrb[24].mxu0 %v3720_v40  ;;  %v3767_v40 = vld [vmem:[%s5653_s3 + $0x24] ss:$8 sps:$4 sm:$0xff]  }
  0x5b   :  { %3247 = vmatprep.mubr.msk.bf16.mxu0 %vm353_vm0, %v3721_v41  ;;  %1818 = vmatprep.subr.bf16.mxu0 %v3767_v40 }
  0x62   :  { %505 = vmatmul.mubr.bf16.gmra.mrb[28].mxu0 %v3723_v42 }
  0x63   :  { %3248 = vmatprep.mubr.msk.bf16.mxu0 %vm353_vm0, %v3724_v43  ;;  %v3765_v43 = vld [vmem:[%s5653_s3 + $0x20] ss:$8 sps:$4 sm:$0xff]  }
  0x64   :  { %1819 = vmatpush1.bf16.msra.mxu0 %v3765_v43 }
  0x6a   :  { %515 = vmatmul.mubr.bf16.gmra.mrb[32].mxu0 %v3726_v44 }
  0x6b   :  { %3249 = vmatprep.mubr.msk.bf16.mxu0 %vm353_vm0, %v3727_v45  ;;  %v3770_v45 = vld [vmem:[%s5653_s3 + $0x34] ss:$8 sps:$4 sm:$0xff]  }
  0x6c   :  { %1820 = vmatprep.subr.bf16.mxu0 %v3770_v45 }
  0x72   :  { %525 = vmatmul.mubr.bf16.gmra.mrb[36].mxu0 %v3729_v46 }
  0x73   :  { %3250 = vmatprep.mubr.msk.bf16.mxu0 %vm353_vm0, %v3730_v47 }
  0x7a   :  { %535 = vmatmul.mubr.bf16.gmra.mrb[40].mxu0 %v3732_v48 }
  0x7b   :  { %3251 = vmatprep.mubr.msk.bf16.mxu0 %vm353_vm0, %v3733_v49  ;;  %v3768_v49 = vld [vmem:[%s5653_s3 + $0x30] ss:$8 sps:$4 sm:$0xff]  }
  0x7c   :  { %1821 = vmatpush1.bf16.msra.mxu0 %v3768_v49 }
  0x7d   :  { %1822 = vmatprep.subr.bf16.mxu0 %v3773_v53 }
  0x82   :  { %545 = vmatmul.mubr.bf16.gmra.mrb[44].mxu0 %v3735_v51 }
  0x83   :  { %3252 = vmatprep.mubr.msk.bf16.mxu0 %vm353_vm0, %v3736_v52 }
  0x8a   :  { %555 = vmatmul.mubr.bf16.gmra.mrb[48].mxu0 %v3738_v55 }
  0x8b   :  { %3253 = vmatprep.mubr.msk.bf16.mxu0 %vm353_vm0, %v3739_v56 }
  0x92   :  { %565 = vmatmul.mubr.bf16.gmra.mrb[52].mxu0 %v3741_v60 }
  0x93   :  { %3254 = vmatprep.mubr.msk.bf16.mxu0 %vm353_vm0, %v3742_v61  ;;  %v3771_v61 = vld [vmem:[%s5653_s3 + $0x40] ss:$8 sps:$4 sm:$0xff]  }
  0x94   :  { %1823 = vmatpush1.bf16.msra.mxu0 %v3771_v61 }
  0x9a   :  { %575 = vmatmul.mubr.bf16.gmra.mrb[56].mxu0 %v3744_v62 }
  0x9b   :  { %3255 = vmatprep.mubr.msk.bf16.mxu0 %vm353_vm0, %v3745_v63 }
  0xa2   :  { %585 = vmatmul.mubr.bf16.gmra.mrb[60].mxu0 %v3747_v0 }
  0xfd   :  { %v436_v8 = vpop.f32.mrb[0].mxu0 }
  0xfe   :  { %v437_v9 = vadd.f32 %v436_v8, %v4440_v6  ;;  %v438_v10 = vpop.f32.mrb[1].mxu0 }
  0xff   :  { %v439_v11 = vadd.f32 %v438_v10, %v4444_v7  ;;  %v440_v12 = vpop.f32.mrb[2].mxu0 }
 0x100   :  { %3945 = vtanh.f32 %v437_v9  ;;  %v441_v13 = vadd.f32 %v440_v12, %v4440_v6  ;;  %v442_v14 = vpop.f32.mrb[3].mxu0 }
 0x101   :  { %3947 = vtanh.f32 %v439_v11  ;;  %v443_v15 = vadd.f32 %v442_v14, %v4444_v7 }
 0x102   :  { %3949 = vtanh.f32 %v441_v13 }
 0x103   :  { %3951 = vtanh.f32 %v443_v15 }
 0x105   :  { %v446_v16 = vpop.f32.mrb[4].mxu0 }
 0x106   :  { %v447_v17 = vadd.f32 %v446_v16, %v4440_v6  ;;  %v448_v18 = vpop.f32.mrb[5].mxu0 }
 0x107   :  { %v449_v19 = vadd.f32 %v448_v18, %v4444_v7  ;;  %v450_v20 = vpop.f32.mrb[6].mxu0 }
 0x108   :  { %3953 = vtanh.f32 %v447_v17  ;;  %v451_v22 = vadd.f32 %v450_v20, %v4440_v6  ;;  %v452_v23 = vpop.f32.mrb[7].mxu0 }
 0x109   :  { %3955 = vtanh.f32 %v449_v19  ;;  %v453_v24 = vadd.f32 %v452_v23, %v4444_v7 }
 0x10a   :  { %v3946_v25 = vpop.eup %3945  ;;  %3957 = vtanh.f32 %v451_v22 }
 0x10b   :  { %v3948_v27 = vpop.eup %3947  ;;  %3959 = vtanh.f32 %v453_v24 }
 0x10c   :  { %v3950_v29 = vpop.eup %3949 }
 0x10d   :  { %v3952_v31 = vpop.eup %3951  ;;  %v456_v32 = vpop.f32.mrb[8].mxu0  ;;  %v659_v33 = vpack.c.bf16 %v3950_v29, %v3946_v25 }
 0x10e   :  { %v457_v34 = vadd.f32 %v456_v32, %v4440_v6  ;;  %v458_v35 = vpop.f32.mrb[9].mxu0  ;;  %v660_v36 = vpack.c.bf16 %v3952_v31, %v3948_v27 }
 0x10f   :  { %v459_v38 = vadd.f32 %v458_v35, %v4444_v7  ;;  %v460_v39 = vpop.f32.mrb[10].mxu0 }
 0x110   :  { %3961 = vtanh.f32 %v457_v34  ;;  %v461_v41 = vadd.f32 %v460_v39, %v4440_v6  ;;  %v462_v42 = vpop.f32.mrb[11].mxu0  ;;  %3267 = vmatprep.mubr.msk.bf16.mxu1 %vm775_vm2, %v660_v36 }
 0x111   :  { %3963 = vtanh.f32 %v459_v38  ;;  %v463_v44 = vadd.f32 %v462_v42, %v4444_v7  ;;  %861 = vmatmul.mubr.bf16.vlgmr.msra.gmra.mrb[0].mxu1 %v659_v33 }
 0x112   :  { %v3954_v46 = vpop.eup %3953  ;;  %3965 = vtanh.f32 %v461_v41 }
 0x113   :  { %v3956_v47 = vpop.eup %3955  ;;  %3967 = vtanh.f32 %v463_v44 }
 0x114   :  { %v3958_v48 = vpop.eup %3957 }
 0x115   :  { %v3960_v50 = vpop.eup %3959  ;;  %v466_v51 = vpop.f32.mrb[12].mxu0  ;;  %v661_v52 = vpack.c.bf16 %v3958_v48, %v3954_v46 }
 0x116   :  { %v467_v54 = vadd.f32 %v466_v51, %v4440_v6  ;;  %v468_v55 = vpop.f32.mrb[13].mxu0  ;;  %v662_v56 = vpack.c.bf16 %v3960_v50, %v3956_v47 }
 0x117   :  { %v469_v57 = vadd.f32 %v468_v55, %v4444_v7  ;;  %v470_v58 = vpop.f32.mrb[14].mxu0 }
 0x118   :  { %3969 = vtanh.f32 %v467_v54  ;;  %v471_v59 = vadd.f32 %v470_v58, %v4440_v6  ;;  %v472_v60 = vpop.f32.mrb[15].mxu0  ;;  %3268 = vmatprep.mubr.msk.bf16.mxu1 %vm775_vm2, %v662_v56 }
 0x119   :  { %3971 = vtanh.f32 %v469_v57  ;;  %v473_v62 = vadd.f32 %v472_v60, %v4444_v7  ;;  %869 = vmatmul.mubr.bf16.gmra.mrb[4].mxu1 %v661_v52 }
 0x11a   :  { %v3962_v63 = vpop.eup %3961  ;;  %3973 = vtanh.f32 %v471_v59 }
 0x11b   :  { %v3964_v0 = vpop.eup %3963  ;;  %3975 = vtanh.f32 %v473_v62 }
 0x11c   :  { %v3966_v1 = vpop.eup %3965 }
 0x11d   :  { %v3968_v4 = vpop.eup %3967  ;;  %v476_v8 = vpop.f32.mrb[16].mxu0  ;;  %v663_v9 = vpack.c.bf16 %v3966_v1, %v3962_v63 }
 0x11e   :  { %v477_v10 = vadd.f32 %v476_v8, %v4440_v6  ;;  %v478_v11 = vpop.f32.mrb[17].mxu0  ;;  %v664_v12 = vpack.c.bf16 %v3968_v4, %v3964_v0 }
 0x11f   :  { %v479_v13 = vadd.f32 %v478_v11, %v4444_v7  ;;  %v480_v14 = vpop.f32.mrb[18].mxu0 }
 0x120   :  { %3977 = vtanh.f32 %v477_v10  ;;  %v481_v15 = vadd.f32 %v480_v14, %v4440_v6  ;;  %v482_v16 = vpop.f32.mrb[19].mxu0  ;;  %3269 = vmatprep.mubr.msk.bf16.mxu1 %vm775_vm2, %v664_v12 }
 0x121   :  { %3979 = vtanh.f32 %v479_v13  ;;  %v483_v17 = vadd.f32 %v482_v16, %v4444_v7  ;;  %877 = vmatmul.mubr.bf16.gmra.mrb[8].mxu1 %v663_v9 }
 0x122   :  { %v3970_v18 = vpop.eup %3969  ;;  %3981 = vtanh.f32 %v481_v15 }
 0x123   :  { %v3972_v19 = vpop.eup %3971  ;;  %3983 = vtanh.f32 %v483_v17 }
 0x124   :  { %v3974_v20 = vpop.eup %3973 }
 0x125   :  { %v3976_v22 = vpop.eup %3975  ;;  %v486_v23 = vpop.f32.mrb[20].mxu0  ;;  %v665_v24 = vpack.c.bf16 %v3974_v20, %v3970_v18 }
 0x126   :  { %v487_v25 = vadd.f32 %v486_v23, %v4440_v6  ;;  %v488_v26 = vpop.f32.mrb[21].mxu0  ;;  %v666_v27 = vpack.c.bf16 %v3976_v22, %v3972_v19 }
 0x127   :  { %v489_v28 = vadd.f32 %v488_v26, %v4444_v7  ;;  %v490_v29 = vpop.f32.mrb[22].mxu0 }
 0x128   :  { %3985 = vtanh.f32 %v487_v25  ;;  %v491_v30 = vadd.f32 %v490_v29, %v4440_v6  ;;  %v492_v31 = vpop.f32.mrb[23].mxu0  ;;  %3270 = vmatprep.mubr.msk.bf16.mxu1 %vm775_vm2, %v666_v27 }
 0x129   :  { %3987 = vtanh.f32 %v489_v28  ;;  %v493_v32 = vadd.f32 %v492_v31, %v4444_v7  ;;  %885 = vmatmul.mubr.bf16.gmra.mrb[12].mxu1 %v665_v24 }
 0x12a   :  { %v3978_v33 = vpop.eup %3977  ;;  %3989 = vtanh.f32 %v491_v30 }
 0x12b   :  { %v3980_v34 = vpop.eup %3979  ;;  %3991 = vtanh.f32 %v493_v32 }
 0x12c   :  { %v3982_v35 = vpop.eup %3981 }
 0x12d   :  { %v3984_v36 = vpop.eup %3983  ;;  %v496_v37 = vpop.f32.mrb[24].mxu0  ;;  %v667_v38 = vpack.c.bf16 %v3982_v35, %v3978_v33 }
 0x12e   :  { %v497_v39 = vadd.f32 %v496_v37, %v4440_v6  ;;  %v498_v40 = vpop.f32.mrb[25].mxu0  ;;  %v668_v41 = vpack.c.bf16 %v3984_v36, %v3980_v34 }
 0x12f   :  { %v499_v42 = vadd.f32 %v498_v40, %v4444_v7  ;;  %v500_v43 = vpop.f32.mrb[26].mxu0 }
 0x130   :  { %3993 = vtanh.f32 %v497_v39  ;;  %v501_v44 = vadd.f32 %v500_v43, %v4440_v6  ;;  %v502_v45 = vpop.f32.mrb[27].mxu0  ;;  %3271 = vmatprep.mubr.msk.bf16.mxu1 %vm775_vm2, %v668_v41 }
 0x131   :  { %3995 = vtanh.f32 %v499_v42  ;;  %v503_v46 = vadd.f32 %v502_v45, %v4444_v7  ;;  %893 = vmatmul.mubr.bf16.gmra.mrb[16].mxu1 %v667_v38 }
 0x132   :  { %v3986_v47 = vpop.eup %3985  ;;  %3997 = vtanh.f32 %v501_v44 }
 0x133   :  { %v3988_v48 = vpop.eup %3987  ;;  %3999 = vtanh.f32 %v503_v46 }
 0x134   :  { %v3990_v49 = vpop.eup %3989 }
 0x135   :  { %v3992_v50 = vpop.eup %3991  ;;  %v506_v51 = vpop.f32.mrb[28].mxu0  ;;  %v669_v52 = vpack.c.bf16 %v3990_v49, %v3986_v47 }
 0x136   :  { %v507_v53 = vadd.f32 %v506_v51, %v4440_v6  ;;  %v508_v54 = vpop.f32.mrb[29].mxu0  ;;  %v670_v55 = vpack.c.bf16 %v3992_v50, %v3988_v48 }
 0x137   :  { %v509_v56 = vadd.f32 %v508_v54, %v4444_v7  ;;  %v510_v57 = vpop.f32.mrb[30].mxu0 }
 0x138   :  { %4001 = vtanh.f32 %v507_v53  ;;  %v511_v58 = vadd.f32 %v510_v57, %v4440_v6  ;;  %v512_v59 = vpop.f32.mrb[31].mxu0  ;;  %3272 = vmatprep.mubr.msk.bf16.mxu1 %vm775_vm2, %v670_v55 }
 0x139   :  { %4003 = vtanh.f32 %v509_v56  ;;  %v513_v60 = vadd.f32 %v512_v59, %v4444_v7  ;;  %901 = vmatmul.mubr.bf16.gmra.mrb[20].mxu1 %v669_v52 }
 0x13a   :  { %v3994_v61 = vpop.eup %3993  ;;  %4005 = vtanh.f32 %v511_v58 }
 0x13b   :  { %v3996_v62 = vpop.eup %3995  ;;  %4007 = vtanh.f32 %v513_v60 }
 0x13c   :  { %v3998_v63 = vpop.eup %3997 }
 0x13d   :  { %v4000_v0 = vpop.eup %3999  ;;  %v516_v1 = vpop.f32.mrb[32].mxu0  ;;  %v671_v4 = vpack.c.bf16 %v3998_v63, %v3994_v61 }
 0x13e   :  { %v517_v8 = vadd.f32 %v516_v1, %v4440_v6  ;;  %v518_v9 = vpop.f32.mrb[33].mxu0  ;;  %v672_v10 = vpack.c.bf16 %v4000_v0, %v3996_v62 }
 0x13f   :  { %v519_v11 = vadd.f32 %v518_v9, %v4444_v7  ;;  %v520_v12 = vpop.f32.mrb[34].mxu0 }
 0x140   :  { %4009 = vtanh.f32 %v517_v8  ;;  %v521_v13 = vadd.f32 %v520_v12, %v4440_v6  ;;  %v522_v14 = vpop.f32.mrb[35].mxu0  ;;  %3273 = vmatprep.mubr.msk.bf16.mxu1 %vm775_vm2, %v672_v10 }
 0x141   :  { %4011 = vtanh.f32 %v519_v11  ;;  %v523_v15 = vadd.f32 %v522_v14, %v4444_v7  ;;  %909 = vmatmul.mubr.bf16.gmra.mrb[24].mxu1 %v671_v4 }
 0x142   :  { %v4002_v16 = vpop.eup %4001  ;;  %4013 = vtanh.f32 %v521_v13 }
 0x143   :  { %v4004_v17 = vpop.eup %4003  ;;  %4015 = vtanh.f32 %v523_v15  ;;  %v3776_v15 = vld [vmem:[%s5653_s3 + $0x54] ss:$8 sps:$4 sm:$0xff]  }
 0x144   :  { %v4006_v18 = vpop.eup %4005  ;;  %1824 = vmatprep.subr.bf16.mxu0 %v3776_v15 }
 0x145   :  { %v4008_v19 = vpop.eup %4007  ;;  %v526_v20 = vpop.f32.mrb[36].mxu0  ;;  %v673_v22 = vpack.c.bf16 %v4006_v18, %v4002_v16 }
 0x146   :  { %v527_v23 = vadd.f32 %v526_v20, %v4440_v6  ;;  %v528_v24 = vpop.f32.mrb[37].mxu0  ;;  %v674_v25 = vpack.c.bf16 %v4008_v19, %v4004_v17  ;;  %v3774_v17 = vld [vmem:[%s5653_s3 + $0x50] ss:$8 sps:$4 sm:$0xff]  }
 0x147   :  { %v529_v26 = vadd.f32 %v528_v24, %v4444_v7  ;;  %v530_v27 = vpop.f32.mrb[38].mxu0  ;;  %1825 = vmatpush1.bf16.msra.mxu0 %v3774_v17  ;;  %v3795_v17 = vld [vmem:[%s5653_s3 + $0xc0] ss:$8 sps:$4 sm:$0xff]  }
 0x148   :  { %4017 = vtanh.f32 %v527_v23  ;;  %v531_v28 = vadd.f32 %v530_v27, %v4440_v6  ;;  %v532_v29 = vpop.f32.mrb[39].mxu0  ;;  %3274 = vmatprep.mubr.msk.bf16.mxu1 %vm775_vm2, %v674_v25 }
 0x149   :  { %4019 = vtanh.f32 %v529_v26  ;;  %v533_v30 = vadd.f32 %v532_v29, %v4444_v7  ;;  %917 = vmatmul.mubr.bf16.gmra.mrb[28].mxu1 %v673_v22  ;;  %v3779_v26 = vld [vmem:[%s5653_s3 + $0x64] ss:$8 sps:$4 sm:$0xff]   ;;  %v3777_v29 = vld [vmem:[%s5653_s3 + $0x60] ss:$8 sps:$4 sm:$0xff]  }
 0x14a   :  { %v4010_v31 = vpop.eup %4009  ;;  %4021 = vtanh.f32 %v531_v28  ;;  %1826 = vmatprep.subr.bf16.mxu0 %v3779_v26 }
 0x14b   :  { %v4012_v32 = vpop.eup %4011  ;;  %4023 = vtanh.f32 %v533_v30  ;;  %1827 = vmatpush1.bf16.msra.mxu0 %v3777_v29  ;;  %v3806_v29 = vld [vmem:[%s5653_s3 + $0xf4] ss:$8 sps:$4 sm:$0xff]  }
 0x14c   :  { %v4014_v33 = vpop.eup %4013 }
 0x14d   :  { %v4016_v34 = vpop.eup %4015  ;;  %v536_v35 = vpop.f32.mrb[40].mxu0  ;;  %v675_v36 = vpack.c.bf16 %v4014_v33, %v4010_v31 }
 0x14e   :  { %v537_v37 = vadd.f32 %v536_v35, %v4440_v6  ;;  %v538_v38 = vpop.f32.mrb[41].mxu0  ;;  %v676_v39 = vpack.c.bf16 %v4016_v34, %v4012_v32  ;;  %v3782_v34 = vld [vmem:[%s5653_s3 + $0x74] ss:$8 sps:$4 sm:$0xff]  }
 0x14f   :  { %v539_v40 = vadd.f32 %v538_v38, %v4444_v7  ;;  %v540_v41 = vpop.f32.mrb[42].mxu0  ;;  %1828 = vmatprep.subr.bf16.mxu0 %v3782_v34 }
 0x150   :  { %4025 = vtanh.f32 %v537_v37  ;;  %v541_v42 = vadd.f32 %v540_v41, %v4440_v6  ;;  %v542_v43 = vpop.f32.mrb[43].mxu0  ;;  %3275 = vmatprep.mubr.msk.bf16.mxu1 %vm775_vm2, %v676_v39 }
 0x151   :  { %4027 = vtanh.f32 %v539_v40  ;;  %v543_v44 = vadd.f32 %v542_v43, %v4444_v7  ;;  %925 = vmatmul.mubr.bf16.gmra.mrb[32].mxu1 %v675_v36  ;;  %v3780_v36 = vld [vmem:[%s5653_s3 + $0x70] ss:$8 sps:$4 sm:$0xff]  }
 0x152   :  { %v4018_v45 = vpop.eup %4017  ;;  %4029 = vtanh.f32 %v541_v42  ;;  %1829 = vmatpush1.bf16.msra.mxu0 %v3780_v36 }
 0x153   :  { %v4020_v46 = vpop.eup %4019  ;;  %4031 = vtanh.f32 %v543_v44  ;;  %v3785_v44 = vld [vmem:[%s5653_s3 + $0x84] ss:$8 sps:$4 sm:$0xff]  }
 0x154   :  { %v4022_v47 = vpop.eup %4021  ;;  %1830 = vmatprep.subr.bf16.mxu0 %v3785_v44 }
 0x155   :  { %v4024_v48 = vpop.eup %4023  ;;  %v546_v49 = vpop.f32.mrb[44].mxu0  ;;  %v677_v50 = vpack.c.bf16 %v4022_v47, %v4018_v45  ;;  %v3783_v47 = vld [vmem:[%s5653_s3 + $0x80] ss:$8 sps:$4 sm:$0xff]  }
 0x156   :  { %v547_v51 = vadd.f32 %v546_v49, %v4440_v6  ;;  %v548_v52 = vpop.f32.mrb[45].mxu0  ;;  %v678_v53 = vpack.c.bf16 %v4024_v48, %v4020_v46  ;;  %1831 = vmatpush1.bf16.msra.mxu0 %v3783_v47 }
 0x157   :  { %v549_v54 = vadd.f32 %v548_v52, %v4444_v7  ;;  %v550_v55 = vpop.f32.mrb[46].mxu0  ;;  %v3788_v52 = vld [vmem:[%s5653_s3 + $0x94] ss:$8 sps:$4 sm:$0xff]  }
 0x158   :  { %4033 = vtanh.f32 %v547_v51  ;;  %v551_v56 = vadd.f32 %v550_v55, %v4440_v6  ;;  %v552_v57 = vpop.f32.mrb[47].mxu0  ;;  %3276 = vmatprep.mubr.msk.bf16.mxu1 %vm775_vm2, %v678_v53  ;;  %1832 = vmatprep.subr.bf16.mxu0 %v3788_v52 }
 0x159   :  { %4035 = vtanh.f32 %v549_v54  ;;  %v553_v58 = vadd.f32 %v552_v57, %v4444_v7  ;;  %933 = vmatmul.mubr.bf16.gmra.mrb[36].mxu1 %v677_v50  ;;  %v3786_v54 = vld [vmem:[%s5653_s3 + $0x90] ss:$8 sps:$4 sm:$0xff]  }
 0x15a   :  { %v4026_v59 = vpop.eup %4025  ;;  %4037 = vtanh.f32 %v551_v56  ;;  %1833 = vmatpush1.bf16.msra.mxu0 %v3786_v54 }
 0x15b   :  { %v4028_v60 = vpop.eup %4027  ;;  %4039 = vtanh.f32 %v553_v58 }
 0x15c   :  { %v4030_v61 = vpop.eup %4029 }
 0x15d   :  { %v4032_v62 = vpop.eup %4031  ;;  %v556_v63 = vpop.f32.mrb[48].mxu0  ;;  %v679_v0 = vpack.c.bf16 %v4030_v61, %v4026_v59 }
 0x15e   :  { %v557_v1 = vadd.f32 %v556_v63, %v4440_v6  ;;  %v558_v4 = vpop.f32.mrb[49].mxu0  ;;  %v680_v8 = vpack.c.bf16 %v4032_v62, %v4028_v60  ;;  %v3791_v62 = vld [vmem:[%s5653_s3 + $0xa4] ss:$8 sps:$4 sm:$0xff]  }
 0x15f   :  { %v559_v9 = vadd.f32 %v558_v4, %v4444_v7  ;;  %v560_v10 = vpop.f32.mrb[50].mxu0  ;;  %1834 = vmatprep.subr.bf16.mxu0 %v3791_v62 }
 0x160   :  { %4041 = vtanh.f32 %v557_v1  ;;  %v561_v11 = vadd.f32 %v560_v10, %v4440_v6  ;;  %v562_v12 = vpop.f32.mrb[51].mxu0  ;;  %3277 = vmatprep.mubr.msk.bf16.mxu1 %vm775_vm2, %v680_v8  ;;  %v3789_v1 = vld [vmem:[%s5653_s3 + $0xa0] ss:$8 sps:$4 sm:$0xff]  }
 0x161   :  { %4043 = vtanh.f32 %v559_v9  ;;  %v563_v13 = vadd.f32 %v562_v12, %v4444_v7  ;;  %941 = vmatmul.mubr.bf16.gmra.mrb[40].mxu1 %v679_v0  ;;  %1835 = vmatpush1.bf16.msra.mxu0 %v3789_v1 }
 0x162   :  { %v4034_v14 = vpop.eup %4033  ;;  %4045 = vtanh.f32 %v561_v11  ;;  %v3794_v11 = vld [vmem:[%s5653_s3 + $0xb4] ss:$8 sps:$4 sm:$0xff]  }
 0x163   :  { %v4036_v16 = vpop.eup %4035  ;;  %4047 = vtanh.f32 %v563_v13  ;;  %1836 = vmatprep.subr.bf16.mxu0 %v3794_v11 }
 0x164   :  { %v4038_v18 = vpop.eup %4037 }
 0x165   :  { %v4040_v19 = vpop.eup %4039  ;;  %v566_v20 = vpop.f32.mrb[52].mxu0  ;;  %v681_v22 = vpack.c.bf16 %v4038_v18, %v4034_v14 }
 0x166   :  { %v567_v23 = vadd.f32 %v566_v20, %v4440_v6  ;;  %v568_v24 = vpop.f32.mrb[53].mxu0  ;;  %v682_v25 = vpack.c.bf16 %v4040_v19, %v4036_v16  ;;  %v3797_v16 = vld [vmem:[%s5653_s3 + $0xc4] ss:$8 sps:$4 sm:$0xff]   ;;  %v3800_v19 = vld [vmem:[%s5653_s3 + $0xd4] ss:$8 sps:$4 sm:$0xff]  }
 0x167   :  { %v569_v27 = vadd.f32 %v568_v24, %v4444_v7  ;;  %v570_v28 = vpop.f32.mrb[54].mxu0 }
 0x168   :  { %4049 = vtanh.f32 %v567_v23  ;;  %v571_v30 = vadd.f32 %v570_v28, %v4440_v6  ;;  %v572_v31 = vpop.f32.mrb[55].mxu0  ;;  %3278 = vmatprep.mubr.msk.bf16.mxu1 %vm775_vm2, %v682_v25  ;;  %v3801_v28 = vld [vmem:[%s5653_s3 + $0xe0] ss:$8 sps:$4 sm:$0xff]  }
 0x169   :  { %4051 = vtanh.f32 %v569_v27  ;;  %v573_v32 = vadd.f32 %v572_v31, %v4444_v7  ;;  %949 = vmatmul.mubr.bf16.gmra.mrb[44].mxu1 %v681_v22  ;;  %v3798_v22 = vld [vmem:[%s5653_s3 + $0xd0] ss:$8 sps:$4 sm:$0xff]   ;;  %v3803_v27 = vld [vmem:[%s5653_s3 + $0xe4] ss:$8 sps:$4 sm:$0xff]  }
 0x16a   :  { %v4042_v33 = vpop.eup %4041  ;;  %4053 = vtanh.f32 %v571_v30  ;;  %v3804_v30 = vld [vmem:[%s5653_s3 + $0xf0] ss:$8 sps:$4 sm:$0xff]   ;;  %v3809_v31 = vld [vmem:[%s5653_s3 + $0x104] ss:$8 sps:$4 sm:$0xff]  }
 0x16b   :  { %v4044_v35 = vpop.eup %4043  ;;  %4055 = vtanh.f32 %v573_v32 }
 0x16c   :  { %v4046_v37 = vpop.eup %4045 }
 0x16d   :  { %v4048_v38 = vpop.eup %4047  ;;  %v576_v39 = vpop.f32.mrb[56].mxu0  ;;  %v683_v40 = vpack.c.bf16 %v4046_v37, %v4042_v33 }
 0x16e   :  { %v577_v41 = vadd.f32 %v576_v39, %v4440_v6  ;;  %v578_v42 = vpop.f32.mrb[57].mxu0  ;;  %v684_v43 = vpack.c.bf16 %v4048_v38, %v4044_v35 }
 0x16f   :  { %v579_v45 = vadd.f32 %v578_v42, %v4444_v7  ;;  %v580_v46 = vpop.f32.mrb[58].mxu0 }
 0x170   :  { %4057 = vtanh.f32 %v577_v41  ;;  %v581_v48 = vadd.f32 %v580_v46, %v4440_v6  ;;  %v582_v49 = vpop.f32.mrb[59].mxu0  ;;  %3279 = vmatprep.mubr.msk.bf16.mxu1 %vm775_vm2, %v684_v43 }
 0x171   :  { %4059 = vtanh.f32 %v579_v45  ;;  %v583_v50 = vadd.f32 %v582_v49, %v4444_v7  ;;  %957 = vmatmul.mubr.bf16.gmra.mrb[48].mxu1 %v683_v40 }
 0x172   :  { %v4050_v51 = vpop.eup %4049  ;;  %4061 = vtanh.f32 %v581_v48 }
 0x173   :  { %v4052_v53 = vpop.eup %4051  ;;  %4063 = vtanh.f32 %v583_v50 }
 0x174   :  { %v4054_v55 = vpop.eup %4053 }
 0x175   :  { %v4056_v56 = vpop.eup %4055  ;;  %v586_v57 = vpop.f32.mrb[60].mxu0  ;;  %v685_v58 = vpack.c.bf16 %v4054_v55, %v4050_v51 }
 0x176   :  { %v587_v59 = vadd.f32 %v586_v57, %v4440_v6  ;;  %v588_v60 = vpop.f32.mrb[61].mxu0  ;;  %v686_v61 = vpack.c.bf16 %v4056_v56, %v4052_v53 }
 0x177   :  { %v589_v63 = vadd.f32 %v588_v60, %v4444_v7  ;;  %v590_v0 = vpop.f32.mrb[62].mxu0 }
 0x178   :  { %4065 = vtanh.f32 %v587_v59  ;;  %v591_v4 = vadd.f32 %v590_v0, %v4440_v6  ;;  %v592_v8 = vpop.f32.mrb[63].mxu0  ;;  %3280 = vmatprep.mubr.msk.bf16.mxu1 %vm775_vm2, %v686_v61  ;;  %v3792_v6 = vld [vmem:[%s5653_s3 + $0xb0] ss:$8 sps:$4 sm:$0xff]  }
 0x179   :  { %4067 = vtanh.f32 %v589_v63  ;;  %v593_v9 = vadd.f32 %v592_v8, %v4444_v7  ;;  %965 = vmatmul.mubr.bf16.gmra.mrb[52].mxu1 %v685_v58  ;;  %1837 = vmatpush1.bf16.msra.mxu0 %v3792_v6 }
 0x17a   :  { %v4058_v10 = vpop.eup %4057  ;;  %4069 = vtanh.f32 %v591_v4  ;;  %1838 = vmatprep.subr.bf16.mxu0 %v3797_v16 }
 0x17b   :  { %v4060_v12 = vpop.eup %4059  ;;  %4071 = vtanh.f32 %v593_v9 }
 0x17c   :  { %v4062_v13 = vpop.eup %4061 }
 0x17d   :  { %v4064_v14 = vpop.eup %4063  ;;  %v687_v15 = vpack.c.bf16 %v4062_v13, %v4058_v10  ;;  %1839 = vmatpush1.bf16.msra.mxu0 %v3795_v17 }
 0x17e   :  { %v688_v7 = vpack.c.bf16 %v4064_v14, %v4060_v12  ;;  %1840 = vmatprep.subr.bf16.mxu0 %v3800_v19 }
 0x180   :  { %3281 = vmatprep.mubr.msk.bf16.mxu1 %vm775_vm2, %v688_v7 }
 0x181   :  { %973 = vmatmul.mubr.bf16.gmra.mrb[56].mxu1 %v687_v15  ;;  %1841 = vmatpush1.bf16.msra.mxu0 %v3798_v22 }
 0x182   :  { %v4066_v18 = vpop.eup %4065  ;;  %1842 = vmatprep.subr.bf16.mxu0 %v3803_v27 }
 0x183   :  { %v4068_v20 = vpop.eup %4067 }
 0x184   :  { %v4070_v23 = vpop.eup %4069 }
 0x185   :  { %v4072_v24 = vpop.eup %4071  ;;  %v689_v25 = vpack.c.bf16 %v4070_v23, %v4066_v18  ;;  %1843 = vmatpush1.bf16.msra.mxu0 %v3801_v28 }
 0x186   :  { %v690_v26 = vpack.c.bf16 %v4072_v24, %v4068_v20  ;;  %1844 = vmatprep.subr.bf16.mxu0 %v3806_v29 }
 0x188   :  { %3282 = vmatprep.mubr.msk.bf16.mxu1 %vm775_vm2, %v690_v26 }
 0x189   :  { %981 = vmatmul.mubr.bf16.gmra.mrb[60].mxu1 %v689_v25  ;;  %1845 = vmatpush1.bf16.msra.mxu0 %v3804_v30 }
 0x18a   :  { %1927 = vmatprep.subr.bf16.mxu0 %v3809_v31 }
 0x1e4   :  { %v4625_v32 = vpop.f32.mrb[0].mxu1 }
 0x1e5   :  { %v864_v33 = vpop.f32.mrb[1].mxu1  ;;  %v989_v35 = vrot.slane %v4625_v32, 1 }
 0x1e6   :  { %v865_v34 = vpop.f32.mrb[2].mxu1 }
 0x1e7   :  { %v990_v36 = vrot.slane %v865_v34, 1  ;;  %v867_v37 = vpop.f32.mrb[3].mxu1 }
 0x1e9   :  { %v1054_v38 = vsel %vm1023_vm3, %v989_v35, %v990_v36 }
 0x1ea   :  { %v1056_v39 = vadd.f32 %v1054_v38, %v4625_v32 }
 0x1ec   :  { %1088 = vst [vmem:[#allocation2] sm:$0xff] %v1056_v39  ;;  %v870_v40 = vpop.f32.mrb[4].mxu1 }
 0x1ed   :  { %v991_v41 = vrot.slane %v870_v40, 1  ;;  %v872_v42 = vpop.f32.mrb[5].mxu1 }
 0x1ee   :  { %v873_v43 = vpop.f32.mrb[6].mxu1 }
 0x1ef   :  { %v1053_v44 = vsel %vm1023_vm3, %v990_v36, %v991_v41  ;;  %v992_v45 = vrot.slane %v873_v43, 1  ;;  %v875_v46 = vpop.f32.mrb[7].mxu1 }
 0x1f0   :  { %v1057_v47 = vadd.f32 %v1053_v44, %v865_v34 }
 0x1f1   :  { %v1052_v48 = vsel %vm1023_vm3, %v991_v41, %v992_v45 }
 0x1f2   :  { %1089 = vst [vmem:[#allocation2 + $0x8] sm:$0xff] %v1057_v47  ;;  %v1058_v49 = vadd.f32 %v1052_v48, %v870_v40  ;;  %v3807_v48 = vld [vmem:[%s5653_s3 + $0x100] ss:$8 sps:$4 sm:$0xff]  }
 0x1f4   :  { %1090 = vst [vmem:[#allocation2 + $0x10] sm:$0xff] %v1058_v49  ;;  %v878_v50 = vpop.f32.mrb[8].mxu1 }
 0x1f5   :  { %v993_v51 = vrot.slane %v878_v50, 1  ;;  %v880_v52 = vpop.f32.mrb[9].mxu1 }
 0x1f6   :  { %v881_v53 = vpop.f32.mrb[10].mxu1 }
 0x1f7   :  { %v1051_v54 = vsel %vm1023_vm3, %v992_v45, %v993_v51  ;;  %v994_v55 = vrot.slane %v881_v53, 1  ;;  %v883_v56 = vpop.f32.mrb[11].mxu1 }
 0x1f8   :  { %v1059_v57 = vadd.f32 %v1051_v54, %v873_v43 }
 0x1f9   :  { %v1050_v58 = vsel %vm1023_vm3, %v993_v51, %v994_v55  ;;  %v4644_v8 = vld [vmem:[#allocation2] ss:$2 sm:$0xff] }
 0x1fa   :  { %1091 = vst [vmem:[#allocation2 + $0x18] sm:$0xff] %v1059_v57  ;;  %v1060_v59 = vadd.f32 %v1050_v58, %v878_v50  ;;  %v1216_v6 = vrot.slane %v4644_v8, 3  ;;  %v5669_v14 = vrot.slane %v4644_v8, 2  ;;  %v5667_v7 = vrot.slane %v4644_v8, 4 }
 0x1fb   :  { %v1151_v33 = vrot.slane %v4644_v8, 1 }
 0x1fc   :  { %1092 = vst [vmem:[#allocation2 + $0x20] sm:$0xff] %v1060_v59  ;;  %v886_v60 = vpop.f32.mrb[12].mxu1 }
 0x1fd   :  { %v995_v61 = vrot.slane %v886_v60, 1  ;;  %v888_v62 = vpop.f32.mrb[13].mxu1 }
 0x1fe   :  { %v889_v63 = vpop.f32.mrb[14].mxu1  ;;  %v3810_v62 = vld [vmem:[%s5653_s3 + $0x110] ss:$8 sps:$4 sm:$0xff]  }
 0x1ff   :  { %v1049_v0 = vsel %vm1023_vm3, %v994_v55, %v995_v61  ;;  %v996_v1 = vrot.slane %v889_v63, 1  ;;  %v891_v4 = vpop.f32.mrb[15].mxu1 }
 0x200   :  { %v1061_v9 = vadd.f32 %v1049_v0, %v881_v53  ;;  %v3812_v53 = vld [vmem:[%s5653_s3 + $0x114] ss:$8 sps:$4 sm:$0xff]   ;;  %v3815_v0 = vld [vmem:[%s5653_s3 + $0x124] ss:$8 sps:$4 sm:$0xff]  }
 0x201   :  { %v1048_v10 = vsel %vm1023_vm3, %v995_v61, %v996_v1  ;;  %v1122_v11 = vld [vmem:[#allocation2 + $0x10] ss:$2 sm:$0xff] }
 0x202   :  { %1093 = vst [vmem:[#allocation2 + $0x28] sm:$0xff] %v1061_v9  ;;  %v1062_v12 = vadd.f32 %v1048_v10, %v886_v60  ;;  %v1217_v13 = vrot.slane %v1122_v11, 3  ;;  %v1184_v15 = vrot.slane %v1122_v11, 2  ;;  %v1250_v16 = vrot.slane %v1122_v11, 4 }
 0x203   :  { %v1152_v29 = vrot.slane %v1122_v11, 1  ;;  %v1282_v52 = vpack.c.bf16 %v1122_v11, %v4644_v8 }
 0x204   :  { %1094 = vst [vmem:[#allocation2 + $0x30] sm:$0xff] %v1062_v12  ;;  %v894_v17 = vpop.f32.mrb[16].mxu1  ;;  %v4658_v18 = vsel %vm1232_vm4, %v1216_v6, %v1217_v13  ;;  %v4664_v22 = vsel %vm1199_vm5, %v5669_v14, %v1184_v15  ;;  %v4670_v23 = vsel %vm1265_vm6, %v5667_v7, %v1250_v16 }
 0x205   :  { %v997_v19 = vrot.slane %v894_v17, 1  ;;  %v896_v20 = vpop.f32.mrb[17].mxu1  ;;  %v1181_v42 = vsel %vm1023_vm3, %v1151_v33, %v1152_v29 }
 0x206   :  { %v897_v24 = vpop.f32.mrb[18].mxu1  ;;  %v3818_v20 = vld [vmem:[%s5653_s3 + $0x134] ss:$8 sps:$4 sm:$0xff]  }
 0x207   :  { %v1047_v25 = vsel %vm1023_vm3, %v996_v1, %v997_v19  ;;  %v998_v26 = vrot.slane %v897_v24, 1  ;;  %v899_v27 = vpop.f32.mrb[19].mxu1 }
 0x208   :  { %v1063_v28 = vadd.f32 %v1047_v25, %v889_v63 }
 0x209   :  { %v1046_v30 = vsel %vm1023_vm3, %v997_v19, %v998_v26  ;;  %v4676_v31 = vld [vmem:[#allocation2 + $0x20] ss:$2 sm:$0xff] }
 0x20a   :  { %1095 = vst [vmem:[#allocation2 + $0x38] sm:$0xff] %v1063_v28  ;;  %v1064_v34 = vadd.f32 %v1046_v30, %v894_v17  ;;  %v1153_v36 = vrot.slane %v4676_v31, 1  ;;  %v1218_v37 = vrot.slane %v4676_v31, 3  ;;  %v1185_v38 = vrot.slane %v4676_v31, 2 }
 0x20b   :  { %v1251_v39 = vrot.slane %v4676_v31, 4 }
 0x20c   :  { %1096 = vst [vmem:[#allocation2 + $0x40] sm:$0xff] %v1064_v34  ;;  %v902_v40 = vpop.f32.mrb[20].mxu1  ;;  %v1180_v41 = vsel %vm1023_vm3, %v1152_v29, %v1153_v36  ;;  %v4693_v43 = vsel %vm1232_vm4, %v1217_v13, %v1218_v37  ;;  %v4697_v44 = vsel %vm1199_vm5, %v1184_v15, %v1185_v38  ;;  %v3813_v15 = vld [vmem:[%s5653_s3 + $0x120] ss:$8 sps:$4 sm:$0xff]   ;;  %v3816_v34 = vld [vmem:[%s5653_s3 + $0x130] ss:$8 sps:$4 sm:$0xff]  }
 0x20d   :  { %v999_v45 = vrot.slane %v902_v40, 1  ;;  %v904_v46 = vpop.f32.mrb[21].mxu1  ;;  %v1283_v47 = vpack.c.bf16 %v1180_v41, %v1181_v42  ;;  %v4712_v54 = vsel %vm1265_vm6, %v1250_v16, %v1251_v39 }
 0x20e   :  { %v905_v51 = vpop.f32.mrb[22].mxu1 }
 0x20f   :  { %v1045_v55 = vsel %vm1023_vm3, %v998_v26, %v999_v45  ;;  %v1000_v56 = vrot.slane %v905_v51, 1  ;;  %v907_v57 = vpop.f32.mrb[23].mxu1  ;;  %1846 = vmatprep.mubr.bf16.mxu0 %v1283_v47 }
 0x210   :  { %v1065_v59 = vadd.f32 %v1045_v55, %v897_v24  ;;  %1847 = vmatmul.mubr.bf16.vlgmr.msra.gmra.mrb[64].mxu0 %v1282_v52 }
 0x211   :  { %v1044_v60 = vsel %vm1023_vm3, %v999_v45, %v1000_v56  ;;  %v4720_v61 = vld [vmem:[#allocation2 + $0x30] ss:$2 sm:$0xff]  ;;  %1928 = vmatpush1.bf16.msra.mxu0 %v3807_v48 }
 0x212   :  { %1097 = vst [vmem:[#allocation2 + $0x48] sm:$0xff] %v1065_v59  ;;  %v1066_v63 = vadd.f32 %v1044_v60, %v902_v40  ;;  %1929 = vmatprep.subr.bf16.mxu0 %v3812_v53  ;;  %v1219_v1 = vrot.slane %v4720_v61, 3  ;;  %v1186_v4 = vrot.slane %v4720_v61, 2  ;;  %v1252_v9 = vrot.slane %v4720_v61, 4 }
 0x213   :  { %v1154_v28 = vrot.slane %v4720_v61, 1  ;;  %v1287_v60 = vpack.c.bf16 %v4720_v61, %v4676_v31 }
 0x214   :  { %1098 = vst [vmem:[#allocation2 + $0x50] sm:$0xff] %v1066_v63  ;;  %v910_v10 = vpop.f32.mrb[24].mxu1  ;;  %v4733_v11 = vsel %vm1232_vm4, %v1218_v37, %v1219_v1  ;;  %v4740_v16 = vsel %vm1199_vm5, %v1185_v38, %v1186_v4  ;;  %v4744_v17 = vsel %vm1265_vm6, %v1251_v39, %v1252_v9  ;;  %v3821_v39 = vld [vmem:[%s5653_s3 + $0x144] ss:$8 sps:$4 sm:$0xff]  }
 0x215   :  { %v1001_v12 = vrot.slane %v910_v10, 1  ;;  %v912_v13 = vpop.f32.mrb[25].mxu1  ;;  %1930 = vmatpush1.bf16.msra.mxu0 %v3810_v62  ;;  %v1179_v47 = vsel %vm1023_vm3, %v1153_v36, %v1154_v28  ;;  %v3824_v62 = vld [vmem:[%s5653_s3 + $0x154] ss:$8 sps:$4 sm:$0xff]  }
 0x216   :  { %v913_v19 = vpop.f32.mrb[26].mxu1  ;;  %1931 = vmatprep.subr.bf16.mxu0 %v3815_v0 }
 0x217   :  { %v1043_v24 = vsel %vm1023_vm3, %v1000_v56, %v1001_v12  ;;  %v1002_v25 = vrot.slane %v913_v19, 1  ;;  %v915_v26 = vpop.f32.mrb[27].mxu1  ;;  %v3819_v56 = vld [vmem:[%s5653_s3 + $0x140] ss:$8 sps:$4 sm:$0xff]  }
 0x218   :  { %v1067_v27 = vadd.f32 %v1043_v24, %v905_v51 }
 0x219   :  { %v1042_v29 = vsel %vm1023_vm3, %v1001_v12, %v1002_v25  ;;  %v4754_v30 = vld [vmem:[#allocation2 + $0x40] ss:$2 sm:$0xff]  ;;  %1932 = vmatpush1.bf16.msra.mxu0 %v3813_v15 }
 0x21a   :  { %1099 = vst [vmem:[#allocation2 + $0x58] sm:$0xff] %v1067_v27  ;;  %v1068_v37 = vadd.f32 %v1042_v29, %v910_v10  ;;  %v1155_v38 = vrot.slane %v4754_v30, 1  ;;  %1933 = vmatprep.subr.bf16.mxu0 %v3818_v20  ;;  %v1220_v40 = vrot.slane %v4754_v30, 3  ;;  %v1187_v41 = vrot.slane %v4754_v30, 2  ;;  %v3827_v15 = vld [vmem:[%s5653_s3 + $0x164] ss:$8 sps:$4 sm:$0xff]  }
 0x21b   :  { %v1253_v42 = vrot.slane %v4754_v30, 4  ;;  %v3825_v29 = vld [vmem:[%s5653_s3 + $0x160] ss:$8 sps:$4 sm:$0xff]  }
 0x21c   :  { %1100 = vst [vmem:[#allocation2 + $0x60] sm:$0xff] %v1068_v37  ;;  %v918_v45 = vpop.f32.mrb[28].mxu1  ;;  %v1178_v46 = vsel %vm1023_vm3, %v1154_v28, %v1155_v38  ;;  %v4776_v48 = vsel %vm1232_vm4, %v1219_v1, %v1220_v40  ;;  %v4780_v51 = vsel %vm1199_vm5, %v1186_v4, %v1187_v41 }
 0x21d   :  { %v1003_v52 = vrot.slane %v918_v45, 1  ;;  %v920_v53 = vpop.f32.mrb[29].mxu1  ;;  %v1288_v55 = vpack.c.bf16 %v1178_v46, %v1179_v47  ;;  %1934 = vmatpush1.bf16.msra.mxu0 %v3816_v34  ;;  %v4796_v63 = vsel %vm1265_vm6, %v1252_v9, %v1253_v42  ;;  %v3822_v9 = vld [vmem:[%s5653_s3 + $0x150] ss:$8 sps:$4 sm:$0xff]  }
 0x21e   :  { %v921_v59 = vpop.f32.mrb[30].mxu1  ;;  %1935 = vmatprep.subr.bf16.mxu0 %v3821_v39 }
 0x21f   :  { %v1041_v0 = vsel %vm1023_vm3, %v1002_v25, %v1003_v52  ;;  %v1004_v1 = vrot.slane %v921_v59, 1  ;;  %v923_v4 = vpop.f32.mrb[31].mxu1  ;;  %1856 = vmatprep.mubr.bf16.mxu0 %v1288_v55 }
 0x220   :  { %v1069_v12 = vadd.f32 %v1041_v0, %v913_v19  ;;  %1857 = vmatmul.mubr.bf16.gmra.mrb[68].mxu0 %v1287_v60 }
 0x221   :  { %v1040_v31 = vsel %vm1023_vm3, %v1003_v52, %v1004_v1  ;;  %v4804_v61 = vld [vmem:[#allocation2 + $0x50] ss:$2 sm:$0xff]  ;;  %1936 = vmatpush1.bf16.msra.mxu0 %v3819_v56 }
 0x222   :  { %1101 = vst [vmem:[#allocation2 + $0x68] sm:$0xff] %v1069_v12  ;;  %v1070_v13 = vadd.f32 %v1040_v31, %v918_v45  ;;  %1937 = vmatprep.subr.bf16.mxu0 %v3824_v62  ;;  %v1221_v19 = vrot.slane %v4804_v61, 3  ;;  %v1188_v20 = vrot.slane %v4804_v61, 2  ;;  %v1254_v24 = vrot.slane %v4804_v61, 4 }
 0x223   :  { %v1156_v53 = vrot.slane %v4804_v61, 1 }
 0x224   :  { %1102 = vst [vmem:[#allocation2 + $0x70] sm:$0xff] %v1070_v13  ;;  %v926_v25 = vpop.f32.mrb[32].mxu1  ;;  %v4817_v26 = vsel %vm1232_vm4, %v1220_v40, %v1221_v19  ;;  %v4824_v34 = vsel %vm1199_vm5, %v1187_v41, %v1188_v20  ;;  %v4828_v37 = vsel %vm1265_vm6, %v1253_v42, %v1254_v24  ;;  %v3830_v40 = vld [vmem:[%s5653_s3 + $0x174] ss:$8 sps:$4 sm:$0xff]   ;;  %v3828_v42 = vld [vmem:[%s5653_s3 + $0x170] ss:$8 sps:$4 sm:$0xff]  }
 0x225   :  { %v1005_v27 = vrot.slane %v926_v25, 1  ;;  %v928_v28 = vpop.f32.mrb[33].mxu1  ;;  %1938 = vmatpush1.bf16.msra.mxu0 %v3822_v9  ;;  %v1177_v31 = vsel %vm1023_vm3, %v1155_v38, %v1156_v53 }
 0x226   :  { %v929_v39 = vpop.f32.mrb[34].mxu1  ;;  %1939 = vmatprep.subr.bf16.mxu0 %v3827_v15  ;;  %v3831_v28 = vld [vmem:[%s5653_s3 + $0x180] ss:$8 sps:$4 sm:$0xff]  }
 0x227   :  { %v1039_v45 = vsel %vm1023_vm3, %v1004_v1, %v1005_v27  ;;  %v1006_v46 = vrot.slane %v929_v39, 1  ;;  %v931_v47 = vpop.f32.mrb[35].mxu1 }
 0x228   :  { %v1071_v52 = vadd.f32 %v1039_v45, %v921_v59  ;;  %v3833_v59 = vld [vmem:[%s5653_s3 + $0x184] ss:$8 sps:$4 sm:$0xff]  }
 0x229   :  { %v1038_v41 = vsel %vm1023_vm3, %v1005_v27, %v1006_v46  ;;  %v4838_v55 = vld [vmem:[#allocation2 + $0x60] ss:$2 sm:$0xff]  ;;  %1940 = vmatpush1.bf16.msra.mxu0 %v3825_v29 }
 0x22a   :  { %1103 = vst [vmem:[#allocation2 + $0x78] sm:$0xff] %v1071_v52  ;;  %v1072_v56 = vadd.f32 %v1038_v41, %v926_v25  ;;  %v1157_v60 = vrot.slane %v4838_v55, 1  ;;  %1941 = vmatprep.subr.bf16.mxu0 %v3830_v40  ;;  %v1222_v62 = vrot.slane %v4838_v55, 3  ;;  %v1189_v0 = vrot.slane %v4838_v55, 2 }
 0x22b   :  { %v1255_v1 = vrot.slane %v4838_v55, 4  ;;  %v1292_v40 = vpack.c.bf16 %v4804_v61, %v4754_v30 }
 0x22c   :  { %1104 = vst [vmem:[#allocation2 + $0x80] sm:$0xff] %v1072_v56  ;;  %v934_v4 = vpop.f32.mrb[36].mxu1  ;;  %v1176_v12 = vsel %vm1023_vm3, %v1156_v53, %v1157_v60  ;;  %v4860_v9 = vsel %vm1232_vm4, %v1221_v19, %v1222_v62  ;;  %v4864_v13 = vsel %vm1199_vm5, %v1188_v20, %v1189_v0  ;;  %v3836_v20 = vld [vmem:[%s5653_s3 + $0x194] ss:$8 sps:$4 sm:$0xff]   ;;  %v3839_v56 = vld [vmem:[%s5653_s3 + $0x1a4] ss:$8 sps:$4 sm:$0xff]  }
 0x22d   :  { %v1007_v15 = vrot.slane %v934_v4, 1  ;;  %v936_v25 = vpop.f32.mrb[37].mxu1  ;;  %v1293_v27 = vpack.c.bf16 %v1176_v12, %v1177_v31  ;;  %1942 = vmatpush1.bf16.msra.mxu0 %v3828_v42  ;;  %v4880_v45 = vsel %vm1265_vm6, %v1254_v24, %v1255_v1  ;;  %v3834_v24 = vld [vmem:[%s5653_s3 + $0x190] ss:$8 sps:$4 sm:$0xff]  }
 0x22e   :  { %v937_v19 = vpop.f32.mrb[38].mxu1  ;;  %1943 = vmatprep.subr.bf16.mxu0 %v3833_v59 }
 0x22f   :  { %v1037_v47 = vsel %vm1023_vm3, %v1006_v46, %v1007_v15  ;;  %v1008_v52 = vrot.slane %v937_v19, 1  ;;  %v939_v53 = vpop.f32.mrb[39].mxu1  ;;  %1866 = vmatprep.mubr.bf16.mxu0 %v1293_v27 }
 0x230   :  { %v1073_v42 = vadd.f32 %v1037_v47, %v929_v39  ;;  %1867 = vmatmul.mubr.bf16.gmra.mrb[72].mxu0 %v1292_v40 }
 0x231   :  { %v1036_v30 = vsel %vm1023_vm3, %v1007_v15, %v1008_v52  ;;  %v4888_v61 = vld [vmem:[#allocation2 + $0x70] ss:$2 sm:$0xff]  ;;  %1944 = vmatpush1.bf16.msra.mxu0 %v3831_v28 }
 0x232   :  { %1105 = vst [vmem:[#allocation2 + $0x88] sm:$0xff] %v1073_v42  ;;  %v1074_v46 = vadd.f32 %v1036_v30, %v934_v4  ;;  %1945 = vmatprep.subr.bf16.mxu0 %v3836_v20  ;;  %v1223_v39 = vrot.slane %v4888_v61, 3  ;;  %v1190_v59 = vrot.slane %v4888_v61, 2  ;;  %v1256_v12 = vrot.slane %v4888_v61, 4  ;;  %v3837_v4 = vld [vmem:[%s5653_s3 + $0x1a0] ss:$8 sps:$4 sm:$0xff]  }
 0x234   :  { %1106 = vst [vmem:[#allocation2 + $0x90] sm:$0xff] %v1074_v46  ;;  %v942_v31 = vpop.f32.mrb[40].mxu1  ;;  %v4901_v15 = vsel %vm1232_vm4, %v1222_v62, %v1223_v39  ;;  %v4908_v28 = vsel %vm1199_vm5, %v1189_v0, %v1190_v59  ;;  %v4912_v40 = vsel %vm1265_vm6, %v1255_v1, %v1256_v12  ;;  %v3842_v62 = vld [vmem:[%s5653_s3 + $0x1b4] ss:$8 sps:$4 sm:$0xff]   ;;  %v3840_v1 = vld [vmem:[%s5653_s3 + $0x1b0] ss:$8 sps:$4 sm:$0xff]  }
 0x235   :  { %v1009_v25 = vrot.slane %v942_v31, 1  ;;  %v944_v27 = vpop.f32.mrb[41].mxu1  ;;  %1946 = vmatpush1.bf16.msra.mxu0 %v3834_v24  ;;  %v1158_v24 = vrot.slane %v4888_v61, 1 }
 0x236   :  { %v945_v20 = vpop.f32.mrb[42].mxu1  ;;  %1947 = vmatprep.subr.bf16.mxu0 %v3839_v56 }
 0x237   :  { %v1035_v47 = vsel %vm1023_vm3, %v1008_v52, %v1009_v25  ;;  %v1010_v53 = vrot.slane %v945_v20, 1  ;;  %v947_v42 = vpop.f32.mrb[43].mxu1 }
 0x238   :  { %v1075_v30 = vadd.f32 %v1035_v47, %v937_v19  ;;  %v3845_v19 = vld [vmem:[%s5653_s3 + $0x1c4] ss:$8 sps:$4 sm:$0xff]  }
 0x239   :  { %v1034_v0 = vsel %vm1023_vm3, %v1009_v25, %v1010_v53  ;;  %v4922_v46 = vld [vmem:[#allocation2 + $0x80] ss:$2 sm:$0xff]  ;;  %1948 = vmatpush1.bf16.msra.mxu0 %v3837_v4 }
 0x23a   :  { %1107 = vst [vmem:[#allocation2 + $0x98] sm:$0xff] %v1075_v30  ;;  %v1076_v56 = vadd.f32 %v1034_v0, %v942_v31  ;;  %v1159_v27 = vrot.slane %v4922_v46, 1  ;;  %1949 = vmatprep.subr.bf16.mxu0 %v3842_v62  ;;  %v1224_v52 = vrot.slane %v4922_v46, 3  ;;  %v1191_v25 = vrot.slane %v4922_v46, 2 }
 0x23b   :  { %v1257_v47 = vrot.slane %v4922_v46, 4  ;;  %v1175_v62 = vsel %vm1023_vm3, %v1157_v60, %v1158_v24 }
 0x23c   :  { %1108 = vst [vmem:[#allocation2 + $0xa0] sm:$0xff] %v1076_v56  ;;  %v950_v4 = vpop.f32.mrb[44].mxu1  ;;  %v1174_v31 = vsel %vm1023_vm3, %v1158_v24, %v1159_v27  ;;  %v4944_v42 = vsel %vm1232_vm4, %v1223_v39, %v1224_v52  ;;  %v4948_v30 = vsel %vm1199_vm5, %v1190_v59, %v1191_v25  ;;  %v1297_v24 = vpack.c.bf16 %v4888_v61, %v4838_v55  ;;  %v3848_v59 = vld [vmem:[%s5653_s3 + $0x1d4] ss:$8 sps:$4 sm:$0xff]  }
 0x23d   :  { %v1011_v0 = vrot.slane %v950_v4, 1  ;;  %v952_v56 = vpop.f32.mrb[45].mxu1  ;;  %v1298_v5 = vpack.c.bf16 %v1174_v31, %v1175_v62  ;;  %1950 = vmatpush1.bf16.msra.mxu0 %v3840_v1  ;;  %v4964_v1 = vsel %vm1265_vm6, %v1256_v12, %v1257_v47  ;;  %v3846_v12 = vld [vmem:[%s5653_s3 + $0x1d0] ss:$8 sps:$4 sm:$0xff]  }
 0x23e   :  { %v953_v39 = vpop.f32.mrb[46].mxu1  ;;  %1951 = vmatprep.subr.bf16.mxu0 %v3845_v19 }
 0x23f   :  { %v1033_v31 = vsel %vm1023_vm3, %v1010_v53, %v1011_v0  ;;  %v1012_v62 = vrot.slane %v953_v39, 1  ;;  %v955_v56 = vpop.f32.mrb[47].mxu1  ;;  %1876 = vmatprep.mubr.bf16.mxu0 %v1298_v5  ;;  %v3851_v5 = vld [vmem:[%s5653_s3 + $0x1e4] ss:$8 sps:$4 sm:$0xff]  }
 0x240   :  { %v1077_v58 = vadd.f32 %v1033_v31, %v945_v20  ;;  %1877 = vmatmul.mubr.bf16.gmra.mrb[76].mxu0 %v1297_v24 }
 0x241   :  { %v1032_v55 = vsel %vm1023_vm3, %v1011_v0, %v1012_v62  ;;  %v1138_v61 = vld [vmem:[#allocation2 + $0x90] ss:$2 sm:$0xff]  ;;  %1952 = vmatpush1.bf16.msra.mxu0 %v3843_v3 }
 0x242   :  { %1109 = vst [vmem:[#allocation2 + $0xa8] sm:$0xff] %v1077_v58  ;;  %v1078_v19 = vadd.f32 %v1032_v55, %v950_v4  ;;  %1953 = vmatprep.subr.bf16.mxu0 %v3848_v59  ;;  %v1225_v53 = vrot.slane %v1138_v61, 3  ;;  %v1192_v56 = vrot.slane %v1138_v61, 2  ;;  %v1258_v20 = vrot.slane %v1138_v61, 4  ;;  %v3849_v58 = vld [vmem:[%s5653_s3 + $0x1e0] ss:$8 sps:$4 sm:$0xff]  }
 0x243   :  { %v1160_v60 = vrot.slane %v1138_v61, 1 }
 0x244   :  { %1110 = vst [vmem:[#allocation2 + $0xb0] sm:$0xff] %v1078_v19  ;;  %v958_v24 = vpop.f32.mrb[48].mxu1  ;;  %v4980_v0 = vsel %vm1232_vm4, %v1224_v52, %v1225_v53  ;;  %v4987_v4 = vsel %vm1199_vm5, %v1191_v25, %v1192_v56  ;;  %v4991_v59 = vsel %vm1265_vm6, %v1257_v47, %v1258_v20  ;;  %v3854_v52 = vld [vmem:[%s5653_s3 + $0x1f4] ss:$8 sps:$4 sm:$0xff]   ;;  %v3852_v47 = vld [vmem:[%s5653_s3 + $0x1f0] ss:$8 sps:$4 sm:$0xff]  }
 0x245   :  { %v1013_v3 = vrot.slane %v958_v24, 1  ;;  %v960_v31 = vpop.f32.mrb[49].mxu1  ;;  %1954 = vmatpush1.bf16.msra.mxu0 %v3846_v12 }
 0x246   :  { %v961_v55 = vpop.f32.mrb[50].mxu1  ;;  %1955 = vmatprep.subr.bf16.mxu0 %v3851_v5 }
 0x247   :  { %v1031_v12 = vsel %vm1023_vm3, %v1012_v62, %v1013_v3  ;;  %v1014_v19 = vrot.slane %v961_v55, 1  ;;  %v963_v31 = vpop.f32.mrb[51].mxu1 }
 0x248   :  { %v1079_v10 = vadd.f32 %v1031_v12, %v953_v39  ;;  %v3857_v39 = vld [vmem:[%s5653_s3 + $0x204] ss:$8 sps:$4 sm:$0xff]  }
 0x249   :  { %v1030_v25 = vsel %vm1023_vm3, %v1013_v3, %v1014_v19  ;;  %v5000_v41 = vld [vmem:[#allocation2 + $0xa0] ss:$2 sm:$0xff]  ;;  %1956 = vmatpush1.bf16.msra.mxu0 %v3849_v58 }
 0x24a   :  { %1111 = vst [vmem:[#allocation2 + $0xb8] sm:$0xff] %v1079_v10  ;;  %v1080_v5 = vadd.f32 %v1030_v25, %v958_v24  ;;  %v1161_v38 = vrot.slane %v5000_v41, 1  ;;  %1957 = vmatprep.subr.bf16.mxu0 %v3854_v52  ;;  %v1226_v62 = vrot.slane %v5000_v41, 3  ;;  %v1193_v3 = vrot.slane %v5000_v41, 2 }
 0x24b   :  { %v1259_v12 = vrot.slane %v5000_v41, 4  ;;  %v1173_v10 = vsel %vm1023_vm3, %v1159_v27, %v1160_v60  ;;  %v1302_v27 = vpack.c.bf16 %v1138_v61, %v4922_v46 }
 0x24c   :  { %1112 = vst [vmem:[#allocation2 + $0xc0] sm:$0xff] %v1080_v5  ;;  %v966_v58 = vpop.f32.mrb[52].mxu1  ;;  %v1172_v31 = vsel %vm1023_vm3, %v1160_v60, %v1161_v38  ;;  %v5020_v24 = vsel %vm1232_vm4, %v1225_v53, %v1226_v62  ;;  %v5024_v52 = vsel %vm1199_vm5, %v1192_v56, %v1193_v3 }
 0x24d   :  { %v1015_v25 = vrot.slane %v966_v58, 1  ;;  %v968_v29 = vpop.f32.mrb[53].mxu1  ;;  %v1303_v5 = vpack.c.bf16 %v1172_v31, %v1173_v10  ;;  %1958 = vmatpush1.bf16.msra.mxu0 %v3852_v47  ;;  %v5033_v60 = vsel %vm1265_vm6, %v1258_v20, %v1259_v12 }
 0x24e   :  { %v969_v50 = vpop.f32.mrb[54].mxu1  ;;  %2040 = vmatprep.subr.bf16.mxu0 %v3857_v39 }
 0x24f   :  { %v1029_v53 = vsel %vm1023_vm3, %v1014_v19, %v1015_v25  ;;  %v1016_v29 = vrot.slane %v969_v50, 1  ;;  %v971_v56 = vpop.f32.mrb[55].mxu1  ;;  %1886 = vmatprep.mubr.bf16.mxu0 %v1303_v5 }
 0x250   :  { %v1081_v31 = vadd.f32 %v1029_v53, %v961_v55  ;;  %1887 = vmatmul.mubr.bf16.gmra.mrb[80].mxu0 %v1302_v27 }
 0x251   :  { %v1028_v10 = vsel %vm1023_vm3, %v1015_v25, %v1016_v29  ;;  %v1142_v46 = vld [vmem:[#allocation2 + $0xb0] ss:$2 sm:$0xff] }
 0x252   :  { %1113 = vst [vmem:[#allocation2 + $0xc8] sm:$0xff] %v1081_v31  ;;  %v1082_v61 = vadd.f32 %v1028_v10, %v966_v58  ;;  %v1227_v39 = vrot.slane %v1142_v46, 3  ;;  %v1194_v20 = vrot.slane %v1142_v46, 2  ;;  %v1260_v57 = vrot.slane %v1142_v46, 4 }
 0x254   :  { %1114 = vst [vmem:[#allocation2 + $0xd0] sm:$0xff] %v1082_v61  ;;  %v974_v36 = vpop.f32.mrb[56].mxu1  ;;  %v5043_v19 = vsel %vm1232_vm4, %v1226_v62, %v1227_v39  ;;  %v5047_v55 = vsel %vm1199_vm5, %v1193_v3, %v1194_v20  ;;  %v5051_v25 = vsel %vm1265_vm6, %v1259_v12, %v1260_v57  ;;  %v1162_v61 = vrot.slane %v1142_v46, 1 }
 0x255   :  { %v1017_v5 = vrot.slane %v974_v36, 1  ;;  %v976_v56 = vpop.f32.mrb[57].mxu1 }
 0x256   :  { %v977_v58 = vpop.f32.mrb[58].mxu1 }
 0x257   :  { %v1027_v27 = vsel %vm1023_vm3, %v1016_v29, %v1017_v5  ;;  %v1018_v53 = vrot.slane %v977_v58, 1  ;;  %v979_v31 = vpop.f32.mrb[59].mxu1 }
 0x258   :  { %v1083_v10 = vadd.f32 %v1027_v27, %v969_v50 }
 0x259   :  { %v1026_v62 = vsel %vm1023_vm3, %v1017_v5, %v1018_v53  ;;  %v5057_v56 = vld [vmem:[#allocation2 + $0xc0] ss:$2 sm:$0xff]  ;;  %v1171_v5 = vsel %vm1023_vm3, %v1161_v38, %v1162_v61 }
 0x25a   :  { %1115 = vst [vmem:[#allocation2 + $0xd8] sm:$0xff] %v1083_v10  ;;  %v1084_v3 = vadd.f32 %v1026_v62, %v974_v36  ;;  %v1163_v47 = vrot.slane %v5057_v56, 1  ;;  %v5668_v12 = vrot.slane %v5057_v56, 3  ;;  %v1195_v21 = vrot.slane %v5057_v56, 2 }
 0x25b   :  { %v1261_v49 = vrot.slane %v5057_v56, 4 }
 0x25c   :  { %1116 = vst [vmem:[#allocation2 + $0xe0] sm:$0xff] %v1084_v3  ;;  %v982_v29 = vpop.f32.mrb[60].mxu1  ;;  %v1170_v50 = vsel %vm1023_vm3, %v1162_v61, %v1163_v47  ;;  %v5071_v36 = vsel %vm1232_vm4, %v1227_v39, %v5668_v12  ;;  %v5075_v27 = vsel %vm1199_vm5, %v1194_v20, %v1195_v21  ;;  %v1307_v61 = vpack.c.bf16 %v1142_v46, %v5000_v41 }
 0x25d   :  { %v1019_v31 = vrot.slane %v982_v29, 1  ;;  %v984_v10 = vpop.f32.mrb[61].mxu1  ;;  %v1308_v62 = vpack.c.bf16 %v1170_v50, %v1171_v5  ;;  %v1310_v3 = vpack.c.bf16 %v5071_v36, %v5043_v19  ;;  %v5084_v39 = vsel %vm1265_vm6, %v1260_v57, %v1261_v49 }
 0x25e   :  { %v985_v38 = vpop.f32.mrb[62].mxu1  ;;  %v5686_v19 = vpack.c.bf16 %v4796_v63, %v4744_v17  ;;  %v3888_v17 = vld [vmem:[%s5654_s6 + $0x48] sm:$0xff]   ;;  %v1402_v63 = vld [vmem:[%s5655_s4] sm:$0x3] }
 0x25f   :  { %v1025_v20 = vsel %vm1023_vm3, %v1018_v53, %v1019_v31  ;;  %v1020_v12 = vrot.slane %v985_v38, 1  ;;  %v987_v14 = vpop.f32.mrb[63].mxu1  ;;  %1896 = vmatprep.mubr.bf16.mxu0 %v1308_v62 }
 0x260   :  { %v1085_v5 = vadd.f32 %v1025_v20, %v977_v58  ;;  %1897 = vmatmul.mubr.bf16.gmra.mrb[84].mxu0 %v1307_v61 }
 0x261   :  { %v1024_v10 = vsel %vm1023_vm3, %v1019_v31, %v1020_v12  ;;  %v1055_v57 = vsel %vm1023_vm3, %v1020_v12, %v989_v35  ;;  %v5096_v41 = vld [vmem:[#allocation2 + $0xd0] ss:$2 sm:$0xff] }
 0x262   :  { %1117 = vst [vmem:[#allocation2 + $0xe8] sm:$0xff] %v1085_v5  ;;  %v1086_v46 = vadd.f32 %v1024_v10, %v982_v29  ;;  %v1087_v53 = vadd.f32 %v1055_v57, %v985_v38  ;;  %v1196_v14 = vrot.slane %v5096_v41, 2  ;;  %v1262_v62 = vrot.slane %v5096_v41, 4 }
 0x263   :  { %v1164_v35 = vrot.slane %v5096_v41, 1 }
 0x264   :  { %1118 = vst [vmem:[#allocation2 + $0xf0] sm:$0xff] %v1086_v46  ;;  %1119 = vst [vmem:[#allocation2 + $0xf8] sm:$0xff] %v1087_v53  ;;  %v5102_v58 = vsel %vm1199_vm5, %v1195_v21, %v1196_v14  ;;  %v5106_v32 = vsel %vm1265_vm6, %v1261_v49, %v1262_v62  ;;  %v1312_v49 = vpack.c.bf16 %v5096_v41, %v5057_v56 }
 0x265   :  { %v1169_v21 = vsel %vm1023_vm3, %v1163_v47, %v1164_v35 }
 0x269   :  { %v5109_v12 = vld [vmem:[#allocation2 + $0xe0] ss:$2 sm:$0xff] }
 0x26a   :  { %v1165_v29 = vrot.slane %v5109_v12, 1  ;;  %v1197_v31 = vrot.slane %v5109_v12, 2  ;;  %v1263_v61 = vrot.slane %v5109_v12, 4  ;;  %v1230_v57 = vrot.slane %v5109_v12, 3 }
 0x26b   :  { %v1150_v38 = vld [vmem:[#allocation2 + $0xf0] ss:$2 sm:$0xff] }
 0x26c   :  { %v1168_v20 = vsel %vm1023_vm3, %v1164_v35, %v1165_v29  ;;  %v1166_v5 = vrot.slane %v1150_v38, 1  ;;  %v5123_v46 = vsel %vm1199_vm5, %v1196_v14, %v1197_v31  ;;  %v1231_v53 = vrot.slane %v1150_v38, 3 }
 0x26d   :  { %v1313_v10 = vpack.c.bf16 %v1168_v20, %v1169_v21  ;;  %v1314_v35 = vpack.c.bf16 %v5123_v46, %v5102_v58  ;;  %v1198_v7 = vrot.slane %v1150_v38, 2 }
 0x26e   :  { %v1167_v50 = vsel %vm1023_vm3, %v1165_v29, %v1166_v5  ;;  %v1182_v47 = vsel %vm1023_vm3, %v1166_v5, %v1151_v33  ;;  %v5137_v14 = vsel %vm1232_vm4, %v1230_v57, %v1231_v53  ;;  %v5143_v29 = vsel %vm1232_vm4, %v1231_v53, %v1216_v6 }
 0x26f   :  { %1906 = vmatprep.mubr.bf16.mxu0 %v1313_v10  ;;  %v1318_v20 = vpack.c.bf16 %v1182_v47, %v1167_v50  ;;  %v5147_v33 = vsel %vm1265_vm6, %v1262_v62, %v1263_v61  ;;  %v1320_v50 = vpack.c.bf16 %v5143_v29, %v5137_v14  ;;  %v5153_v21 = vsel %vm1199_vm5, %v1197_v31, %v1198_v7 }
 0x270   :  { %1907 = vmatmul.mubr.bf16.gmra.mrb[88].mxu0 %v1312_v49  ;;  %v5670_v5 = vrot.slane %v4644_v8, 2  ;;  %v1316_v6 = vpack.c.bf16 %v5147_v33, %v5106_v32  ;;  %v1264_v49 = vrot.slane %v1150_v38, 4  ;;  %v5671_v31 = vrot.slane %v4644_v8, 4  ;;  %v3880_v8 = vld [vmem:[%s5654_s6 + $0x8] sm:$0xff]  }
 0x271   :  { %1916 = vmatprep.mubr.bf16.mxu0 %v1318_v20  ;;  %v5672_v20 = vpack.c.bf16 %v4693_v43, %v4658_v18  ;;  %v3860_v18 = vld [vmem:[%s5653_s3 + $0x214] ss:$8 sps:$4 sm:$0xff]  }
 0x272   :  { %v5159_v10 = vsel %vm1199_vm5, %v1198_v7, %v5670_v5  ;;  %v5167_v53 = vsel %vm1265_vm6, %v1263_v61, %v1264_v49  ;;  %v5173_v47 = vsel %vm1265_vm6, %v1264_v49, %v5671_v31  ;;  %v1317_v5 = vpack.c.bf16 %v1150_v38, %v5109_v12  ;;  %v3879_v61 = vld [vmem:[%s5654_s6] sm:$0xff]   ;;  %v3881_v43 = vld [vmem:[%s5654_s6 + $0x10] sm:$0xff]  }
 0x273   :  { %v1319_v62 = vpack.c.bf16 %v5159_v10, %v5153_v21  ;;  %v1321_v7 = vpack.c.bf16 %v5173_v47, %v5167_v53  ;;  %2306 = vmatpush1.bf16.msra.mxu1 %v3879_v61  ;;  %v5673_v49 = vmov 0   ;;  %v3855_v38 = vld [vmem:[%s5653_s3 + $0x200] ss:$8 sps:$4 sm:$0xff]   ;;  %v5674_v31 = vpack.c.bf16 %v4697_v44, %v4664_v22  ;;  %v3863_v61 = vld [vmem:[%s5653_s3 + $0x224] ss:$8 sps:$4 sm:$0xff]   ;;  %v3882_v22 = vld [vmem:[%s5654_s6 + $0x18] sm:$0xff]  }
 0x274   :  { %2307 = vmatprep.subr.bf16.mxu1 %v5673_v49  ;;  %v3861_v44 = vld [vmem:[%s5653_s3 + $0x220] ss:$8 sps:$4 sm:$0xff]  }
 0x277   :  { %2308 = vmatpush1.bf16.msra.mxu1 %v3880_v8  ;;  %v5676_v8 = vpack.c.bf16 %v4780_v51, %v4740_v16  ;;  %v3884_v16 = vld [vmem:[%s5654_s6 + $0x28] sm:$0xff]  }
 0x278   :  { %1917 = vmatmul.mubr.bf16.gmra.mrb[92].mxu0 %v1317_v5  ;;  %2309 = vmatprep.subr.bf16.mxu1 %v5673_v49  ;;  %v5675_v5 = vpack.c.bf16 %v4776_v48, %v4733_v11  ;;  %v3866_v11 = vld [vmem:[%s5653_s3 + $0x234] ss:$8 sps:$4 sm:$0xff]   ;;  %v3883_v48 = vld [vmem:[%s5654_s6 + $0x20] sm:$0xff]  }
 0x279   :  { %1959 = vmatprep.mubr.bf16.mxu0 %v5672_v20  ;;  %v3858_v20 = vld [vmem:[%s5653_s3 + $0x210] ss:$8 sps:$4 sm:$0xff]   ;;  %v3867_v51 = vld [vmem:[%s5653_s3 + $0x240] ss:$8 sps:$4 sm:$0xff]  }
 0x27b   :  { %2310 = vmatpush1.bf16.msra.mxu1 %v3881_v43  ;;  %v3869_v43 = vld [vmem:[%s5653_s3 + $0x244] ss:$8 sps:$4 sm:$0xff]  }
 0x27c   :  { %2311 = vmatprep.subr.bf16.mxu1 %v5673_v49 }
 0x27f   :  { %2312 = vmatpush1.bf16.msra.mxu1 %v3882_v22  ;;  %v5680_v22 = vpack.c.bf16 %v4948_v30, %v4908_v28  ;;  %v5682_v28 = vpack.c.bf16 %v5024_v52, %v4987_v4  ;;  %v1229_v30 = vrot.slane %v5096_v41, 3  ;;  %v5684_v4 = vpack.c.bf16 %v5075_v27, %v5047_v55 }
 0x280   :  { %1960 = vmatmul.mubr.bf16.vlgmr.msra.gmra.mrb[64].mxu0 %v5674_v31  ;;  %2313 = vmatprep.subr.bf16.mxu1 %v5673_v49  ;;  %v5678_v31 = vpack.c.bf16 %v4864_v13, %v4824_v34  ;;  %v3886_v34 = vld [vmem:[%s5654_s6 + $0x38] sm:$0xff]   ;;  %v3873_v13 = vld [vmem:[%s5653_s3 + $0x260] ss:$8 sps:$4 sm:$0xff]   ;;  %v5685_v52 = vpack.c.bf16 %v4712_v54, %v4670_v23  ;;  %v5687_v55 = vpack.c.bf16 %v4880_v45, %v4828_v37  ;;  %v5691_v37 = vsub.s32 0, %v4431_v2 }
 0x281   :  { %2041 = vmatpush1.bf16.msra.mxu0 %v3855_v38  ;;  %1969 = vmatprep.mubr.bf16.mxu0 %v5675_v5  ;;  %v5677_v38 = vpack.c.bf16 %v4860_v9, %v4817_v26  ;;  %v3872_v26 = vld [vmem:[%s5653_s3 + $0x254] ss:$8 sps:$4 sm:$0xff]   ;;  %v5679_v5 = vpack.c.bf16 %v4944_v42, %v4901_v15  ;;  %v3887_v42 = vld [vmem:[%s5654_s6 + $0x40] sm:$0xff]   ;;  %v5689_v23 = vpack.c.bf16 %v5033_v60, %v4991_v59 }
 0x282   :  { %2042 = vmatprep.subr.bf16.mxu0 %v3860_v18  ;;  %v3864_v18 = vld [vmem:[%s5653_s3 + $0x230] ss:$8 sps:$4 sm:$0xff]   ;;  %v3878_v15 = vld [vmem:[%s5653_s3 + $0x274] ss:$8 sps:$4 sm:$0xff]   ;;  %v5690_v54 = vpack.c.bf16 %v5084_v39, %v5051_v25  ;;  %v5353_v45 = vrot.slane %v1402_v63, %v5691_v37 }
 0x283   :  { %2314 = vmatpush1.bf16.msra.mxu1 %v3883_v48  ;;  %v3885_v9 = vld [vmem:[%s5654_s6 + $0x30] sm:$0xff]  }
 0x284   :  { %2315 = vmatprep.subr.bf16.mxu1 %v5673_v49 }
 0x285   :  { %2043 = vmatpush1.bf16.msra.mxu0 %v3858_v20  ;;  %v3870_v20 = vld [vmem:[%s5653_s3 + $0x250] ss:$8 sps:$4 sm:$0xff]  }
 0x286   :  { %2044 = vmatprep.subr.bf16.mxu0 %v3863_v61  ;;  %v3875_v61 = vld [vmem:[%s5653_s3 + $0x264] ss:$8 sps:$4 sm:$0xff]  }
 0x287   :  { %2316 = vmatpush1.bf16.msra.mxu1 %v3884_v16 }
 0x288   :  { %1970 = vmatmul.mubr.bf16.gmra.mrb[68].mxu0 %v5676_v8  ;;  %2317 = vmatprep.subr.bf16.mxu1 %v5673_v49 }
 0x289   :  { %1979 = vmatprep.mubr.bf16.mxu0 %v5677_v38  ;;  %2045 = vmatpush1.bf16.msra.mxu0 %v3861_v44  ;;  %v5681_v44 = vpack.c.bf16 %v5020_v24, %v4980_v0  ;;  %v1234_v0 = vsel %vm1232_vm4, %v1229_v30, %v1230_v57  ;;  %v5683_v24 = vrot.slane %v5057_v56, 3  ;;  %v5688_v56 = vpack.c.bf16 %v4964_v1, %v4912_v40 }
 0x28a   :  { %2046 = vmatprep.subr.bf16.mxu0 %v3866_v11  ;;  %v3876_v11 = vld [vmem:[%s5653_s3 + $0x270] ss:$8 sps:$4 sm:$0xff]   ;;  %v5692_v40 = vsub.s32 1, %v4431_v2 }
 0x28b   :  { %2318 = vmatpush1.bf16.msra.mxu1 %v3885_v9  ;;  %v1235_v48 = vsel %vm1232_vm4, %v5683_v24, %v1229_v30 }
 0x28c   :  { %2319 = vmatprep.subr.bf16.mxu1 %v5673_v49  ;;  %v1315_v8 = vpack.c.bf16 %v1234_v0, %v1235_v48  ;;  %v5357_v1 = vrot.slane %v1402_v63, %v5692_v40 }
 0x28d   :  { %2047 = vmatpush1.bf16.msra.mxu0 %v3864_v18 }
 0x28e   :  { %2048 = vmatprep.subr.bf16.mxu0 %v3869_v43 }
 0x28f   :  { %2320 = vmatpush1.bf16.msra.mxu1 %v3886_v34 }
 0x290   :  { %1980 = vmatmul.mubr.bf16.gmra.mrb[72].mxu0 %v5678_v31  ;;  %2321 = vmatprep.subr.bf16.mxu1 %v5673_v49 }
 0x291   :  { %1989 = vmatprep.mubr.bf16.mxu0 %v5679_v5  ;;  %2049 = vmatpush1.bf16.msra.mxu0 %v3867_v51 }
 0x292   :  { %2050 = vmatprep.subr.bf16.mxu0 %v3872_v26 }
 0x293   :  { %2322 = vmatpush1.bf16.msra.mxu1 %v3887_v42 }
 0x294   :  { %2323 = vmatprep.subr.bf16.mxu1 %v5673_v49 }
 0x295   :  { %2051 = vmatpush1.bf16.msra.mxu0 %v3870_v20 }
 0x296   :  { %2052 = vmatprep.subr.bf16.mxu0 %v3875_v61 }
 0x297   :  { %2324 = vmatpush1.bf16.msra.mxu1 %v3888_v17 }
 0x298   :  { %1990 = vmatmul.mubr.bf16.gmra.mrb[76].mxu0 %v5680_v22 }
 0x299   :  { %1999 = vmatprep.mubr.bf16.mxu0 %v5681_v44  ;;  %2053 = vmatpush1.bf16.msra.mxu0 %v3873_v13 }
 0x29a   :  { %2054 = vmatprep.subr.bf16.mxu0 %v3878_v15 }
 0x29d   :  { %2055 = vmatpush1.bf16.msra.mxu0 %v3876_v11 }
 0x2a0   :  { %2000 = vmatmul.mubr.bf16.gmra.mrb[80].mxu0 %v5682_v28 }
 0x2a1   :  { %2009 = vmatprep.mubr.bf16.mxu0 %v1310_v3 }
 0x2a8   :  { %2010 = vmatmul.mubr.bf16.gmra.mrb[84].mxu0 %v5684_v4 }
 0x2a9   :  { %2019 = vmatprep.mubr.bf16.mxu0 %v1315_v8 }
 0x2b0   :  { %2020 = vmatmul.mubr.bf16.gmra.mrb[88].mxu0 %v1314_v35 }
 0x2b1   :  { %2029 = vmatprep.mubr.bf16.mxu0 %v1320_v50 }
 0x2b8   :  { %2030 = vmatmul.mubr.bf16.gmra.mrb[92].mxu0 %v1319_v62 }
 0x2b9   :  { %2072 = vmatprep.mubr.bf16.mxu0 %v5673_v49 }
 0x2c0   :  { %2073 = vmatmul.mubr.bf16.vlgmr.msra.gmra.mrb[64].mxu0 %v5685_v52 }
 0x2c1   :  { %2082 = vmatprep.mubr.bf16.mxu0 %v5673_v49 }
 0x2c8   :  { %2083 = vmatmul.mubr.bf16.gmra.mrb[68].mxu0 %v5686_v19 }
 0x2c9   :  { %2092 = vmatprep.mubr.bf16.mxu0 %v5673_v49 }
 0x2d0   :  { %2093 = vmatmul.mubr.bf16.gmra.mrb[72].mxu0 %v5687_v55 }
 0x2d1   :  { %2102 = vmatprep.mubr.bf16.mxu0 %v5673_v49 }
 0x2d8   :  { %2103 = vmatmul.mubr.bf16.gmra.mrb[76].mxu0 %v5688_v56 }
 0x2d9   :  { %2112 = vmatprep.mubr.bf16.mxu0 %v5673_v49 }
 0x2e0   :  { %2113 = vmatmul.mubr.bf16.gmra.mrb[80].mxu0 %v5689_v23 }
 0x2e1   :  { %2122 = vmatprep.mubr.bf16.mxu0 %v5673_v49 }
 0x2e8   :  { %2123 = vmatmul.mubr.bf16.gmra.mrb[84].mxu0 %v5690_v54 }
 0x2e9   :  { %2132 = vmatprep.mubr.bf16.mxu0 %v5673_v49 }
 0x2f0   :  { %2133 = vmatmul.mubr.bf16.gmra.mrb[88].mxu0 %v1316_v6 }
 0x2f1   :  { %2142 = vmatprep.mubr.bf16.mxu0 %v5673_v49 }
 0x2f8   :  { %2143 = vmatmul.mubr.bf16.gmra.mrb[92].mxu0 %v1321_v7 }
 0x393   :  { %v2074_v59 = vpop.f32.mrb[64].mxu0 }
 0x394   :  { %v3571_v60 = vadd.f32 %v2074_v59, %v5353_v45  ;;  %v2076_v25 = vpop.f32.mrb[65].mxu0 }
 0x395   :  { %v3572_v36 = vadd.f32 %v2076_v25, %v5357_v1  ;;  %v2078_v27 = vpop.f32.mrb[66].mxu0 }
 0x396   :  { %4073 = vtanh.f32 %v3571_v60  ;;  %v3573_v3 = vadd.f32 %v2078_v27, %v5353_v45  ;;  %v2080_v39 = vpop.f32.mrb[67].mxu0 }
 0x397   :  { %4075 = vtanh.f32 %v3572_v36  ;;  %v3574_v41 = vadd.f32 %v2080_v39, %v5357_v1 }
 0x398   :  { %4077 = vtanh.f32 %v3573_v3 }
 0x399   :  { %4079 = vtanh.f32 %v3574_v41 }
 0x39b   :  { %v2084_v58 = vpop.f32.mrb[68].mxu0 }
 0x39c   :  { %v3575_v32 = vadd.f32 %v2084_v58, %v5353_v45  ;;  %v2086_v12 = vpop.f32.mrb[69].mxu0 }
 0x39d   :  { %v3576_v57 = vadd.f32 %v2086_v12, %v5357_v1  ;;  %v2088_v46 = vpop.f32.mrb[70].mxu0 }
 0x39e   :  { %4081 = vtanh.f32 %v3575_v32  ;;  %v3577_v35 = vadd.f32 %v2088_v46, %v5353_v45  ;;  %v2090_v14 = vpop.f32.mrb[71].mxu0 }
 0x39f   :  { %4083 = vtanh.f32 %v3576_v57  ;;  %v3578_v29 = vadd.f32 %v2090_v14, %v5357_v1 }
 0x3a0   :  { %v4074_v33 = vpop.eup %4073  ;;  %4085 = vtanh.f32 %v3577_v35 }
 0x3a1   :  { %v4076_v50 = vpop.eup %4075  ;;  %4087 = vtanh.f32 %v3578_v29 }
 0x3a2   :  { %v4078_v21 = vpop.eup %4077 }
 0x3a3   :  { %v4080_v10 = vpop.eup %4079  ;;  %v2094_v6 = vpop.f32.mrb[72].mxu0  ;;  %v2185_v62 = vpack.c.bf16 %v4078_v21, %v4074_v33 }
 0x3a4   :  { %v3579_v53 = vadd.f32 %v2094_v6, %v5353_v45  ;;  %v2096_v47 = vpop.f32.mrb[73].mxu0  ;;  %v2186_v7 = vpack.c.bf16 %v4080_v10, %v4076_v50 }
 0x3a5   :  { %v3580_v49 = vadd.f32 %v2096_v47, %v5357_v1  ;;  %v2098_v38 = vpop.f32.mrb[74].mxu0 }
 0x3a6   :  { %4089 = vtanh.f32 %v3579_v53  ;;  %v3581_v18 = vadd.f32 %v2098_v38, %v5353_v45  ;;  %v2100_v43 = vpop.f32.mrb[75].mxu0  ;;  %3373 = vmatprep.mubr.msk.bf16.mxu1 %vm353_vm0, %v2186_v7 }
 0x3a7   :  { %4091 = vtanh.f32 %v3580_v49  ;;  %v3582_v16 = vadd.f32 %v2100_v43, %v5357_v1  ;;  %2338 = vmatmul.mubr.bf16.vlgmr.msra.gmra.mrb[64].mxu1 %v2185_v62 }
 0x3a8   :  { %v4082_v51 = vpop.eup %4081  ;;  %4093 = vtanh.f32 %v3581_v18 }
 0x3a9   :  { %v4084_v26 = vpop.eup %4083  ;;  %4095 = vtanh.f32 %v3582_v16 }
 0x3aa   :  { %v4086_v9 = vpop.eup %4085 }
 0x3ab   :  { %v4088_v31 = vpop.eup %4087  ;;  %v2104_v5 = vpop.f32.mrb[76].mxu0  ;;  %v2187_v20 = vpack.c.bf16 %v4086_v9, %v4082_v51 }
 0x3ac   :  { %v3583_v61 = vadd.f32 %v2104_v5, %v5353_v45  ;;  %v2106_v34 = vpop.f32.mrb[77].mxu0  ;;  %v2188_v13 = vpack.c.bf16 %v4088_v31, %v4084_v26 }
 0x3ad   :  { %v3584_v15 = vadd.f32 %v2106_v34, %v5357_v1  ;;  %v2108_v42 = vpop.f32.mrb[78].mxu0 }
 0x3ae   :  { %4097 = vtanh.f32 %v3583_v61  ;;  %v3585_v22 = vadd.f32 %v2108_v42, %v5353_v45  ;;  %v2110_v44 = vpop.f32.mrb[79].mxu0  ;;  %3374 = vmatprep.mubr.msk.bf16.mxu1 %vm353_vm0, %v2188_v13 }
 0x3af   :  { %4099 = vtanh.f32 %v3584_v15  ;;  %v3586_v11 = vadd.f32 %v2110_v44, %v5357_v1  ;;  %2346 = vmatmul.mubr.bf16.gmra.mrb[68].mxu1 %v2187_v20 }
 0x3b0   :  { %v4090_v28 = vpop.eup %4089  ;;  %4101 = vtanh.f32 %v3585_v22 }
 0x3b1   :  { %v4092_v30 = vpop.eup %4091  ;;  %4103 = vtanh.f32 %v3586_v11 }
 0x3b2   :  { %v4094_v0 = vpop.eup %4093 }
 0x3b3   :  { %v4096_v24 = vpop.eup %4095  ;;  %v2114_v48 = vpop.f32.mrb[80].mxu0  ;;  %v2189_v8 = vpack.c.bf16 %v4094_v0, %v4090_v28 }
 0x3b4   :  { %v3587_v4 = vadd.f32 %v2114_v48, %v5353_v45  ;;  %v2116_v52 = vpop.f32.mrb[81].mxu0  ;;  %v2190_v19 = vpack.c.bf16 %v4096_v24, %v4092_v30 }
 0x3b5   :  { %v3588_v55 = vadd.f32 %v2116_v52, %v5357_v1  ;;  %v2118_v56 = vpop.f32.mrb[82].mxu0  ;;  %v3891_v52 = vld [vmem:[%s5656_s7 + $0x48] sm:$0xff]  }
 0x3b6   :  { %4105 = vtanh.f32 %v3587_v4  ;;  %v3589_v23 = vadd.f32 %v2118_v56, %v5353_v45  ;;  %v2120_v54 = vpop.f32.mrb[83].mxu0  ;;  %3375 = vmatprep.mubr.msk.bf16.mxu1 %vm353_vm0, %v2190_v19  ;;  %v3890_v4 = vld [vmem:[%s5656_s7] sm:$0xff]   ;;  %v3892_v19 = vld [vmem:[%s5656_s7 + $0x8] sm:$0xff]   ;;  %v3894_v56 = vld [vmem:[%s5656_s7 + $0x10] sm:$0xff]  }
 0x3b7   :  { %4107 = vtanh.f32 %v3588_v55  ;;  %v3590_v17 = vadd.f32 %v2120_v54, %v5357_v1  ;;  %2354 = vmatmul.mubr.bf16.gmra.mrb[72].mxu1 %v2189_v8  ;;  %v3893_v55 = vld [vmem:[%s5656_s7 + $0x50] sm:$0xff]   ;;  %v3896_v54 = vld [vmem:[%s5656_s7 + $0x18] sm:$0xff]  }
 0x3b8   :  { %v4098_v63 = vpop.eup %4097  ;;  %4109 = vtanh.f32 %v3589_v23  ;;  %v3895_v23 = vld [vmem:[%s5656_s7 + $0x58] sm:$0xff]  }
 0x3b9   :  { %v4100_v37 = vpop.eup %4099  ;;  %4111 = vtanh.f32 %v3590_v17  ;;  %v3897_v17 = vld [vmem:[%s5656_s7 + $0x60] sm:$0xff]  }
 0x3ba   :  { %v4102_v40 = vpop.eup %4101 }
 0x3bb   :  { %v4104_v59 = vpop.eup %4103  ;;  %v2124_v60 = vpop.f32.mrb[84].mxu0  ;;  %v2191_v25 = vpack.c.bf16 %v4102_v40, %v4098_v63  ;;  %v3898_v63 = vld [vmem:[%s5656_s7 + $0x20] sm:$0xff]   ;;  %v3900_v40 = vld [vmem:[%s5656_s7 + $0x28] sm:$0xff]  }
 0x3bc   :  { %v3591_v36 = vadd.f32 %v2124_v60, %v5353_v45  ;;  %v2126_v27 = vpop.f32.mrb[85].mxu0  ;;  %v2192_v3 = vpack.c.bf16 %v4104_v59, %v4100_v37  ;;  %v3899_v37 = vld [vmem:[%s5656_s7 + $0x68] sm:$0xff]   ;;  %v3901_v59 = vld [vmem:[%s5656_s7 + $0x70] sm:$0xff]  }
 0x3bd   :  { %v3592_v39 = vadd.f32 %v2126_v27, %v5357_v1  ;;  %v2128_v41 = vpop.f32.mrb[86].mxu0  ;;  %v3902_v60 = vld [vmem:[%s5656_s7 + $0x30] sm:$0xff]   ;;  %v3905_v27 = vld [vmem:[%s5656_s7 + $0xc0] sm:$0xff]  }
 0x3be   :  { %4113 = vtanh.f32 %v3591_v36  ;;  %v3593_v58 = vadd.f32 %v2128_v41, %v5353_v45  ;;  %v2130_v32 = vpop.f32.mrb[87].mxu0  ;;  %3376 = vmatprep.mubr.msk.bf16.mxu1 %vm353_vm0, %v2192_v3  ;;  %v3904_v36 = vld [vmem:[%s5656_s7 + $0x38] sm:$0xff]   ;;  %v4142_v3 = vmov 0.0  }
 0x3bf   :  { %4115 = vtanh.f32 %v3592_v39  ;;  %v3594_v12 = vadd.f32 %v2130_v32, %v5357_v1  ;;  %2362 = vmatmul.mubr.bf16.gmra.mrb[76].mxu1 %v2191_v25  ;;  %v3903_v25 = vld [vmem:[%s5656_s7 + $0x78] sm:$0xff]   ;;  %3551 = vmatprep.subr.bf16.mxu0 %v4142_v3 }
 0x3c0   :  { %v4106_v57 = vpop.eup %4105  ;;  %4117 = vtanh.f32 %v3593_v58  ;;  %3567 = vmatprep.mubr.msk.bf16.mxu0 %vm4143_vm7, %v4142_v3 }
 0x3c1   :  { %v4108_v46 = vpop.eup %4107  ;;  %4119 = vtanh.f32 %v3594_v12 }
 0x3c2   :  { %v4110_v35 = vpop.eup %4109 }
 0x3c3   :  { %v4112_v14 = vpop.eup %4111  ;;  %v2134_v29 = vpop.f32.mrb[88].mxu0  ;;  %v2193_v33 = vpack.c.bf16 %v4110_v35, %v4106_v57 }
 0x3c4   :  { %v3595_v50 = vadd.f32 %v2134_v29, %v5353_v45  ;;  %v2136_v21 = vpop.f32.mrb[89].mxu0  ;;  %v2194_v10 = vpack.c.bf16 %v4112_v14, %v4108_v46 }
 0x3c5   :  { %v3596_v6 = vadd.f32 %v2136_v21, %v5357_v1  ;;  %v2138_v62 = vpop.f32.mrb[90].mxu0 }
 0x3c6   :  { %4121 = vtanh.f32 %v3595_v50  ;;  %v3597_v53 = vadd.f32 %v2138_v62, %v5353_v45  ;;  %v2140_v47 = vpop.f32.mrb[91].mxu0  ;;  %3377 = vmatprep.mubr.msk.bf16.mxu1 %vm353_vm0, %v2194_v10 }
 0x3c7   :  { %4123 = vtanh.f32 %v3596_v6  ;;  %v3598_v7 = vadd.f32 %v2140_v47, %v5357_v1  ;;  %2370 = vmatmul.mubr.bf16.gmra.mrb[80].mxu1 %v2193_v33 }
 0x3c8   :  { %v4114_v49 = vpop.eup %4113  ;;  %4125 = vtanh.f32 %v3597_v53 }
 0x3c9   :  { %v4116_v38 = vpop.eup %4115  ;;  %4127 = vtanh.f32 %v3598_v7 }
 0x3ca   :  { %v4118_v18 = vpop.eup %4117 }
 0x3cb   :  { %v4120_v43 = vpop.eup %4119  ;;  %v2144_v16 = vpop.f32.mrb[92].mxu0  ;;  %v2195_v51 = vpack.c.bf16 %v4118_v18, %v4114_v49 }
 0x3cc   :  { %v3599_v26 = vadd.f32 %v2144_v16, %v5353_v45  ;;  %v2146_v9 = vpop.f32.mrb[93].mxu0  ;;  %v2196_v31 = vpack.c.bf16 %v4120_v43, %v4116_v38 }
 0x3cd   :  { %v3600_v5 = vadd.f32 %v2146_v9, %v5357_v1  ;;  %v2148_v20 = vpop.f32.mrb[94].mxu0 }
 0x3ce   :  { %4129 = vtanh.f32 %v3599_v26  ;;  %v3601_v61 = vadd.f32 %v2148_v20, %v5353_v45  ;;  %v2150_v34 = vpop.f32.mrb[95].mxu0  ;;  %3378 = vmatprep.mubr.msk.bf16.mxu1 %vm353_vm0, %v2196_v31 }
 0x3cf   :  { %4131 = vtanh.f32 %v3600_v5  ;;  %v3602_v13 = vadd.f32 %v2150_v34, %v5357_v1  ;;  %2378 = vmatmul.mubr.bf16.gmra.mrb[84].mxu1 %v2195_v51  ;;  %v3889_v1 = vld [vmem:[%s5656_s7 + $0x40] sm:$0xff]  }
 0x3d0   :  { %v4122_v15 = vpop.eup %4121  ;;  %4133 = vtanh.f32 %v3601_v61  ;;  %3440 = vmatprep.subr.bf16.mxu1 %v3889_v1 }
 0x3d1   :  { %v4124_v42 = vpop.eup %4123  ;;  %4135 = vtanh.f32 %v3602_v13  ;;  %3441 = vmatpush3.bf16.msra.mxu1 %v3890_v4 }
 0x3d2   :  { %v4126_v22 = vpop.eup %4125  ;;  %3442 = vmatprep.subr.bf16.mxu1 %v3891_v52 }
 0x3d3   :  { %v4128_v44 = vpop.eup %4127  ;;  %v2197_v11 = vpack.c.bf16 %v4126_v22, %v4122_v15 }
 0x3d4   :  { %v2198_v28 = vpack.c.bf16 %v4128_v44, %v4124_v42 }
 0x3d5   :  { %3443 = vmatpush3.bf16.msra.mxu1 %v3892_v19 }
 0x3d6   :  { %3379 = vmatprep.mubr.msk.bf16.mxu1 %vm353_vm0, %v2198_v28  ;;  %3444 = vmatprep.subr.bf16.mxu1 %v3893_v55 }
 0x3d7   :  { %2386 = vmatmul.mubr.bf16.gmra.mrb[88].mxu1 %v2197_v11 }
 0x3d8   :  { %v4130_v30 = vpop.eup %4129 }
 0x3d9   :  { %v4132_v45 = vpop.eup %4131  ;;  %3445 = vmatpush3.bf16.msra.mxu1 %v3894_v56 }
 0x3da   :  { %v4134_v0 = vpop.eup %4133  ;;  %3446 = vmatprep.subr.bf16.mxu1 %v3895_v23 }
 0x3db   :  { %v4136_v24 = vpop.eup %4135  ;;  %v2199_v48 = vpack.c.bf16 %v4134_v0, %v4130_v30 }
 0x3dc   :  { %v2200_v8 = vpack.c.bf16 %v4136_v24, %v4132_v45 }
 0x3dd   :  { %3447 = vmatpush3.bf16.msra.mxu1 %v3896_v54 }
 0x3de   :  { %3380 = vmatprep.mubr.msk.bf16.mxu1 %vm353_vm0, %v2200_v8  ;;  %3448 = vmatprep.subr.bf16.mxu1 %v3897_v17 }
 0x3df   :  { %2394 = vmatmul.mubr.bf16.gmra.mrb[92].mxu1 %v2199_v48 }
 0x3e1   :  { %3449 = vmatpush3.bf16.msra.mxu1 %v3898_v63 }
 0x3e2   :  { %3450 = vmatprep.subr.bf16.mxu1 %v3899_v37 }
 0x3e5   :  { %3451 = vmatpush3.bf16.msra.mxu1 %v3900_v40 }
 0x3e6   :  { %3452 = vmatprep.subr.bf16.mxu1 %v3901_v59 }
 0x3e9   :  { %3453 = vmatpush3.bf16.msra.mxu1 %v3902_v60 }
 0x3ea   :  { %3454 = vmatprep.subr.bf16.mxu1 %v3903_v25 }
 0x3ed   :  { %3455 = vmatpush3.bf16.msra.mxu1 %v3904_v36 }
 0x3ee   :  { %3462 = vmatprep.subr.bf16.mxu1 %v3905_v27 }
 0x47a   :  { %v5451_v39 = vpop.f32.mrb[64].mxu1 }
 0x47b   :  { %v2341_v41 = vpop.f32.mrb[65].mxu1  ;;  %v2402_v32 = vrot.slane %v5451_v39, 1 }
 0x47c   :  { %v2342_v58 = vpop.f32.mrb[66].mxu1 }
 0x47d   :  { %v2403_v12 = vrot.slane %v2342_v58, 1  ;;  %v2344_v57 = vpop.f32.mrb[67].mxu1 }
 0x47f   :  { %v2432_v46 = vsel %vm1023_vm3, %v2402_v32, %v2403_v12 }
 0x480   :  { %v2434_v35 = vadd.f32 %v2432_v46, %v5451_v39 }
 0x482   :  { %2450 = vst [vmem:[#allocation3] sm:$0xff] %v2434_v35  ;;  %v2347_v14 = vpop.f32.mrb[68].mxu1 }
 0x483   :  { %v2404_v29 = vrot.slane %v2347_v14, 1  ;;  %v2349_v33 = vpop.f32.mrb[69].mxu1 }
 0x484   :  { %v2350_v50 = vpop.f32.mrb[70].mxu1 }
 0x485   :  { %v2431_v21 = vsel %vm1023_vm3, %v2403_v12, %v2404_v29  ;;  %v2405_v10 = vrot.slane %v2350_v50, 1  ;;  %v2352_v6 = vpop.f32.mrb[71].mxu1 }
 0x486   :  { %v2435_v62 = vadd.f32 %v2431_v21, %v2342_v58 }
 0x487   :  { %v2430_v53 = vsel %vm1023_vm3, %v2404_v29, %v2405_v10 }
 0x488   :  { %2451 = vst [vmem:[#allocation3 + $0x8] sm:$0xff] %v2435_v62  ;;  %v2436_v47 = vadd.f32 %v2430_v53, %v2347_v14 }
 0x48a   :  { %2452 = vst [vmem:[#allocation3 + $0x10] sm:$0xff] %v2436_v47  ;;  %v2355_v7 = vpop.f32.mrb[72].mxu1 }
 0x48b   :  { %v2406_v49 = vrot.slane %v2355_v7, 1  ;;  %v2357_v38 = vpop.f32.mrb[73].mxu1 }
 0x48c   :  { %v2358_v18 = vpop.f32.mrb[74].mxu1 }
 0x48d   :  { %v2429_v43 = vsel %vm1023_vm3, %v2405_v10, %v2406_v49  ;;  %v2407_v16 = vrot.slane %v2358_v18, 1  ;;  %v2360_v51 = vpop.f32.mrb[75].mxu1 }
 0x48e   :  { %v2437_v26 = vadd.f32 %v2429_v43, %v2350_v50 }
 0x48f   :  { %v2428_v9 = vsel %vm1023_vm3, %v2406_v49, %v2407_v16 }
 0x490   :  { %2453 = vst [vmem:[#allocation3 + $0x18] sm:$0xff] %v2437_v26  ;;  %v2438_v31 = vadd.f32 %v2428_v9, %v2355_v7 }
 0x491   :  { %v2474_v38 = vld [vmem:[#allocation3 + $0x2] ss:$16 sm:$0x3] }
 0x492   :  { %2454 = vst [vmem:[#allocation3 + $0x20] sm:$0xff] %v2438_v31  ;;  %v2363_v5 = vpop.f32.mrb[76].mxu1 }
 0x493   :  { %v2408_v20 = vrot.slane %v2363_v5, 1  ;;  %v2365_v61 = vpop.f32.mrb[77].mxu1 }
 0x494   :  { %v2366_v34 = vpop.f32.mrb[78].mxu1 }
 0x495   :  { %v2427_v13 = vsel %vm1023_vm3, %v2407_v16, %v2408_v20  ;;  %v2409_v15 = vrot.slane %v2366_v34, 1  ;;  %v2368_v42 = vpop.f32.mrb[79].mxu1  ;;  %v2466_v16 = vld [vmem:[#allocation3] ss:$16 sm:$0x3] }
 0x496   :  { %v2439_v22 = vadd.f32 %v2427_v13, %v2358_v18 }
 0x497   :  { %v2426_v44 = vsel %vm1023_vm3, %v2408_v20, %v2409_v15  ;;  %v2490_v20 = vld [vmem:[#allocation3 + $0x6] ss:$16 sm:$0x3] }
 0x498   :  { %2455 = vst [vmem:[#allocation3 + $0x28] sm:$0xff] %v2439_v22  ;;  %v2440_v11 = vadd.f32 %v2426_v44, %v2363_v5 }
 0x49a   :  { %2456 = vst [vmem:[#allocation3 + $0x30] sm:$0xff] %v2440_v11  ;;  %v2371_v28 = vpop.f32.mrb[80].mxu1 }
 0x49b   :  { %v2410_v30 = vrot.slane %v2371_v28, 1  ;;  %v2373_v45 = vpop.f32.mrb[81].mxu1 }
 0x49c   :  { %v2374_v0 = vpop.f32.mrb[82].mxu1  ;;  %v3906_v45 = vld [vmem:[%s5656_s7 + $0x80] sm:$0xff]  }
 0x49d   :  { %v2425_v24 = vsel %vm1023_vm3, %v2409_v15, %v2410_v30  ;;  %v2411_v48 = vrot.slane %v2374_v0, 1  ;;  %v2376_v8 = vpop.f32.mrb[83].mxu1 }
 0x49e   :  { %v2441_v1 = vadd.f32 %v2425_v24, %v2366_v34  ;;  %v3909_v8 = vld [vmem:[%s5656_s7 + $0xd0] sm:$0xff]  }
 0x49f   :  { %v2424_v4 = vsel %vm1023_vm3, %v2410_v30, %v2411_v48 }
 0x4a0   :  { %2457 = vst [vmem:[#allocation3 + $0x38] sm:$0xff] %v2441_v1  ;;  %v2442_v52 = vadd.f32 %v2424_v4, %v2371_v28  ;;  %v3910_v1 = vld [vmem:[%s5656_s7 + $0x90] sm:$0xff]   ;;  %v3911_v4 = vld [vmem:[%s5656_s7 + $0xd8] sm:$0xff]  }
 0x4a1   :  { %v2475_v18 = vld [vmem:[#allocation3 + $0x2] ss:$16 sm:$0xc]  ;;  %v2467_v43 = vld [vmem:[#allocation3] ss:$16 sm:$0xc] }
 0x4a2   :  { %2458 = vst [vmem:[#allocation3 + $0x40] sm:$0xff] %v2442_v52  ;;  %v2379_v19 = vpop.f32.mrb[84].mxu1  ;;  %v2491_v51 = vld [vmem:[#allocation3 + $0x6] ss:$16 sm:$0xc]  ;;  %v2476_v31 = vor.u32 %v2475_v18, %v2474_v38  ;;  %v2468_v5 = vor.u32 %v2467_v43, %v2466_v16  ;;  %v3912_v52 = vld [vmem:[%s5656_s7 + $0x98] sm:$0xff]  }
 0x4a3   :  { %v2412_v55 = vrot.slane %v2379_v19, 1  ;;  %v2381_v56 = vpop.f32.mrb[85].mxu1  ;;  %v2492_v39 = vor.u32 %v2491_v51, %v2490_v20  ;;  %v3929_v38 = vld [vmem:[%s5657_s9] sm:$0xff]   ;;  %v3930_v18 = vld [vmem:[%s5657_s9 + $0x8] sm:$0xff]   ;;  %v3931_v43 = vld [vmem:[%s5657_s9 + $0x10] sm:$0xff]  }
 0x4a4   :  { %v2382_v23 = vpop.f32.mrb[86].mxu1  ;;  %v3915_v56 = vld [vmem:[%s5656_s7 + $0xe8] sm:$0xff]   ;;  %v3932_v16 = vld [vmem:[%s5657_s9 + $0x18] sm:$0xff]   ;;  %v3933_v51 = vld [vmem:[%s5657_s9 + $0x20] sm:$0xff]  }
 0x4a5   :  { %v2423_v54 = vsel %vm1023_vm3, %v2411_v48, %v2412_v55  ;;  %v2413_v17 = vrot.slane %v2382_v23, 1  ;;  %v2384_v63 = vpop.f32.mrb[87].mxu1  ;;  %v3908_v48 = vld [vmem:[%s5656_s7 + $0x88] sm:$0xff]  }
 0x4a6   :  { %v2443_v37 = vadd.f32 %v2423_v54, %v2374_v0  ;;  %v3907_v0 = vld [vmem:[%s5656_s7 + $0xc8] sm:$0xff]   ;;  %v3917_v54 = vld [vmem:[%s5656_s7 + $0xf0] sm:$0xff]  }
 0x4a7   :  { %v2422_v40 = vsel %vm1023_vm3, %v2412_v55, %v2413_v17  ;;  %v3914_v55 = vld [vmem:[%s5656_s7 + $0xa0] sm:$0xff]   ;;  %v3918_v63 = vld [vmem:[%s5656_s7 + $0xb0] sm:$0xff]   ;;  %v3938_v20 = vld [vmem:[%s5658_s11 + $0x8] sm:$0xff]  }
 0x4a8   :  { %2459 = vst [vmem:[#allocation3 + $0x48] sm:$0xff] %v2443_v37  ;;  %v2444_v59 = vadd.f32 %v2422_v40, %v2379_v19  ;;  %v3913_v19 = vld [vmem:[%s5656_s7 + $0xe0] sm:$0xff]  }
 0x4a9   :  { %v2482_v37 = vld [vmem:[#allocation3 + $0x4] ss:$16 sm:$0x3] }
 0x4aa   :  { %2460 = vst [vmem:[#allocation3 + $0x50] sm:$0xff] %v2444_v59  ;;  %v2387_v60 = vpop.f32.mrb[88].mxu1  ;;  %v3919_v59 = vld [vmem:[%s5656_s7 + $0xf8] sm:$0xff]  }
 0x4ab   :  { %v2414_v25 = vrot.slane %v2387_v60, 1  ;;  %v2389_v36 = vpop.f32.mrb[89].mxu1 }
 0x4ac   :  { %v2390_v27 = vpop.f32.mrb[90].mxu1 }
 0x4ad   :  { %v2421_v41 = vsel %vm1023_vm3, %v2413_v17, %v2414_v25  ;;  %v2415_v58 = vrot.slane %v2390_v27, 1  ;;  %v2392_v12 = vpop.f32.mrb[91].mxu1  ;;  %v2483_v17 = vld [vmem:[#allocation3 + $0x4] ss:$16 sm:$0xc] }
 0x4ae   :  { %v2445_v57 = vadd.f32 %v2421_v41, %v2382_v23  ;;  %v3916_v23 = vld [vmem:[%s5656_s7 + $0xa8] sm:$0xff]  }
 0x4af   :  { %v2420_v46 = vsel %vm1023_vm3, %v2414_v25, %v2415_v58 }
 0x4b0   :  { %2461 = vst [vmem:[#allocation3 + $0x58] sm:$0xff] %v2445_v57  ;;  %v2446_v35 = vadd.f32 %v2420_v46, %v2387_v60  ;;  %v2484_v60 = vor.u32 %v2483_v17, %v2482_v37  ;;  %v3922_v57 = vld [vmem:[%s5656_s7 + $0x108] sm:$0xff]   ;;  %v3923_v46 = vld [vmem:[%s5656_s7 + $0x110] sm:$0xff]   ;;  %v3422_v17 = vld [vmem:[%s5660_s10] ss:$0 sm:$0xff] }
 0x4b1   :  { %v2477_v26 = vld [vmem:[#allocation3 + $0x2] ss:$16 sm:$0x30]  ;;  %v2469_v9 = vld [vmem:[#allocation3] ss:$16 sm:$0x30] }
 0x4b2   :  { %2462 = vst [vmem:[#allocation3 + $0x60] sm:$0xff] %v2446_v35  ;;  %v2395_v14 = vpop.f32.mrb[92].mxu1  ;;  %v2493_v61 = vld [vmem:[#allocation3 + $0x6] ss:$16 sm:$0x30]  ;;  %v2478_v34 = vor.u32 %v2477_v26, %v2476_v31  ;;  %v2470_v2 = vor.u32 %v2469_v9, %v2468_v5  ;;  %v3924_v35 = vld [vmem:[%s5656_s7 + $0x118] sm:$0xff]  }
 0x4b3   :  { %v2416_v29 = vrot.slane %v2395_v14, 1  ;;  %v2397_v33 = vpop.f32.mrb[93].mxu1  ;;  %v2494_v15 = vor.u32 %v2493_v61, %v2492_v39  ;;  %v2485_v40 = vld [vmem:[#allocation3 + $0x4] ss:$16 sm:$0x30]  ;;  %v3934_v26 = vld [vmem:[%s5657_s9 + $0x28] sm:$0xff]  }
 0x4b4   :  { %v2398_v50 = vpop.f32.mrb[94].mxu1  ;;  %v2486_v36 = vor.u32 %v2485_v40, %v2484_v60  ;;  %v2499_v33 = vld [vmem:[#allocation3 + $0x8] ss:$16 sm:$0xc]  ;;  %v3935_v9 = vld [vmem:[%s5657_s9 + $0x30] sm:$0xff]   ;;  %v3937_v5 = vld [vmem:[%s5658_s11] sm:$0xff]  }
 0x4b5   :  { %v2419_v21 = vsel %vm1023_vm3, %v2415_v58, %v2416_v29  ;;  %v2417_v10 = vrot.slane %v2398_v50, 1  ;;  %v2400_v6 = vpop.f32.mrb[95].mxu1  ;;  %v3921_v58 = vld [vmem:[%s5656_s7 + $0x100] sm:$0xff]   ;;  %v3936_v31 = vld [vmem:[%s5657_s9 + $0x38] sm:$0xff]   ;;  %3552 = vmatpush3.bf16.msra.mxu0 %v3937_v5  ;;  %v3939_v61 = vld [vmem:[%s5658_s11 + $0x10] sm:$0xff]  }
 0x4b6   :  { %v2447_v62 = vadd.f32 %v2419_v21, %v2390_v27  ;;  %v3920_v27 = vld [vmem:[%s5656_s7 + $0xb8] sm:$0xff]   ;;  %3553 = vmatprep.subr.bf16.mxu0 %v4142_v3 }
 0x4b7   :  { %v2418_v53 = vsel %vm1023_vm3, %v2416_v29, %v2417_v10  ;;  %v2433_v47 = vsel %vm1023_vm3, %v2417_v10, %v2402_v32  ;;  %v3926_v29 = vld [vmem:[%s5656_s7 + $0x128] sm:$0xff]   ;;  %v3940_v39 = vld [vmem:[%s5658_s11 + $0x18] sm:$0xff]  }
 0x4b8   :  { %2463 = vst [vmem:[#allocation3 + $0x68] sm:$0xff] %v2447_v62  ;;  %v2448_v7 = vadd.f32 %v2418_v53, %v2395_v14  ;;  %v2449_v49 = vadd.f32 %v2433_v47, %v2398_v50  ;;  %v3925_v14 = vld [vmem:[%s5656_s7 + $0x120] sm:$0xff]   ;;  %v3927_v50 = vld [vmem:[%s5656_s7 + $0x130] sm:$0xff]   ;;  %v2498_v21 = vld [vmem:[#allocation3 + $0x8] ss:$16 sm:$0x3] }
 0x4b9   :  { %v2501_v10 = vld [vmem:[#allocation3 + $0x8] ss:$16 sm:$0x30]  ;;  %v2500_v6 = vor.u32 %v2499_v33, %v2498_v21  ;;  %3554 = vmatpush3.bf16.msra.mxu0 %v3938_v20 }
 0x4ba   :  { %2464 = vst [vmem:[#allocation3 + $0x70] sm:$0xff] %v2448_v7  ;;  %2465 = vst [vmem:[#allocation3 + $0x78] sm:$0xff] %v2449_v49  ;;  %v3928_v47 = vld [vmem:[%s5656_s7 + $0x138] sm:$0xff]   ;;  %3555 = vmatprep.subr.bf16.mxu0 %v4142_v3 }
 0x4bb   :  { %v2502_v53 = vor.u32 %v2501_v10, %v2500_v6 }
 0x4bd   :  { %3556 = vmatpush3.bf16.msra.mxu0 %v3939_v61 }
 0x4be   :  { %3557 = vmatprep.subr.bf16.mxu0 %v4142_v3 }
 0x4c1   :  { %v2479_v32 = vld [vmem:[#allocation3 + $0x2] ss:$16 sm:$0xc0]  ;;  %v2471_v13 = vld [vmem:[#allocation3] ss:$16 sm:$0xc0]  ;;  %3558 = vmatpush3.bf16.msra.mxu0 %v3940_v39 }
 0x4c2   :  { %v2480_v42 = vor.u32 %v2479_v32, %v2478_v34  ;;  %v2472_v22 = vor.u32 %v2471_v13, %v2470_v2  ;;  %v2495_v44 = vld [vmem:[#allocation3 + $0x6] ss:$16 sm:$0xc0]  ;;  %v2487_v25 = vld [vmem:[#allocation3 + $0x4] ss:$16 sm:$0xc0]  ;;  %3559 = vmatprep.subr.bf16.mxu0 %v4142_v3 }
 0x4c3   :  { %v2496_v11 = vor.u32 %v2495_v44, %v2494_v15  ;;  %v2488_v41 = vor.u32 %v2487_v25, %v2486_v36  ;;  %v2503_v62 = vld [vmem:[#allocation3 + $0x8] ss:$16 sm:$0xc0]  ;;  %v3941_v34 = vld [vmem:[%s5658_s11 + $0x20] sm:$0xff]  }
 0x4c4   :  { %v2506_v28 = vpack.c.bf16 %v2480_v42, %v2480_v42  ;;  %v2505_v30 = vpack.c.bf16 %v2472_v22, %v2472_v22  ;;  %v2504_v7 = vor.u32 %v2503_v62, %v2502_v53  ;;  %v3942_v2 = vld [vmem:[%s5658_s11 + $0x28] sm:$0xff]   ;;  %v3381_v44 = vld [vmem:[%s5659_s8] ss:$0 sm:$0xff] }
 0x4c5   :  { %v2508_v24 = vpack.c.bf16 %v2496_v11, %v2496_v11  ;;  %v2507_v12 = vpack.c.bf16 %v2488_v41, %v2488_v41  ;;  %3560 = vmatpush3.bf16.msra.mxu0 %v3941_v34 }
 0x4c6   :  { %2869 = vmatprep.mubr.bf16.mxu1 %v2506_v28  ;;  %v2509_v49 = vpack.c.bf16 %v2504_v7, %v2504_v7  ;;  %3561 = vmatprep.subr.bf16.mxu0 %v4142_v3 }
 0x4c7   :  { %2870 = vmatmul.mubr.bf16.vlgmr.msra.gmra.mrb[96].mxu1 %v2505_v30 }
 0x4c8   :  { %3463 = vmatpush3.bf16.msra.mxu1 %v3906_v45  ;;  %2909 = vmatprep.mubr.bf16.mxu1 %v2508_v24 }
 0x4c9   :  { %3464 = vmatprep.subr.bf16.mxu1 %v3907_v0  ;;  %3562 = vmatpush3.bf16.msra.mxu0 %v3942_v2 }
 0x4ca   :  { %3563 = vmatprep.subr.bf16.mxu0 %v4142_v3 }
 0x4cc   :  { %3465 = vmatpush3.bf16.msra.mxu1 %v3908_v48 }
 0x4cd   :  { %3466 = vmatprep.subr.bf16.mxu1 %v3909_v8 }
 0x4d0   :  { %3467 = vmatpush3.bf16.msra.mxu1 %v3910_v1 }
 0x4d1   :  { %3468 = vmatprep.subr.bf16.mxu1 %v3911_v4 }
 0x4d4   :  { %3469 = vmatpush3.bf16.msra.mxu1 %v3912_v52 }
 0x4d5   :  { %3470 = vmatprep.subr.bf16.mxu1 %v3913_v19 }
 0x4d8   :  { %3471 = vmatpush3.bf16.msra.mxu1 %v3914_v55 }
 0x4d9   :  { %3472 = vmatprep.subr.bf16.mxu1 %v3915_v56 }
 0x4dc   :  { %3473 = vmatpush3.bf16.msra.mxu1 %v3916_v23  ;;  %v3943_v23 = vld [vmem:[%s5658_s11 + $0x30] sm:$0xff]  }
 0x4dd   :  { %3474 = vmatprep.subr.bf16.mxu1 %v3917_v54  ;;  %3564 = vmatpush3.bf16.msra.mxu0 %v3943_v23  ;;  %v3944_v54 = vld [vmem:[%s5658_s11 + $0x38] sm:$0xff]  }
 0x4de   :  { %3565 = vmatprep.subr.bf16.mxu0 %v4142_v3 }
 0x4e0   :  { %3475 = vmatpush3.bf16.msra.mxu1 %v3918_v63 }
 0x4e1   :  { %3476 = vmatprep.subr.bf16.mxu1 %v3919_v59  ;;  %3566 = vmatpush3.bf16.msra.mxu0 %v3944_v54 }
 0x4e4   :  { %3477 = vmatpush3.bf16.msra.mxu1 %v3920_v27 }
 0x4e5   :  { %3511 = vmatprep.subr.bf16.mxu1 %v4142_v3 }
 0x4e7   :  { %2910 = vmatmul.mubr.bf16.vlgmr.msra.gmra.mrb[100].mxu1 %v2507_v12 }
 0x4e8   :  { %3512 = vmatpush3.bf16.msra.mxu1 %v3921_v58  ;;  %3527 = vmatprep.mubr.msk.bf16.mxu1 %vm4143_vm7, %v4142_v3 }
 0x4e9   :  { %3513 = vmatprep.subr.bf16.mxu1 %v4142_v3 }
 0x4ec   :  { %3514 = vmatpush3.bf16.msra.mxu1 %v3922_v57 }
 0x4ed   :  { %3515 = vmatprep.subr.bf16.mxu1 %v4142_v3 }
 0x4f0   :  { %3516 = vmatpush3.bf16.msra.mxu1 %v3923_v46 }
 0x4f1   :  { %3517 = vmatprep.subr.bf16.mxu1 %v4142_v3 }
 0x4f4   :  { %3518 = vmatpush3.bf16.msra.mxu1 %v3924_v35 }
 0x4f5   :  { %3519 = vmatprep.subr.bf16.mxu1 %v4142_v3 }
 0x4f8   :  { %3520 = vmatpush3.bf16.msra.mxu1 %v3925_v14 }
 0x4f9   :  { %3521 = vmatprep.subr.bf16.mxu1 %v4142_v3 }
 0x4fc   :  { %3522 = vmatpush3.bf16.msra.mxu1 %v3926_v29 }
 0x4fd   :  { %3523 = vmatprep.subr.bf16.mxu1 %v4142_v3 }
 0x500   :  { %3524 = vmatpush3.bf16.msra.mxu1 %v3927_v50 }
 0x501   :  { %3525 = vmatprep.subr.bf16.mxu1 %v4142_v3 }
 0x504   :  { %3526 = vmatpush3.bf16.msra.mxu1 %v3928_v47 }
 0x505   :  { %3531 = vmatprep.subr.bf16.mxu1 %v4142_v3 }
 0x507   :  { %3528 = vmatmul.mubr.bf16.vlgmr.msra.gmra.mrb[104].mxu1 %v2509_v49 }
 0x508   :  { %3547 = vmatprep.mubr.msk.bf16.mxu1 %vm4143_vm7, %v4142_v3  ;;  %3532 = vmatpush3.bf16.msra.mxu1 %v3929_v38 }
 0x509   :  { %3533 = vmatprep.subr.bf16.mxu1 %v4142_v3 }
 0x50c   :  { %3534 = vmatpush3.bf16.msra.mxu1 %v3930_v18 }
 0x50d   :  { %3535 = vmatprep.subr.bf16.mxu1 %v4142_v3 }
 0x510   :  { %3536 = vmatpush3.bf16.msra.mxu1 %v3931_v43 }
 0x511   :  { %3537 = vmatprep.subr.bf16.mxu1 %v4142_v3 }
 0x514   :  { %3538 = vmatpush3.bf16.msra.mxu1 %v3932_v16 }
 0x515   :  { %3539 = vmatprep.subr.bf16.mxu1 %v4142_v3 }
 0x518   :  { %3540 = vmatpush3.bf16.msra.mxu1 %v3933_v51 }
 0x519   :  { %3541 = vmatprep.subr.bf16.mxu1 %v4142_v3 }
 0x51c   :  { %3542 = vmatpush3.bf16.msra.mxu1 %v3934_v26 }
 0x51d   :  { %3543 = vmatprep.subr.bf16.mxu1 %v4142_v3 }
 0x520   :  { %3544 = vmatpush3.bf16.msra.mxu1 %v3935_v9 }
 0x521   :  { %3545 = vmatprep.subr.bf16.mxu1 %v4142_v3  ;;  %v3431_v3 = vld [vmem:[%s5661_s12] ss:$0 sm:$0xff] }
 0x524   :  { %3546 = vmatpush3.bf16.msra.mxu1 %v3936_v31 }
 0x59a   :  { %v3456_v32 = vpop.f32.mrb[96].mxu1 }
 0x59b   :  { %v3457_v13 = vpop.f32.mrb[97].mxu1 }
 0x59c   :  { %v3458_v15 = vadd.f32 %v3457_v13, %v3456_v32  ;;  %v3459_v42 = vpop.f32.mrb[98].mxu1 }
 0x59d   :  { %v3460_v22 = vpop.f32.mrb[99].mxu1 }
 0x59e   :  { %v2872_v30 = vadd.f32 %v3458_v15, %v3381_v44 }
 0x5ba   :  { %v3478_v11 = vpop.f32.mrb[100].mxu1 }
 0x5bb   :  { %v3479_v28 = vpop.f32.mrb[101].mxu1 }
 0x5bc   :  { %v3480_v45 = vadd.f32 %v3479_v28, %v3478_v11  ;;  %v3481_v0 = vpop.f32.mrb[102].mxu1 }
 0x5bd   :  { %v3482_v24 = vpop.f32.mrb[103].mxu1 }
 0x5be   :  { %v2912_v48 = vadd.f32 %v3480_v45, %v2872_v30 }
 0x5da   :  { %v2951_v8 = vpop.f32.mrb[104].mxu1 }
 0x5db   :  { %v2952_v1 = vadd.f32 %v2951_v8, %v2912_v48  ;;  %v3529_v4 = vpop.f32.mrb[105].mxu1 }
 0x5dc   :  { %v2954_v52 = vpop.f32.mrb[106].mxu1 }
 0x5dd   :  { %4137 = vtanh.f32 %v2952_v1  ;;  %v3530_v19 = vpop.f32.mrb[107].mxu1 }
 0x5e7   :  { %v4138_v55 = vpop.eup %4137 }
 0x5e8   :  { %v2958_v56 = vpack.c.bf16 %v4138_v55, %v4138_v55 }
 0x5ea   :  { %3548 = vmatmul.mubr.bf16.vlgmr.msra.gmra.mrb[108].mxu1 %v2958_v56 }
 0x6bd   :  { %v3064_v63 = vpop.f32.mrb[108].mxu1 }
 0x6be   :  { %v3065_v37 = vadd.f32 %v3422_v17, %v3064_v63  ;;  %v3549_v40 = vpop.f32.mrb[109].mxu1 }
 0x6bf   :  { %v3067_v59 = vpop.f32.mrb[110].mxu1 }
 0x6c0   :  { %4139 = vtanh.f32 %v3065_v37  ;;  %v3550_v60 = vpop.f32.mrb[111].mxu1 }
 0x6ca   :  { %v4140_v25 = vpop.eup %4139 }
 0x6cb   :  { %v3071_v36 = vpack.c.bf16 %v4140_v25, %v4140_v25 }
 0x6cd   :  { %3568 = vmatmul.mubr.bf16.vlgmr.msra.gmra.mrb[96].mxu0 %v3071_v36 }
 0x7a0   :  { %v3177_v27 = vpop.f32.mrb[96].mxu0 }
 0x7a1   :  { %v3178_v41 = vadd.f32 %v3431_v3, %v3177_v27  ;;  %v3569_v58 = vpop.f32.mrb[97].mxu0 }
 0x7a2   :  { %v3180_v12 = vpop.f32.mrb[98].mxu0 }
 0x7a3   :  { %3183 = vst [vmem:[%s5662_s13] sm:$0xff] %v3178_v41  ;;  %v3570_v57 = vpop.f32.mrb[99].mxu0 }

</bundles_post_ra>
